<compile_context>
chip_gen: v5e
topology: v5e:2x2
jax: 0.10.0
libtpu: 0.0.40
codegen_flags: <defaults>
</compile_context>

<pallas_src>
import jax
import jax.numpy as jnp
import numpy as np
from jax.experimental import pallas as pl
from jax.experimental.pallas import tpu as pltpu

# ---------------- small synthetic Llama-ish config ----------------
B, S = 2, 16            # batch, sequence length (max_length analogue)
HID = 128               # hidden size
N_HEADS = 4
HEAD_DIM = HID // N_HEADS   # 32
FFN = 256               # SwiGLU intermediate size
N_LAYERS = 2
VOCAB = 64
EPS = 1e-6
SCALE = 1.0 / float(np.sqrt(HEAD_DIM))


# ---------------- fused whole-forward kernel ----------------
def _rmsnorm(x, w):
    var = jnp.mean(x * x, axis=-1, keepdims=True)
    return x * jax.lax.rsqrt(var + EPS) * w


def _encoder_kernel(x_ref, mask_ref, cos2_ref, sin2_ref, rot2_ref, hmask_ref,
                    wqkv_ref, wo_ref, wgu_ref, wd_ref,
                    attn_norm_ref, mlp_norm_ref, final_norm_ref,
                    o_ref):
    # One grid step == one batch element.  Everything below is VMEM-resident.
    h = x_ref[0].astype(jnp.float32)   # (S, HID) f32 residual stream (input bf16)
    mrow = mask_ref[0]                 # (1, S)   f32 pad mask (1 = valid token)
    cos2 = cos2_ref[...]               # (S, 2*HID) head-tiled RoPE cos for [q|k]
    sin2 = sin2_ref[...]               # (S, 2*HID) head-tiled RoPE sin for [q|k]
    rot2 = rot2_ref[...]               # (2*HID, 2*HID) bf16 block-diag rotate-half
    neg = (mrow - 1.0) * 1e9           # additive key mask, f32

    for li in range(N_LAYERS):
        # -------- attention block (bidirectional, LLM2Vec-style) --------
        hn = _rmsnorm(h, attn_norm_ref[li])
        qkv = jnp.dot(hn.astype(jnp.bfloat16), wqkv_ref[li],
                      preferred_element_type=jnp.float32)        # (S, 3*HID)
        qk = qkv[:, 0:2 * HID]                                   # 128-lane-aligned slice
        v = qkv[:, 2 * HID:3 * HID]                              # (S, HID)
        # Fused rotate-half RoPE for q and k: one bf16 MXU matmul, f32 cos/sin.
        qk_rot = qk * cos2 + jnp.dot(qk.astype(jnp.bfloat16), rot2,
                                     preferred_element_type=jnp.float32) * sin2
        q = qk_rot[:, 0:HID]                 # 1/sqrt(HEAD_DIM) pre-folded into wqkv
        kb = qk_rot[:, HID:2 * HID].astype(jnp.bfloat16)

        # Head-mask trick: keep every tensor lane-dense at (S, HID); per-head
        # outputs occupy disjoint 32-lane column groups and are summed (VPU).
        attn = jnp.zeros((S, HID), jnp.float32)
        for hh in range(N_HEADS):
            mh = hmask_ref[hh]                                   # (1, HID) head mask
            qmb = (q * mh).astype(jnp.bfloat16)                  # zero outside head hh
            s = jax.lax.dot_general(qmb, kb, (((1,), (1,)), ((), ())),
                                    preferred_element_type=jnp.float32)  # (S, S)
            # Only keys are pad-masked; padded *query* rows are zeroed later by
            # the masked mean pooling.
            s = s + neg
            m = jnp.max(s, axis=-1, keepdims=True)
            p = jnp.exp(s - m)
            l = jnp.sum(p, axis=-1, keepdims=True)
            vm = (v * mh).astype(jnp.bfloat16)
            o_h = jnp.dot(p.astype(jnp.bfloat16), vm,
                          preferred_element_type=jnp.float32)    # (S, HID), head cols
            attn = attn + o_h * pl.reciprocal(l, approx=True)    # deferred softmax norm
        h = h + jnp.dot(attn.astype(jnp.bfloat16), wo_ref[li],
                        preferred_element_type=jnp.float32)      # fused residual

        # -------- SwiGLU MLP block --------
        hn = _rmsnorm(h, mlp_norm_ref[li])
        gu = jnp.dot(hn.astype(jnp.bfloat16), wgu_ref[li],
                     preferred_element_type=jnp.float32)         # (S, 2*FFN)
        g = gu[:, 0:FFN]
        u = gu[:, FFN:2 * FFN]
        act = g * jax.nn.sigmoid(g) * u                          # f32 VPU/EUP
        h = h + jnp.dot(act.astype(jnp.bfloat16), wd_ref[li],
                        preferred_element_type=jnp.float32)      # fused residual

    # -------- final RMSNorm + masked mean pooling (fused) --------
    hn = _rmsnorm(h, final_norm_ref[...])
    summed = jnp.dot(mrow, hn, preferred_element_type=jnp.float32)   # (1, HID)
    cnt = jnp.maximum(jnp.sum(mrow, axis=-1, keepdims=True), 1.0)    # (1, 1)
    o_ref[0] = summed * pl.reciprocal(cnt, approx=True)


# ---------------- parameter / constant setup (glue, deterministic) ----------------
def init_params(key):
    def nrm(k, shape, scale=0.02):
        return (scale * jax.random.normal(k, shape)).astype(jnp.float32)

    keys = jax.random.split(key, 1 + N_LAYERS)
    params = {
        'embed': nrm(keys[0], (VOCAB, HID)),
        'final_norm': jnp.ones((1, HID), jnp.float32),
    }
    wqkv, wo, wgu, wd = [], [], [], []
    for li in range(N_LAYERS):
        lk = jax.random.split(keys[1 + li], 7)
        # Fresh LoRA adapters have B == 0 -> merged weight == base weight.
        wq = nrm(lk[0], (HID, HID)) * SCALE      # fold 1/sqrt(HEAD_DIM) into q proj
        wk, wv = nrm(lk[1], (HID, HID)), nrm(lk[2], (HID, HID))
        wqkv.append(jnp.concatenate([wq, wk, wv], axis=1))       # (HID, 3*HID)
        wo.append(nrm(lk[3], (HID, HID)))
        wg, wu = nrm(lk[4], (HID, FFN)), nrm(lk[5], (HID, FFN))
        wgu.append(jnp.concatenate([wg, wu], axis=1))            # (HID, 2*FFN)
        wd.append(nrm(lk[6], (FFN, HID)))
    params['wqkv'] = jnp.stack(wqkv).astype(jnp.bfloat16)
    params['wo'] = jnp.stack(wo).astype(jnp.bfloat16)
    params['wgu'] = jnp.stack(wgu).astype(jnp.bfloat16)
    params['wd'] = jnp.stack(wd).astype(jnp.bfloat16)
    params['attn_norm'] = jnp.ones((N_LAYERS, 1, HID), jnp.float32)
    params['mlp_norm'] = jnp.ones((N_LAYERS, 1, HID), jnp.float32)
    return params


def rope_constants():
    inv_freq = 1.0 / (10000.0 ** (np.arange(0, HEAD_DIM, 2, dtype=np.float32) / HEAD_DIM))
    t = np.arange(S, dtype=np.float32)
    freqs = np.outer(t, inv_freq)                      # (S, D/2)
    emb = np.concatenate([freqs, freqs], axis=-1)      # (S, D)
    cos = np.tile(np.cos(emb), (1, N_HEADS))           # (S, HID) head-tiled
    sin = np.tile(np.sin(emb), (1, N_HEADS))           # (S, HID)
    # Signed permutation matrix implementing rotate-half per 32-wide head chunk:
    # (x @ rot)[:, base+j]      = -x[:, base+half+j]   (j <  half)
    # (x @ rot)[:, base+half+j] =  x[:, base+j]        (j >= half)
    half = HEAD_DIM // 2
    rot = np.zeros((HID, HID), np.float32)
    for hh in range(N_HEADS):
        base = hh * HEAD_DIM
        for j in range(half):
            rot[base + half + j, base + j] = -1.0
            rot[base + j, base + half + j] = 1.0
    # Fused q|k variants: one rot matmul for the lane-aligned qkv[:, :2*HID] slice.
    cos2 = np.concatenate([cos, cos], axis=1)          # (S, 2*HID)
    sin2 = np.concatenate([sin, sin], axis=1)          # (S, 2*HID)
    rot2 = np.zeros((2 * HID, 2 * HID), np.float32)    # block-diag, entries in {-1,0,1}
    rot2[:HID, :HID] = rot
    rot2[HID:, HID:] = rot
    return (jnp.asarray(cos2), jnp.asarray(sin2),
            jnp.asarray(rot2).astype(jnp.bfloat16))    # bf16 cast is lossless


def head_masks():
    m = np.zeros((N_HEADS, 1, HID), np.float32)
    for hh in range(N_HEADS):
        m[hh, 0, hh * HEAD_DIM:(hh + 1) * HEAD_DIM] = 1.0
    return jnp.asarray(m)


def _cost_estimate():
    per_layer = (2 * S * HID * 3 * HID                       # qkv projection
                 + 2 * S * (2 * HID) * (2 * HID)             # fused RoPE rot matmul
                 + N_HEADS * (2 * S * HID * S                # scores (full-K mask trick)
                              + 2 * S * S * HID)             # p @ v
                 + 2 * S * HID * HID                         # wo
                 + 2 * S * HID * 2 * FFN                     # gate/up
                 + 2 * S * FFN * HID)                        # down
    flops = B * (N_LAYERS * per_layer + 2 * S * HID)
    transcendentals = B * (N_LAYERS * (N_HEADS * S * S + S * FFN + 2 * S) + S)
    weight_bytes = N_LAYERS * 2 * (HID * 3 * HID + HID * HID + HID * 2 * FFN + FFN * HID)
    const_bytes = (2 * S * 2 * HID * 4 + (2 * HID) * (2 * HID) * 2
                   + N_HEADS * HID * 4 + (2 * N_LAYERS + 1) * HID * 4)
    io_bytes = B * S * HID * 2 + B * S * 4 + B * HID * 4
    return pl.CostEstimate(flops=flops, transcendentals=transcendentals,
                           bytes_accessed=weight_bytes + const_bytes + io_bytes)


# ---------------- forward pass (= EncodingModel_Llama2.forward) ----------------
def encode(params, input_ids, attention_mask, rope_consts, hmask):
    # TODO(synk): HuggingFace AutoTokenizer has no Pallas/JAX equivalent;
    # inputs here are pre-tokenized ids + attention mask (embedding gather is XLA glue).
    cos2, sin2, rot2 = rope_consts
    x = jnp.take(params['embed'], input_ids, axis=0).astype(jnp.bfloat16)  # (B,S,HID)
    mask3 = attention_mask.reshape(B, 1, S).astype(jnp.float32)            # (B,1,S)

    def full(shape):
        return pl.BlockSpec(shape, lambda b: (0,) * len(shape))

    out = pl.pallas_call(
        _encoder_kernel,
        out_shape=jax.ShapeDtypeStruct((B, 1, HID), jnp.float32),
        grid=(B,),
        in_specs=[
            pl.BlockSpec((1, S, HID), lambda b: (b, 0, 0)),      # per-batch tokens (bf16)
            pl.BlockSpec((1, 1, S), lambda b: (b, 0, 0)),        # per-batch mask
            full((S, 2 * HID)),                                  # cos (q|k tiled)
            full((S, 2 * HID)),                                  # sin (q|k tiled)
            full((2 * HID, 2 * HID)),                            # rotate-half matrix (bf16)
            full((N_HEADS, 1, HID)),                             # head masks
            full((N_LAYERS, HID, 3 * HID)),                      # wqkv (bf16)
            full((N_LAYERS, HID, HID)),                          # wo   (bf16)
            full((N_LAYERS, HID, 2 * FFN)),                      # wgu  (bf16)
            full((N_LAYERS, FFN, HID)),                          # wd   (bf16)
            full((N_LAYERS, 1, HID)),                            # attn norms
            full((N_LAYERS, 1, HID)),                            # mlp norms
            full((1, HID)),                                      # final norm
        ],
        out_specs=pl.BlockSpec((1, 1, HID), lambda b: (b, 0, 0)),
        compiler_params=pltpu.CompilerParams(
            dimension_semantics=("parallel",)),                  # v7x: 2 TCs split batch
        cost_estimate=_cost_estimate(),
    )(x, mask3, cos2, sin2, rot2, hmask,
      params['wqkv'], params['wo'], params['wgu'], params['wd'],
      params['attn_norm'], params['mlp_norm'], params['final_norm'])
    return out.reshape(B, HID)


if __name__ == "__main__":
    key = jax.random.PRNGKey(0)
    k_param, k_ids = jax.random.split(key)
    params = init_params(k_param)
    rope_consts = rope_constants()
    hmask = head_masks()

    # "tokenize": deterministic token ids + attention mask (second sample padded)
    input_ids = jax.random.randint(k_ids, (B, S), 0, VOCAB, dtype=jnp.int32)
    attention_mask = jnp.concatenate(
        [jnp.ones((1, S), jnp.float32),
         jnp.concatenate([jnp.ones((1, 12), jnp.float32),
                          jnp.zeros((1, S - 12), jnp.float32)], axis=1)],
        axis=0)

    emb = jax.jit(encode)(params, input_ids, attention_mask, rope_consts, hmask)
    emb = jax.block_until_ready(emb)
    assert emb.shape == (B, HID) and emb.dtype == jnp.float32
    assert bool(jnp.all(jnp.isfinite(emb)))
    print("KERNEL_OK")
</pallas_src>

<mosaic_0001>
module attributes {stable_mosaic.version = 11 : i64} {
  func.func @_encoder_kernel(%arg0: i32, %arg1: memref<1x16x128xbf16, #tpu.memory_space<vmem>>, %arg2: memref<1x1x16xf32, #tpu.memory_space<vmem>>, %arg3: memref<16x256xf32, #tpu.memory_space<vmem>>, %arg4: memref<16x256xf32, #tpu.memory_space<vmem>>, %arg5: memref<256x256xbf16, #tpu.memory_space<vmem>>, %arg6: memref<4x1x128xf32, #tpu.memory_space<vmem>>, %arg7: memref<2x128x384xbf16, #tpu.memory_space<vmem>>, %arg8: memref<2x128x128xbf16, #tpu.memory_space<vmem>>, %arg9: memref<2x128x512xbf16, #tpu.memory_space<vmem>>, %arg10: memref<2x256x128xbf16, #tpu.memory_space<vmem>>, %arg11: memref<2x1x128xf32, #tpu.memory_space<vmem>>, %arg12: memref<2x1x128xf32, #tpu.memory_space<vmem>>, %arg13: memref<1x128xf32, #tpu.memory_space<vmem>>, %arg14: memref<1x1x128xf32, #tpu.memory_space<vmem>>) attributes {dimension_semantics = [#tpu.dimension_semantics<parallel>], iteration_bounds = array<i64: 2>, scalar_prefetch = 0 : i64, scratch_operands = 0 : i64, tpu.core_type = #tpu.core_type<tc>, window_params = [{transform_indices = @transform_0, window_bounds = array<i64: 1, 16, 128>}, {transform_indices = @transform_1, window_bounds = array<i64: 1, 1, 16>}, {pipeline_mode = #tpu.pipeline_mode<synchronous>, transform_indices = @transform_2, window_bounds = array<i64: 16, 256>}, {pipeline_mode = #tpu.pipeline_mode<synchronous>, transform_indices = @transform_3, window_bounds = array<i64: 16, 256>}, {pipeline_mode = #tpu.pipeline_mode<synchronous>, transform_indices = @transform_4, window_bounds = array<i64: 256, 256>}, {pipeline_mode = #tpu.pipeline_mode<synchronous>, transform_indices = @transform_5, window_bounds = array<i64: 4, 1, 128>}, {pipeline_mode = #tpu.pipeline_mode<synchronous>, transform_indices = @transform_6, window_bounds = array<i64: 2, 128, 384>}, {pipeline_mode = #tpu.pipeline_mode<synchronous>, transform_indices = @transform_7, window_bounds = array<i64: 2, 128, 128>}, {pipeline_mode = #tpu.pipeline_mode<synchronous>, transform_indices = @transform_8, window_bounds = array<i64: 2, 128, 512>}, {pipeline_mode = #tpu.pipeline_mode<synchronous>, transform_indices = @transform_9, window_bounds = array<i64: 2, 256, 128>}, {pipeline_mode = #tpu.pipeline_mode<synchronous>, transform_indices = @transform_10, window_bounds = array<i64: 2, 1, 128>}, {pipeline_mode = #tpu.pipeline_mode<synchronous>, transform_indices = @transform_11, window_bounds = array<i64: 2, 1, 128>}, {pipeline_mode = #tpu.pipeline_mode<synchronous>, transform_indices = @transform_12, window_bounds = array<i64: 1, 128>}, {transform_indices = @transform_13, window_bounds = array<i64: 1, 1, 128>}]} {
    %c0 = arith.constant 0 : index
    %c0_0 = arith.constant 0 : index
    %c0_1 = arith.constant 0 : index
    %0 = vector.load %arg1[%c0, %c0_0, %c0_1] : memref<1x16x128xbf16, #tpu.memory_space<vmem>>, vector<1x16x128xbf16>
    %1 = vector.shape_cast %0 : vector<1x16x128xbf16> to vector<16x128xbf16>
    %2 = arith.extf %1 : vector<16x128xbf16> to vector<16x128xf32>
    %c0_2 = arith.constant 0 : index
    %c0_3 = arith.constant 0 : index
    %c0_4 = arith.constant 0 : index
    %3 = vector.load %arg2[%c0_2, %c0_3, %c0_4] : memref<1x1x16xf32, #tpu.memory_space<vmem>>, vector<1x1x16xf32>
    %4 = vector.shape_cast %3 : vector<1x1x16xf32> to vector<1x16xf32>
    %c0_5 = arith.constant 0 : index
    %c0_6 = arith.constant 0 : index
    %5 = vector.load %arg3[%c0_5, %c0_6] : memref<16x256xf32, #tpu.memory_space<vmem>>, vector<16x256xf32>
    %c0_7 = arith.constant 0 : index
    %c0_8 = arith.constant 0 : index
    %6 = vector.load %arg4[%c0_7, %c0_8] : memref<16x256xf32, #tpu.memory_space<vmem>>, vector<16x256xf32>
    %c0_9 = arith.constant 0 : index
    %c0_10 = arith.constant 0 : index
    %7 = vector.load %arg5[%c0_9, %c0_10] : memref<256x256xbf16, #tpu.memory_space<vmem>>, vector<256x256xbf16>
    %cst = arith.constant 1.000000e+00 : f32
    %8 = vector.broadcast %cst : f32 to vector<1x16xf32>
    %9 = arith.subf %4, %8 : vector<1x16xf32>
    %cst_11 = arith.constant 1.000000e+09 : f32
    %10 = vector.broadcast %cst_11 : f32 to vector<1x16xf32>
    %11 = arith.mulf %9, %10 : vector<1x16xf32>
    %c0_12 = arith.constant 0 : index
    %c0_13 = arith.constant 0 : index
    %c0_14 = arith.constant 0 : index
    %12 = vector.load %arg11[%c0_12, %c0_13, %c0_14] : memref<2x1x128xf32, #tpu.memory_space<vmem>>, vector<1x1x128xf32>
    %13 = vector.shape_cast %12 : vector<1x1x128xf32> to vector<1x128xf32>
    %14 = arith.mulf %2, %2 : vector<16x128xf32>
    %cst_15 = arith.constant dense<0.000000e+00> : vector<16xf32>
    %15 = vector.multi_reduction <add>, %14, %cst_15 [1] : vector<16x128xf32> to vector<16xf32>
    %16 = vector.shape_cast %15 : vector<16xf32> to vector<16x1xf32>
    %cst_16 = arith.constant 1.280000e+02 : f32
    %17 = vector.broadcast %cst_16 : f32 to vector<16x1xf32>
    %18 = arith.divf %16, %17 : vector<16x1xf32>
    %cst_17 = arith.constant 9.99999997E-7 : f32
    %19 = vector.broadcast %cst_17 : f32 to vector<16x1xf32>
    %20 = arith.addf %18, %19 : vector<16x1xf32>
    %21 = math.rsqrt %20 : vector<16x1xf32>
    %22 = vector.broadcast %21 : vector<16x1xf32> to vector<16x128xf32>
    %23 = arith.mulf %2, %22 : vector<16x128xf32>
    %24 = vector.broadcast %13 : vector<1x128xf32> to vector<16x128xf32>
    %25 = arith.mulf %23, %24 : vector<16x128xf32>
    %26 = arith.truncf %25 : vector<16x128xf32> to vector<16x128xbf16>
    %c0_18 = arith.constant 0 : index
    %c0_19 = arith.constant 0 : index
    %c0_20 = arith.constant 0 : index
    %27 = vector.load %arg7[%c0_18, %c0_19, %c0_20] : memref<2x128x384xbf16, #tpu.memory_space<vmem>>, vector<1x128x384xbf16>
    %28 = vector.shape_cast %27 : vector<1x128x384xbf16> to vector<128x384xbf16>
    %cst_21 = arith.constant dense<0.000000e+00> : vector<16x384xf32>
    %29 = tpu.matmul %26, %28, %cst_21 {dimension_numbers = #tpu.dot_dimension_numbers<[1], [0], [0], [1], [0, 0, 1, 1], [], []>} : vector<16x128xbf16>, vector<128x384xbf16>, vector<16x384xf32> -> vector<16x384xf32>
    %30 = vector.extract_strided_slice %29 {offsets = [0, 0], sizes = [16, 256], strides = [1, 1]} : vector<16x384xf32> to vector<16x256xf32>
    %31 = vector.extract_strided_slice %29 {offsets = [0, 256], sizes = [16, 128], strides = [1, 1]} : vector<16x384xf32> to vector<16x128xf32>
    %32 = arith.mulf %30, %5 : vector<16x256xf32>
    %33 = arith.truncf %30 : vector<16x256xf32> to vector<16x256xbf16>
    %cst_22 = arith.constant dense<0.000000e+00> : vector<16x256xf32>
    %34 = tpu.matmul %33, %7, %cst_22 {dimension_numbers = #tpu.dot_dimension_numbers<[1], [0], [0], [1], [0, 0, 1, 1], [], []>} : vector<16x256xbf16>, vector<256x256xbf16>, vector<16x256xf32> -> vector<16x256xf32>
    %35 = arith.mulf %34, %6 : vector<16x256xf32>
    %36 = arith.addf %32, %35 : vector<16x256xf32>
    %37 = vector.extract_strided_slice %36 {offsets = [0, 0], sizes = [16, 128], strides = [1, 1]} : vector<16x256xf32> to vector<16x128xf32>
    %38 = vector.extract_strided_slice %36 {offsets = [0, 128], sizes = [16, 128], strides = [1, 1]} : vector<16x256xf32> to vector<16x128xf32>
    %39 = arith.truncf %38 : vector<16x128xf32> to vector<16x128xbf16>
    %cst_23 = arith.constant 0.000000e+00 : f32
    %40 = vector.broadcast %cst_23 : f32 to vector<16x128xf32>
    %c0_24 = arith.constant 0 : index
    %c0_25 = arith.constant 0 : index
    %c0_26 = arith.constant 0 : index
    %41 = vector.load %arg6[%c0_24, %c0_25, %c0_26] : memref<4x1x128xf32, #tpu.memory_space<vmem>>, vector<1x1x128xf32>
    %42 = vector.shape_cast %41 : vector<1x1x128xf32> to vector<1x128xf32>
    %43 = vector.broadcast %42 : vector<1x128xf32> to vector<16x128xf32>
    %44 = arith.mulf %37, %43 : vector<16x128xf32>
    %45 = arith.truncf %44 : vector<16x128xf32> to vector<16x128xbf16>
    %cst_27 = arith.constant dense<0.000000e+00> : vector<16x16xf32>
    %46 = tpu.matmul %45, %39, %cst_27 {dimension_numbers = #tpu.dot_dimension_numbers<[1], [1], [0], [0], [0, 0, 1, 0], [], []>} : vector<16x128xbf16>, vector<16x128xbf16>, vector<16x16xf32> -> vector<16x16xf32>
    %47 = vector.broadcast %11 : vector<1x16xf32> to vector<16x16xf32>
    %48 = arith.addf %46, %47 : vector<16x16xf32>
    %cst_28 = arith.constant dense<0xFF800000> : vector<16xf32>
    %49 = vector.multi_reduction <maximumf>, %48, %cst_28 [1] : vector<16x16xf32> to vector<16xf32>
    %50 = vector.shape_cast %49 : vector<16xf32> to vector<16x1xf32>
    %51 = vector.broadcast %50 : vector<16x1xf32> to vector<16x16xf32>
    %52 = arith.subf %48, %51 : vector<16x16xf32>
    %53 = math.exp %52 : vector<16x16xf32>
    %cst_29 = arith.constant dense<0.000000e+00> : vector<16xf32>
    %54 = vector.multi_reduction <add>, %53, %cst_29 [1] : vector<16x16xf32> to vector<16xf32>
    %55 = vector.shape_cast %54 : vector<16xf32> to vector<16x1xf32>
    %56 = vector.broadcast %42 : vector<1x128xf32> to vector<16x128xf32>
    %57 = arith.mulf %31, %56 : vector<16x128xf32>
    %58 = arith.truncf %57 : vector<16x128xf32> to vector<16x128xbf16>
    %59 = arith.truncf %53 : vector<16x16xf32> to vector<16x16xbf16>
    %cst_30 = arith.constant dense<0.000000e+00> : vector<16x128xf32>
    %60 = tpu.matmul %59, %58, %cst_30 {dimension_numbers = #tpu.dot_dimension_numbers<[1], [0], [0], [1], [0, 0, 1, 1], [], []>} : vector<16x16xbf16>, vector<16x128xbf16>, vector<16x128xf32> -> vector<16x128xf32>
    %61 = tpu.reciprocal %55 {approx = true} : vector<16x1xf32> -> vector<16x1xf32>
    %62 = vector.broadcast %61 : vector<16x1xf32> to vector<16x128xf32>
    %63 = arith.mulf %60, %62 : vector<16x128xf32>
    %64 = arith.addf %40, %63 : vector<16x128xf32>
    %c1 = arith.constant 1 : index
    %c0_31 = arith.constant 0 : index
    %c0_32 = arith.constant 0 : index
    %65 = vector.load %arg6[%c1, %c0_31, %c0_32] : memref<4x1x128xf32, #tpu.memory_space<vmem>>, vector<1x1x128xf32>
    %66 = vector.shape_cast %65 : vector<1x1x128xf32> to vector<1x128xf32>
    %67 = vector.broadcast %66 : vector<1x128xf32> to vector<16x128xf32>
    %68 = arith.mulf %37, %67 : vector<16x128xf32>
    %69 = arith.truncf %68 : vector<16x128xf32> to vector<16x128xbf16>
    %cst_33 = arith.constant dense<0.000000e+00> : vector<16x16xf32>
    %70 = tpu.matmul %69, %39, %cst_33 {dimension_numbers = #tpu.dot_dimension_numbers<[1], [1], [0], [0], [0, 0, 1, 0], [], []>} : vector<16x128xbf16>, vector<16x128xbf16>, vector<16x16xf32> -> vector<16x16xf32>
    %71 = vector.broadcast %11 : vector<1x16xf32> to vector<16x16xf32>
    %72 = arith.addf %70, %71 : vector<16x16xf32>
    %cst_34 = arith.constant dense<0xFF800000> : vector<16xf32>
    %73 = vector.multi_reduction <maximumf>, %72, %cst_34 [1] : vector<16x16xf32> to vector<16xf32>
    %74 = vector.shape_cast %73 : vector<16xf32> to vector<16x1xf32>
    %75 = vector.broadcast %74 : vector<16x1xf32> to vector<16x16xf32>
    %76 = arith.subf %72, %75 : vector<16x16xf32>
    %77 = math.exp %76 : vector<16x16xf32>
    %cst_35 = arith.constant dense<0.000000e+00> : vector<16xf32>
    %78 = vector.multi_reduction <add>, %77, %cst_35 [1] : vector<16x16xf32> to vector<16xf32>
    %79 = vector.shape_cast %78 : vector<16xf32> to vector<16x1xf32>
    %80 = vector.broadcast %66 : vector<1x128xf32> to vector<16x128xf32>
    %81 = arith.mulf %31, %80 : vector<16x128xf32>
    %82 = arith.truncf %81 : vector<16x128xf32> to vector<16x128xbf16>
    %83 = arith.truncf %77 : vector<16x16xf32> to vector<16x16xbf16>
    %cst_36 = arith.constant dense<0.000000e+00> : vector<16x128xf32>
    %84 = tpu.matmul %83, %82, %cst_36 {dimension_numbers = #tpu.dot_dimension_numbers<[1], [0], [0], [1], [0, 0, 1, 1], [], []>} : vector<16x16xbf16>, vector<16x128xbf16>, vector<16x128xf32> -> vector<16x128xf32>
    %85 = tpu.reciprocal %79 {approx = true} : vector<16x1xf32> -> vector<16x1xf32>
    %86 = vector.broadcast %85 : vector<16x1xf32> to vector<16x128xf32>
    %87 = arith.mulf %84, %86 : vector<16x128xf32>
    %88 = arith.addf %64, %87 : vector<16x128xf32>
    %c2 = arith.constant 2 : index
    %c0_37 = arith.constant 0 : index
    %c0_38 = arith.constant 0 : index
    %89 = vector.load %arg6[%c2, %c0_37, %c0_38] : memref<4x1x128xf32, #tpu.memory_space<vmem>>, vector<1x1x128xf32>
    %90 = vector.shape_cast %89 : vector<1x1x128xf32> to vector<1x128xf32>
    %91 = vector.broadcast %90 : vector<1x128xf32> to vector<16x128xf32>
    %92 = arith.mulf %37, %91 : vector<16x128xf32>
    %93 = arith.truncf %92 : vector<16x128xf32> to vector<16x128xbf16>
    %cst_39 = arith.constant dense<0.000000e+00> : vector<16x16xf32>
    %94 = tpu.matmul %93, %39, %cst_39 {dimension_numbers = #tpu.dot_dimension_numbers<[1], [1], [0], [0], [0, 0, 1, 0], [], []>} : vector<16x128xbf16>, vector<16x128xbf16>, vector<16x16xf32> -> vector<16x16xf32>
    %95 = vector.broadcast %11 : vector<1x16xf32> to vector<16x16xf32>
    %96 = arith.addf %94, %95 : vector<16x16xf32>
    %cst_40 = arith.constant dense<0xFF800000> : vector<16xf32>
    %97 = vector.multi_reduction <maximumf>, %96, %cst_40 [1] : vector<16x16xf32> to vector<16xf32>
    %98 = vector.shape_cast %97 : vector<16xf32> to vector<16x1xf32>
    %99 = vector.broadcast %98 : vector<16x1xf32> to vector<16x16xf32>
    %100 = arith.subf %96, %99 : vector<16x16xf32>
    %101 = math.exp %100 : vector<16x16xf32>
    %cst_41 = arith.constant dense<0.000000e+00> : vector<16xf32>
    %102 = vector.multi_reduction <add>, %101, %cst_41 [1] : vector<16x16xf32> to vector<16xf32>
    %103 = vector.shape_cast %102 : vector<16xf32> to vector<16x1xf32>
    %104 = vector.broadcast %90 : vector<1x128xf32> to vector<16x128xf32>
    %105 = arith.mulf %31, %104 : vector<16x128xf32>
    %106 = arith.truncf %105 : vector<16x128xf32> to vector<16x128xbf16>
    %107 = arith.truncf %101 : vector<16x16xf32> to vector<16x16xbf16>
    %cst_42 = arith.constant dense<0.000000e+00> : vector<16x128xf32>
    %108 = tpu.matmul %107, %106, %cst_42 {dimension_numbers = #tpu.dot_dimension_numbers<[1], [0], [0], [1], [0, 0, 1, 1], [], []>} : vector<16x16xbf16>, vector<16x128xbf16>, vector<16x128xf32> -> vector<16x128xf32>
    %109 = tpu.reciprocal %103 {approx = true} : vector<16x1xf32> -> vector<16x1xf32>
    %110 = vector.broadcast %109 : vector<16x1xf32> to vector<16x128xf32>
    %111 = arith.mulf %108, %110 : vector<16x128xf32>
    %112 = arith.addf %88, %111 : vector<16x128xf32>
    %c3 = arith.constant 3 : index
    %c0_43 = arith.constant 0 : index
    %c0_44 = arith.constant 0 : index
    %113 = vector.load %arg6[%c3, %c0_43, %c0_44] : memref<4x1x128xf32, #tpu.memory_space<vmem>>, vector<1x1x128xf32>
    %114 = vector.shape_cast %113 : vector<1x1x128xf32> to vector<1x128xf32>
    %115 = vector.broadcast %114 : vector<1x128xf32> to vector<16x128xf32>
    %116 = arith.mulf %37, %115 : vector<16x128xf32>
    %117 = arith.truncf %116 : vector<16x128xf32> to vector<16x128xbf16>
    %cst_45 = arith.constant dense<0.000000e+00> : vector<16x16xf32>
    %118 = tpu.matmul %117, %39, %cst_45 {dimension_numbers = #tpu.dot_dimension_numbers<[1], [1], [0], [0], [0, 0, 1, 0], [], []>} : vector<16x128xbf16>, vector<16x128xbf16>, vector<16x16xf32> -> vector<16x16xf32>
    %119 = vector.broadcast %11 : vector<1x16xf32> to vector<16x16xf32>
    %120 = arith.addf %118, %119 : vector<16x16xf32>
    %cst_46 = arith.constant dense<0xFF800000> : vector<16xf32>
    %121 = vector.multi_reduction <maximumf>, %120, %cst_46 [1] : vector<16x16xf32> to vector<16xf32>
    %122 = vector.shape_cast %121 : vector<16xf32> to vector<16x1xf32>
    %123 = vector.broadcast %122 : vector<16x1xf32> to vector<16x16xf32>
    %124 = arith.subf %120, %123 : vector<16x16xf32>
    %125 = math.exp %124 : vector<16x16xf32>
    %cst_47 = arith.constant dense<0.000000e+00> : vector<16xf32>
    %126 = vector.multi_reduction <add>, %125, %cst_47 [1] : vector<16x16xf32> to vector<16xf32>
    %127 = vector.shape_cast %126 : vector<16xf32> to vector<16x1xf32>
    %128 = vector.broadcast %114 : vector<1x128xf32> to vector<16x128xf32>
    %129 = arith.mulf %31, %128 : vector<16x128xf32>
    %130 = arith.truncf %129 : vector<16x128xf32> to vector<16x128xbf16>
    %131 = arith.truncf %125 : vector<16x16xf32> to vector<16x16xbf16>
    %cst_48 = arith.constant dense<0.000000e+00> : vector<16x128xf32>
    %132 = tpu.matmul %131, %130, %cst_48 {dimension_numbers = #tpu.dot_dimension_numbers<[1], [0], [0], [1], [0, 0, 1, 1], [], []>} : vector<16x16xbf16>, vector<16x128xbf16>, vector<16x128xf32> -> vector<16x128xf32>
    %133 = tpu.reciprocal %127 {approx = true} : vector<16x1xf32> -> vector<16x1xf32>
    %134 = vector.broadcast %133 : vector<16x1xf32> to vector<16x128xf32>
    %135 = arith.mulf %132, %134 : vector<16x128xf32>
    %136 = arith.addf %112, %135 : vector<16x128xf32>
    %137 = arith.truncf %136 : vector<16x128xf32> to vector<16x128xbf16>
    %c0_49 = arith.constant 0 : index
    %c0_50 = arith.constant 0 : index
    %c0_51 = arith.constant 0 : index
    %138 = vector.load %arg8[%c0_49, %c0_50, %c0_51] : memref<2x128x128xbf16, #tpu.memory_space<vmem>>, vector<1x128x128xbf16>
    %139 = vector.shape_cast %138 : vector<1x128x128xbf16> to vector<128x128xbf16>
    %cst_52 = arith.constant dense<0.000000e+00> : vector<16x128xf32>
    %140 = tpu.matmul %137, %139, %cst_52 {dimension_numbers = #tpu.dot_dimension_numbers<[1], [0], [0], [1], [0, 0, 1, 1], [], []>} : vector<16x128xbf16>, vector<128x128xbf16>, vector<16x128xf32> -> vector<16x128xf32>
    %141 = arith.addf %2, %140 : vector<16x128xf32>
    %c0_53 = arith.constant 0 : index
    %c0_54 = arith.constant 0 : index
    %c0_55 = arith.constant 0 : index
    %142 = vector.load %arg12[%c0_53, %c0_54, %c0_55] : memref<2x1x128xf32, #tpu.memory_space<vmem>>, vector<1x1x128xf32>
    %143 = vector.shape_cast %142 : vector<1x1x128xf32> to vector<1x128xf32>
    %144 = arith.mulf %141, %141 : vector<16x128xf32>
    %cst_56 = arith.constant dense<0.000000e+00> : vector<16xf32>
    %145 = vector.multi_reduction <add>, %144, %cst_56 [1] : vector<16x128xf32> to vector<16xf32>
    %146 = vector.shape_cast %145 : vector<16xf32> to vector<16x1xf32>
    %cst_57 = arith.constant 1.280000e+02 : f32
    %147 = vector.broadcast %cst_57 : f32 to vector<16x1xf32>
    %148 = arith.divf %146, %147 : vector<16x1xf32>
    %cst_58 = arith.constant 9.99999997E-7 : f32
    %149 = vector.broadcast %cst_58 : f32 to vector<16x1xf32>
    %150 = arith.addf %148, %149 : vector<16x1xf32>
    %151 = math.rsqrt %150 : vector<16x1xf32>
    %152 = vector.broadcast %151 : vector<16x1xf32> to vector<16x128xf32>
    %153 = arith.mulf %141, %152 : vector<16x128xf32>
    %154 = vector.broadcast %143 : vector<1x128xf32> to vector<16x128xf32>
    %155 = arith.mulf %153, %154 : vector<16x128xf32>
    %156 = arith.truncf %155 : vector<16x128xf32> to vector<16x128xbf16>
    %c0_59 = arith.constant 0 : index
    %c0_60 = arith.constant 0 : index
    %c0_61 = arith.constant 0 : index
    %157 = vector.load %arg9[%c0_59, %c0_60, %c0_61] : memref<2x128x512xbf16, #tpu.memory_space<vmem>>, vector<1x128x512xbf16>
    %158 = vector.shape_cast %157 : vector<1x128x512xbf16> to vector<128x512xbf16>
    %cst_62 = arith.constant dense<0.000000e+00> : vector<16x512xf32>
    %159 = tpu.matmul %156, %158, %cst_62 {dimension_numbers = #tpu.dot_dimension_numbers<[1], [0], [0], [1], [0, 0, 1, 1], [], []>} : vector<16x128xbf16>, vector<128x512xbf16>, vector<16x512xf32> -> vector<16x512xf32>
    %160 = vector.extract_strided_slice %159 {offsets = [0, 0], sizes = [16, 256], strides = [1, 1]} : vector<16x512xf32> to vector<16x256xf32>
    %161 = vector.extract_strided_slice %159 {offsets = [0, 256], sizes = [16, 256], strides = [1, 1]} : vector<16x512xf32> to vector<16x256xf32>
    %162 = arith.negf %160 : vector<16x256xf32>
    %163 = math.exp %162 : vector<16x256xf32>
    %cst_63 = arith.constant 1.000000e+00 : f32
    %164 = vector.broadcast %cst_63 : f32 to vector<16x256xf32>
    %165 = arith.addf %164, %163 : vector<16x256xf32>
    %166 = arith.divf %164, %165 : vector<16x256xf32>
    %167 = arith.mulf %160, %166 : vector<16x256xf32>
    %168 = arith.mulf %167, %161 : vector<16x256xf32>
    %169 = arith.truncf %168 : vector<16x256xf32> to vector<16x256xbf16>
    %c0_64 = arith.constant 0 : index
    %c0_65 = arith.constant 0 : index
    %c0_66 = arith.constant 0 : index
    %170 = vector.load %arg10[%c0_64, %c0_65, %c0_66] : memref<2x256x128xbf16, #tpu.memory_space<vmem>>, vector<1x256x128xbf16>
    %171 = vector.shape_cast %170 : vector<1x256x128xbf16> to vector<256x128xbf16>
    %cst_67 = arith.constant dense<0.000000e+00> : vector<16x128xf32>
    %172 = tpu.matmul %169, %171, %cst_67 {dimension_numbers = #tpu.dot_dimension_numbers<[1], [0], [0], [1], [0, 0, 1, 1], [], []>} : vector<16x256xbf16>, vector<256x128xbf16>, vector<16x128xf32> -> vector<16x128xf32>
    %173 = arith.addf %141, %172 : vector<16x128xf32>
    %c1_68 = arith.constant 1 : index
    %c0_69 = arith.constant 0 : index
    %c0_70 = arith.constant 0 : index
    %174 = vector.load %arg11[%c1_68, %c0_69, %c0_70] : memref<2x1x128xf32, #tpu.memory_space<vmem>>, vector<1x1x128xf32>
    %175 = vector.shape_cast %174 : vector<1x1x128xf32> to vector<1x128xf32>
    %176 = arith.mulf %173, %173 : vector<16x128xf32>
    %cst_71 = arith.constant dense<0.000000e+00> : vector<16xf32>
    %177 = vector.multi_reduction <add>, %176, %cst_71 [1] : vector<16x128xf32> to vector<16xf32>
    %178 = vector.shape_cast %177 : vector<16xf32> to vector<16x1xf32>
    %cst_72 = arith.constant 1.280000e+02 : f32
    %179 = vector.broadcast %cst_72 : f32 to vector<16x1xf32>
    %180 = arith.divf %178, %179 : vector<16x1xf32>
    %cst_73 = arith.constant 9.99999997E-7 : f32
    %181 = vector.broadcast %cst_73 : f32 to vector<16x1xf32>
    %182 = arith.addf %180, %181 : vector<16x1xf32>
    %183 = math.rsqrt %182 : vector<16x1xf32>
    %184 = vector.broadcast %183 : vector<16x1xf32> to vector<16x128xf32>
    %185 = arith.mulf %173, %184 : vector<16x128xf32>
    %186 = vector.broadcast %175 : vector<1x128xf32> to vector<16x128xf32>
    %187 = arith.mulf %185, %186 : vector<16x128xf32>
    %188 = arith.truncf %187 : vector<16x128xf32> to vector<16x128xbf16>
    %c1_74 = arith.constant 1 : index
    %c0_75 = arith.constant 0 : index
    %c0_76 = arith.constant 0 : index
    %189 = vector.load %arg7[%c1_74, %c0_75, %c0_76] : memref<2x128x384xbf16, #tpu.memory_space<vmem>>, vector<1x128x384xbf16>
    %190 = vector.shape_cast %189 : vector<1x128x384xbf16> to vector<128x384xbf16>
    %cst_77 = arith.constant dense<0.000000e+00> : vector<16x384xf32>
    %191 = tpu.matmul %188, %190, %cst_77 {dimension_numbers = #tpu.dot_dimension_numbers<[1], [0], [0], [1], [0, 0, 1, 1], [], []>} : vector<16x128xbf16>, vector<128x384xbf16>, vector<16x384xf32> -> vector<16x384xf32>
    %192 = vector.extract_strided_slice %191 {offsets = [0, 0], sizes = [16, 256], strides = [1, 1]} : vector<16x384xf32> to vector<16x256xf32>
    %193 = vector.extract_strided_slice %191 {offsets = [0, 256], sizes = [16, 128], strides = [1, 1]} : vector<16x384xf32> to vector<16x128xf32>
    %194 = arith.mulf %192, %5 : vector<16x256xf32>
    %195 = arith.truncf %192 : vector<16x256xf32> to vector<16x256xbf16>
    %cst_78 = arith.constant dense<0.000000e+00> : vector<16x256xf32>
    %196 = tpu.matmul %195, %7, %cst_78 {dimension_numbers = #tpu.dot_dimension_numbers<[1], [0], [0], [1], [0, 0, 1, 1], [], []>} : vector<16x256xbf16>, vector<256x256xbf16>, vector<16x256xf32> -> vector<16x256xf32>
    %197 = arith.mulf %196, %6 : vector<16x256xf32>
    %198 = arith.addf %194, %197 : vector<16x256xf32>
    %199 = vector.extract_strided_slice %198 {offsets = [0, 0], sizes = [16, 128], strides = [1, 1]} : vector<16x256xf32> to vector<16x128xf32>
    %200 = vector.extract_strided_slice %198 {offsets = [0, 128], sizes = [16, 128], strides = [1, 1]} : vector<16x256xf32> to vector<16x128xf32>
    %201 = arith.truncf %200 : vector<16x128xf32> to vector<16x128xbf16>
    %cst_79 = arith.constant 0.000000e+00 : f32
    %202 = vector.broadcast %cst_79 : f32 to vector<16x128xf32>
    %c0_80 = arith.constant 0 : index
    %c0_81 = arith.constant 0 : index
    %c0_82 = arith.constant 0 : index
    %203 = vector.load %arg6[%c0_80, %c0_81, %c0_82] : memref<4x1x128xf32, #tpu.memory_space<vmem>>, vector<1x1x128xf32>
    %204 = vector.shape_cast %203 : vector<1x1x128xf32> to vector<1x128xf32>
    %205 = vector.broadcast %204 : vector<1x128xf32> to vector<16x128xf32>
    %206 = arith.mulf %199, %205 : vector<16x128xf32>
    %207 = arith.truncf %206 : vector<16x128xf32> to vector<16x128xbf16>
    %cst_83 = arith.constant dense<0.000000e+00> : vector<16x16xf32>
    %208 = tpu.matmul %207, %201, %cst_83 {dimension_numbers = #tpu.dot_dimension_numbers<[1], [1], [0], [0], [0, 0, 1, 0], [], []>} : vector<16x128xbf16>, vector<16x128xbf16>, vector<16x16xf32> -> vector<16x16xf32>
    %209 = vector.broadcast %11 : vector<1x16xf32> to vector<16x16xf32>
    %210 = arith.addf %208, %209 : vector<16x16xf32>
    %cst_84 = arith.constant dense<0xFF800000> : vector<16xf32>
    %211 = vector.multi_reduction <maximumf>, %210, %cst_84 [1] : vector<16x16xf32> to vector<16xf32>
    %212 = vector.shape_cast %211 : vector<16xf32> to vector<16x1xf32>
    %213 = vector.broadcast %212 : vector<16x1xf32> to vector<16x16xf32>
    %214 = arith.subf %210, %213 : vector<16x16xf32>
    %215 = math.exp %214 : vector<16x16xf32>
    %cst_85 = arith.constant dense<0.000000e+00> : vector<16xf32>
    %216 = vector.multi_reduction <add>, %215, %cst_85 [1] : vector<16x16xf32> to vector<16xf32>
    %217 = vector.shape_cast %216 : vector<16xf32> to vector<16x1xf32>
    %218 = vector.broadcast %204 : vector<1x128xf32> to vector<16x128xf32>
    %219 = arith.mulf %193, %218 : vector<16x128xf32>
    %220 = arith.truncf %219 : vector<16x128xf32> to vector<16x128xbf16>
    %221 = arith.truncf %215 : vector<16x16xf32> to vector<16x16xbf16>
    %cst_86 = arith.constant dense<0.000000e+00> : vector<16x128xf32>
    %222 = tpu.matmul %221, %220, %cst_86 {dimension_numbers = #tpu.dot_dimension_numbers<[1], [0], [0], [1], [0, 0, 1, 1], [], []>} : vector<16x16xbf16>, vector<16x128xbf16>, vector<16x128xf32> -> vector<16x128xf32>
    %223 = tpu.reciprocal %217 {approx = true} : vector<16x1xf32> -> vector<16x1xf32>
    %224 = vector.broadcast %223 : vector<16x1xf32> to vector<16x128xf32>
    %225 = arith.mulf %222, %224 : vector<16x128xf32>
    %226 = arith.addf %202, %225 : vector<16x128xf32>
    %c1_87 = arith.constant 1 : index
    %c0_88 = arith.constant 0 : index
    %c0_89 = arith.constant 0 : index
    %227 = vector.load %arg6[%c1_87, %c0_88, %c0_89] : memref<4x1x128xf32, #tpu.memory_space<vmem>>, vector<1x1x128xf32>
    %228 = vector.shape_cast %227 : vector<1x1x128xf32> to vector<1x128xf32>
    %229 = vector.broadcast %228 : vector<1x128xf32> to vector<16x128xf32>
    %230 = arith.mulf %199, %229 : vector<16x128xf32>
    %231 = arith.truncf %230 : vector<16x128xf32> to vector<16x128xbf16>
    %cst_90 = arith.constant dense<0.000000e+00> : vector<16x16xf32>
    %232 = tpu.matmul %231, %201, %cst_90 {dimension_numbers = #tpu.dot_dimension_numbers<[1], [1], [0], [0], [0, 0, 1, 0], [], []>} : vector<16x128xbf16>, vector<16x128xbf16>, vector<16x16xf32> -> vector<16x16xf32>
    %233 = vector.broadcast %11 : vector<1x16xf32> to vector<16x16xf32>
    %234 = arith.addf %232, %233 : vector<16x16xf32>
    %cst_91 = arith.constant dense<0xFF800000> : vector<16xf32>
    %235 = vector.multi_reduction <maximumf>, %234, %cst_91 [1] : vector<16x16xf32> to vector<16xf32>
    %236 = vector.shape_cast %235 : vector<16xf32> to vector<16x1xf32>
    %237 = vector.broadcast %236 : vector<16x1xf32> to vector<16x16xf32>
    %238 = arith.subf %234, %237 : vector<16x16xf32>
    %239 = math.exp %238 : vector<16x16xf32>
    %cst_92 = arith.constant dense<0.000000e+00> : vector<16xf32>
    %240 = vector.multi_reduction <add>, %239, %cst_92 [1] : vector<16x16xf32> to vector<16xf32>
    %241 = vector.shape_cast %240 : vector<16xf32> to vector<16x1xf32>
    %242 = vector.broadcast %228 : vector<1x128xf32> to vector<16x128xf32>
    %243 = arith.mulf %193, %242 : vector<16x128xf32>
    %244 = arith.truncf %243 : vector<16x128xf32> to vector<16x128xbf16>
    %245 = arith.truncf %239 : vector<16x16xf32> to vector<16x16xbf16>
    %cst_93 = arith.constant dense<0.000000e+00> : vector<16x128xf32>
    %246 = tpu.matmul %245, %244, %cst_93 {dimension_numbers = #tpu.dot_dimension_numbers<[1], [0], [0], [1], [0, 0, 1, 1], [], []>} : vector<16x16xbf16>, vector<16x128xbf16>, vector<16x128xf32> -> vector<16x128xf32>
    %247 = tpu.reciprocal %241 {approx = true} : vector<16x1xf32> -> vector<16x1xf32>
    %248 = vector.broadcast %247 : vector<16x1xf32> to vector<16x128xf32>
    %249 = arith.mulf %246, %248 : vector<16x128xf32>
    %250 = arith.addf %226, %249 : vector<16x128xf32>
    %c2_94 = arith.constant 2 : index
    %c0_95 = arith.constant 0 : index
    %c0_96 = arith.constant 0 : index
    %251 = vector.load %arg6[%c2_94, %c0_95, %c0_96] : memref<4x1x128xf32, #tpu.memory_space<vmem>>, vector<1x1x128xf32>
    %252 = vector.shape_cast %251 : vector<1x1x128xf32> to vector<1x128xf32>
    %253 = vector.broadcast %252 : vector<1x128xf32> to vector<16x128xf32>
    %254 = arith.mulf %199, %253 : vector<16x128xf32>
    %255 = arith.truncf %254 : vector<16x128xf32> to vector<16x128xbf16>
    %cst_97 = arith.constant dense<0.000000e+00> : vector<16x16xf32>
    %256 = tpu.matmul %255, %201, %cst_97 {dimension_numbers = #tpu.dot_dimension_numbers<[1], [1], [0], [0], [0, 0, 1, 0], [], []>} : vector<16x128xbf16>, vector<16x128xbf16>, vector<16x16xf32> -> vector<16x16xf32>
    %257 = vector.broadcast %11 : vector<1x16xf32> to vector<16x16xf32>
    %258 = arith.addf %256, %257 : vector<16x16xf32>
    %cst_98 = arith.constant dense<0xFF800000> : vector<16xf32>
    %259 = vector.multi_reduction <maximumf>, %258, %cst_98 [1] : vector<16x16xf32> to vector<16xf32>
    %260 = vector.shape_cast %259 : vector<16xf32> to vector<16x1xf32>
    %261 = vector.broadcast %260 : vector<16x1xf32> to vector<16x16xf32>
    %262 = arith.subf %258, %261 : vector<16x16xf32>
    %263 = math.exp %262 : vector<16x16xf32>
    %cst_99 = arith.constant dense<0.000000e+00> : vector<16xf32>
    %264 = vector.multi_reduction <add>, %263, %cst_99 [1] : vector<16x16xf32> to vector<16xf32>
    %265 = vector.shape_cast %264 : vector<16xf32> to vector<16x1xf32>
    %266 = vector.broadcast %252 : vector<1x128xf32> to vector<16x128xf32>
    %267 = arith.mulf %193, %266 : vector<16x128xf32>
    %268 = arith.truncf %267 : vector<16x128xf32> to vector<16x128xbf16>
    %269 = arith.truncf %263 : vector<16x16xf32> to vector<16x16xbf16>
    %cst_100 = arith.constant dense<0.000000e+00> : vector<16x128xf32>
    %270 = tpu.matmul %269, %268, %cst_100 {dimension_numbers = #tpu.dot_dimension_numbers<[1], [0], [0], [1], [0, 0, 1, 1], [], []>} : vector<16x16xbf16>, vector<16x128xbf16>, vector<16x128xf32> -> vector<16x128xf32>
    %271 = tpu.reciprocal %265 {approx = true} : vector<16x1xf32> -> vector<16x1xf32>
    %272 = vector.broadcast %271 : vector<16x1xf32> to vector<16x128xf32>
    %273 = arith.mulf %270, %272 : vector<16x128xf32>
    %274 = arith.addf %250, %273 : vector<16x128xf32>
    %c3_101 = arith.constant 3 : index
    %c0_102 = arith.constant 0 : index
    %c0_103 = arith.constant 0 : index
    %275 = vector.load %arg6[%c3_101, %c0_102, %c0_103] : memref<4x1x128xf32, #tpu.memory_space<vmem>>, vector<1x1x128xf32>
    %276 = vector.shape_cast %275 : vector<1x1x128xf32> to vector<1x128xf32>
    %277 = vector.broadcast %276 : vector<1x128xf32> to vector<16x128xf32>
    %278 = arith.mulf %199, %277 : vector<16x128xf32>
    %279 = arith.truncf %278 : vector<16x128xf32> to vector<16x128xbf16>
    %cst_104 = arith.constant dense<0.000000e+00> : vector<16x16xf32>
    %280 = tpu.matmul %279, %201, %cst_104 {dimension_numbers = #tpu.dot_dimension_numbers<[1], [1], [0], [0], [0, 0, 1, 0], [], []>} : vector<16x128xbf16>, vector<16x128xbf16>, vector<16x16xf32> -> vector<16x16xf32>
    %281 = vector.broadcast %11 : vector<1x16xf32> to vector<16x16xf32>
    %282 = arith.addf %280, %281 : vector<16x16xf32>
    %cst_105 = arith.constant dense<0xFF800000> : vector<16xf32>
    %283 = vector.multi_reduction <maximumf>, %282, %cst_105 [1] : vector<16x16xf32> to vector<16xf32>
    %284 = vector.shape_cast %283 : vector<16xf32> to vector<16x1xf32>
    %285 = vector.broadcast %284 : vector<16x1xf32> to vector<16x16xf32>
    %286 = arith.subf %282, %285 : vector<16x16xf32>
    %287 = math.exp %286 : vector<16x16xf32>
    %cst_106 = arith.constant dense<0.000000e+00> : vector<16xf32>
    %288 = vector.multi_reduction <add>, %287, %cst_106 [1] : vector<16x16xf32> to vector<16xf32>
    %289 = vector.shape_cast %288 : vector<16xf32> to vector<16x1xf32>
    %290 = vector.broadcast %276 : vector<1x128xf32> to vector<16x128xf32>
    %291 = arith.mulf %193, %290 : vector<16x128xf32>
    %292 = arith.truncf %291 : vector<16x128xf32> to vector<16x128xbf16>
    %293 = arith.truncf %287 : vector<16x16xf32> to vector<16x16xbf16>
    %cst_107 = arith.constant dense<0.000000e+00> : vector<16x128xf32>
    %294 = tpu.matmul %293, %292, %cst_107 {dimension_numbers = #tpu.dot_dimension_numbers<[1], [0], [0], [1], [0, 0, 1, 1], [], []>} : vector<16x16xbf16>, vector<16x128xbf16>, vector<16x128xf32> -> vector<16x128xf32>
    %295 = tpu.reciprocal %289 {approx = true} : vector<16x1xf32> -> vector<16x1xf32>
    %296 = vector.broadcast %295 : vector<16x1xf32> to vector<16x128xf32>
    %297 = arith.mulf %294, %296 : vector<16x128xf32>
    %298 = arith.addf %274, %297 : vector<16x128xf32>
    %299 = arith.truncf %298 : vector<16x128xf32> to vector<16x128xbf16>
    %c1_108 = arith.constant 1 : index
    %c0_109 = arith.constant 0 : index
    %c0_110 = arith.constant 0 : index
    %300 = vector.load %arg8[%c1_108, %c0_109, %c0_110] : memref<2x128x128xbf16, #tpu.memory_space<vmem>>, vector<1x128x128xbf16>
    %301 = vector.shape_cast %300 : vector<1x128x128xbf16> to vector<128x128xbf16>
    %cst_111 = arith.constant dense<0.000000e+00> : vector<16x128xf32>
    %302 = tpu.matmul %299, %301, %cst_111 {dimension_numbers = #tpu.dot_dimension_numbers<[1], [0], [0], [1], [0, 0, 1, 1], [], []>} : vector<16x128xbf16>, vector<128x128xbf16>, vector<16x128xf32> -> vector<16x128xf32>
    %303 = arith.addf %173, %302 : vector<16x128xf32>
    %c1_112 = arith.constant 1 : index
    %c0_113 = arith.constant 0 : index
    %c0_114 = arith.constant 0 : index
    %304 = vector.load %arg12[%c1_112, %c0_113, %c0_114] : memref<2x1x128xf32, #tpu.memory_space<vmem>>, vector<1x1x128xf32>
    %305 = vector.shape_cast %304 : vector<1x1x128xf32> to vector<1x128xf32>
    %306 = arith.mulf %303, %303 : vector<16x128xf32>
    %cst_115 = arith.constant dense<0.000000e+00> : vector<16xf32>
    %307 = vector.multi_reduction <add>, %306, %cst_115 [1] : vector<16x128xf32> to vector<16xf32>
    %308 = vector.shape_cast %307 : vector<16xf32> to vector<16x1xf32>
    %cst_116 = arith.constant 1.280000e+02 : f32
    %309 = vector.broadcast %cst_116 : f32 to vector<16x1xf32>
    %310 = arith.divf %308, %309 : vector<16x1xf32>
    %cst_117 = arith.constant 9.99999997E-7 : f32
    %311 = vector.broadcast %cst_117 : f32 to vector<16x1xf32>
    %312 = arith.addf %310, %311 : vector<16x1xf32>
    %313 = math.rsqrt %312 : vector<16x1xf32>
    %314 = vector.broadcast %313 : vector<16x1xf32> to vector<16x128xf32>
    %315 = arith.mulf %303, %314 : vector<16x128xf32>
    %316 = vector.broadcast %305 : vector<1x128xf32> to vector<16x128xf32>
    %317 = arith.mulf %315, %316 : vector<16x128xf32>
    %318 = arith.truncf %317 : vector<16x128xf32> to vector<16x128xbf16>
    %c1_118 = arith.constant 1 : index
    %c0_119 = arith.constant 0 : index
    %c0_120 = arith.constant 0 : index
    %319 = vector.load %arg9[%c1_118, %c0_119, %c0_120] : memref<2x128x512xbf16, #tpu.memory_space<vmem>>, vector<1x128x512xbf16>
    %320 = vector.shape_cast %319 : vector<1x128x512xbf16> to vector<128x512xbf16>
    %cst_121 = arith.constant dense<0.000000e+00> : vector<16x512xf32>
    %321 = tpu.matmul %318, %320, %cst_121 {dimension_numbers = #tpu.dot_dimension_numbers<[1], [0], [0], [1], [0, 0, 1, 1], [], []>} : vector<16x128xbf16>, vector<128x512xbf16>, vector<16x512xf32> -> vector<16x512xf32>
    %322 = vector.extract_strided_slice %321 {offsets = [0, 0], sizes = [16, 256], strides = [1, 1]} : vector<16x512xf32> to vector<16x256xf32>
    %323 = vector.extract_strided_slice %321 {offsets = [0, 256], sizes = [16, 256], strides = [1, 1]} : vector<16x512xf32> to vector<16x256xf32>
    %324 = arith.negf %322 : vector<16x256xf32>
    %325 = math.exp %324 : vector<16x256xf32>
    %cst_122 = arith.constant 1.000000e+00 : f32
    %326 = vector.broadcast %cst_122 : f32 to vector<16x256xf32>
    %327 = arith.addf %326, %325 : vector<16x256xf32>
    %328 = arith.divf %326, %327 : vector<16x256xf32>
    %329 = arith.mulf %322, %328 : vector<16x256xf32>
    %330 = arith.mulf %329, %323 : vector<16x256xf32>
    %331 = arith.truncf %330 : vector<16x256xf32> to vector<16x256xbf16>
    %c1_123 = arith.constant 1 : index
    %c0_124 = arith.constant 0 : index
    %c0_125 = arith.constant 0 : index
    %332 = vector.load %arg10[%c1_123, %c0_124, %c0_125] : memref<2x256x128xbf16, #tpu.memory_space<vmem>>, vector<1x256x128xbf16>
    %333 = vector.shape_cast %332 : vector<1x256x128xbf16> to vector<256x128xbf16>
    %cst_126 = arith.constant dense<0.000000e+00> : vector<16x128xf32>
    %334 = tpu.matmul %331, %333, %cst_126 {dimension_numbers = #tpu.dot_dimension_numbers<[1], [0], [0], [1], [0, 0, 1, 1], [], []>} : vector<16x256xbf16>, vector<256x128xbf16>, vector<16x128xf32> -> vector<16x128xf32>
    %335 = arith.addf %303, %334 : vector<16x128xf32>
    %c0_127 = arith.constant 0 : index
    %c0_128 = arith.constant 0 : index
    %336 = vector.load %arg13[%c0_127, %c0_128] : memref<1x128xf32, #tpu.memory_space<vmem>>, vector<1x128xf32>
    %337 = arith.mulf %335, %335 : vector<16x128xf32>
    %cst_129 = arith.constant dense<0.000000e+00> : vector<16xf32>
    %338 = vector.multi_reduction <add>, %337, %cst_129 [1] : vector<16x128xf32> to vector<16xf32>
    %339 = vector.shape_cast %338 : vector<16xf32> to vector<16x1xf32>
    %cst_130 = arith.constant 1.280000e+02 : f32
    %340 = vector.broadcast %cst_130 : f32 to vector<16x1xf32>
    %341 = arith.divf %339, %340 : vector<16x1xf32>
    %cst_131 = arith.constant 9.99999997E-7 : f32
    %342 = vector.broadcast %cst_131 : f32 to vector<16x1xf32>
    %343 = arith.addf %341, %342 : vector<16x1xf32>
    %344 = math.rsqrt %343 : vector<16x1xf32>
    %345 = vector.broadcast %344 : vector<16x1xf32> to vector<16x128xf32>
    %346 = arith.mulf %335, %345 : vector<16x128xf32>
    %347 = vector.broadcast %336 : vector<1x128xf32> to vector<16x128xf32>
    %348 = arith.mulf %346, %347 : vector<16x128xf32>
    %cst_132 = arith.constant dense<0.000000e+00> : vector<1x128xf32>
    %349 = tpu.matmul %4, %348, %cst_132 {dimension_numbers = #tpu.dot_dimension_numbers<[1], [0], [0], [1], [0, 0, 1, 1], [], []>} : vector<1x16xf32>, vector<16x128xf32>, vector<1x128xf32> -> vector<1x128xf32>
    %cst_133 = arith.constant dense<0.000000e+00> : vector<1xf32>
    %350 = vector.multi_reduction <add>, %4, %cst_133 [1] : vector<1x16xf32> to vector<1xf32>
    %351 = vector.shape_cast %350 : vector<1xf32> to vector<1x1xf32>
    %cst_134 = arith.constant 1.000000e+00 : f32
    %352 = vector.broadcast %cst_134 : f32 to vector<1x1xf32>
    %353 = arith.maximumf %351, %352 : vector<1x1xf32>
    %354 = tpu.reciprocal %353 {approx = true} : vector<1x1xf32> -> vector<1x1xf32>
    %355 = vector.broadcast %354 : vector<1x1xf32> to vector<1x128xf32>
    %356 = arith.mulf %349, %355 : vector<1x128xf32>
    %c0_135 = arith.constant 0 : index
    %c0_136 = arith.constant 0 : index
    %c0_137 = arith.constant 0 : index
    %357 = vector.load %arg14[%c0_135, %c0_136, %c0_137] : memref<1x1x128xf32, #tpu.memory_space<vmem>>, vector<1x1x128xf32>
    %358 = vector.shape_cast %357 : vector<1x1x128xf32> to vector<1x128xf32>
    %359 = vector.shape_cast %356 : vector<1x128xf32> to vector<1x1x128xf32>
    tpu.vector_store %arg14[%c0_135, %c0_136, %c0_137], %359 {strides = array<i32>} : memref<1x1x128xf32, #tpu.memory_space<vmem>>, vector<1x1x128xf32>,
    return
  }
  func.func @transform_0(%arg0: i32) -> (i32, i32, i32) {
    %c0_i32 = arith.constant 0 : i32
    %c0_i32_0 = arith.constant 0 : i32
    %c0_i32_1 = arith.constant 0 : i32
    return %arg0, %c0_i32, %c0_i32_0 : i32, i32, i32
  }
  func.func @transform_1(%arg0: i32) -> (i32, i32, i32) {
    %c0_i32 = arith.constant 0 : i32
    %c0_i32_0 = arith.constant 0 : i32
    %c0_i32_1 = arith.constant 0 : i32
    return %arg0, %c0_i32, %c0_i32_0 : i32, i32, i32
  }
  func.func @transform_2(%arg0: i32) -> (i32, i32) {
    %c0_i32 = arith.constant 0 : i32
    %c0_i32_0 = arith.constant 0 : i32
    %c0_i32_1 = arith.constant 0 : i32
    return %c0_i32, %c0_i32_0 : i32, i32
  }
  func.func @transform_3(%arg0: i32) -> (i32, i32) {
    %c0_i32 = arith.constant 0 : i32
    %c0_i32_0 = arith.constant 0 : i32
    %c0_i32_1 = arith.constant 0 : i32
    return %c0_i32, %c0_i32_0 : i32, i32
  }
  func.func @transform_4(%arg0: i32) -> (i32, i32) {
    %c0_i32 = arith.constant 0 : i32
    %c0_i32_0 = arith.constant 0 : i32
    %c0_i32_1 = arith.constant 0 : i32
    return %c0_i32, %c0_i32_0 : i32, i32
  }
  func.func @transform_5(%arg0: i32) -> (i32, i32, i32) {
    %c0_i32 = arith.constant 0 : i32
    %c0_i32_0 = arith.constant 0 : i32
    %c0_i32_1 = arith.constant 0 : i32
    %c0_i32_2 = arith.constant 0 : i32
    return %c0_i32, %c0_i32_0, %c0_i32_1 : i32, i32, i32
  }
  func.func @transform_6(%arg0: i32) -> (i32, i32, i32) {
    %c0_i32 = arith.constant 0 : i32
    %c0_i32_0 = arith.constant 0 : i32
    %c0_i32_1 = arith.constant 0 : i32
    %c0_i32_2 = arith.constant 0 : i32
    return %c0_i32, %c0_i32_0, %c0_i32_1 : i32, i32, i32
  }
  func.func @transform_7(%arg0: i32) -> (i32, i32, i32) {
    %c0_i32 = arith.constant 0 : i32
    %c0_i32_0 = arith.constant 0 : i32
    %c0_i32_1 = arith.constant 0 : i32
    %c0_i32_2 = arith.constant 0 : i32
    return %c0_i32, %c0_i32_0, %c0_i32_1 : i32, i32, i32
  }
  func.func @transform_8(%arg0: i32) -> (i32, i32, i32) {
    %c0_i32 = arith.constant 0 : i32
    %c0_i32_0 = arith.constant 0 : i32
    %c0_i32_1 = arith.constant 0 : i32
    %c0_i32_2 = arith.constant 0 : i32
    return %c0_i32, %c0_i32_0, %c0_i32_1 : i32, i32, i32
  }
  func.func @transform_9(%arg0: i32) -> (i32, i32, i32) {
    %c0_i32 = arith.constant 0 : i32
    %c0_i32_0 = arith.constant 0 : i32
    %c0_i32_1 = arith.constant 0 : i32
    %c0_i32_2 = arith.constant 0 : i32
    return %c0_i32, %c0_i32_0, %c0_i32_1 : i32, i32, i32
  }
  func.func @transform_10(%arg0: i32) -> (i32, i32, i32) {
    %c0_i32 = arith.constant 0 : i32
    %c0_i32_0 = arith.constant 0 : i32
    %c0_i32_1 = arith.constant 0 : i32
    %c0_i32_2 = arith.constant 0 : i32
    return %c0_i32, %c0_i32_0, %c0_i32_1 : i32, i32, i32
  }
  func.func @transform_11(%arg0: i32) -> (i32, i32, i32) {
    %c0_i32 = arith.constant 0 : i32
    %c0_i32_0 = arith.constant 0 : i32
    %c0_i32_1 = arith.constant 0 : i32
    %c0_i32_2 = arith.constant 0 : i32
    return %c0_i32, %c0_i32_0, %c0_i32_1 : i32, i32, i32
  }
  func.func @transform_12(%arg0: i32) -> (i32, i32) {
    %c0_i32 = arith.constant 0 : i32
    %c0_i32_0 = arith.constant 0 : i32
    %c0_i32_1 = arith.constant 0 : i32
    return %c0_i32, %c0_i32_0 : i32, i32
  }
  func.func @transform_13(%arg0: i32) -> (i32, i32, i32) {
    %c0_i32 = arith.constant 0 : i32
    %c0_i32_0 = arith.constant 0 : i32
    %c0_i32_1 = arith.constant 0 : i32
    return %arg0, %c0_i32, %c0_i32_0 : i32, i32, i32
  }
}

</mosaic_0001>

<bundles_post_ra>
// kernel: encode.1
= control target key start
LH: loop header
LB: loop body
LE: loop exit
PB: predicated region body
PF: predicated region fallthrough
CT: control target
= control target key end

     0   :  { %s5466_s0 = inlined_call_operand.vmem [shape: bf16[2,16,128], index: 0, kind: input, shape index: {}]   ;;  %s5467_s1 = inlined_call_operand.vmem [shape: f32[2,1,16], index: 1, kind: input, shape index: {}]   ;;  %s5468_s2 = inlined_call_operand.vmem [shape: f32[16,256], index: 2, kind: input, shape index: {}]   ;;  %s5469_s3 = inlined_call_operand.vmem [shape: f32[16,256], index: 3, kind: input, shape index: {}]   ;;  %s5470_s4 = inlined_call_operand.hbm [shape: bf16[256,256], index: 4, kind: input, shape index: {}]   ;;  %s5471_s5 = inlined_call_operand.vmem [shape: f32[4,1,128], index: 5, kind: input, shape index: {}]   ;;  %s5472_s6 = inlined_call_operand.hbm [shape: bf16[2,128,384], index: 6, kind: input, shape index: {}]   ;;  %s5473_s7 = inlined_call_operand.vmem [shape: bf16[2,128,128], index: 7, kind: input, shape index: {}]   ;;  %s5474_s8 = inlined_call_operand.hbm [shape: bf16[2,128,512], index: 8, kind: input, shape index: {}]   ;;  %s5475_s9 = inlined_call_operand.hbm [shape: bf16[2,256,128], index: 9, kind: input, shape index: {}]   ;;  %s5476_s10 = inlined_call_operand.vmem [shape: f32[2,1,128], index: 10, kind: input, shape index: {}]   ;;  %s5477_s11 = inlined_call_operand.vmem [shape: f32[2,1,128], index: 11, kind: input, shape index: {}]   ;;  %s5478_s12 = inlined_call_operand.vmem [shape: f32[1,128], index: 12, kind: input, shape index: {}]   ;;  %s5479_s13 = inlined_call_operand.hbm [shape: f32[2,1,128], index: 13, kind: output, shape index: {}]  }
   0x1   :  { %5492 = sst [smem:[#allocation25_spill]] %s5470_s4 }
   0x2   :  { %5493 = sst [smem:[#allocation26_spill]] %s5472_s6 }
   0x3   :  { %5494 = sst [smem:[#allocation27_spill]] %s5479_s13 }
   0x4   :  { %18 = vsyncpa [#allocation3], 0 }
   0x5   :  { %19 = vsyncpa [#allocation6], 0 }
   0x6   :  { %20 = vsyncpa [#allocation9], 0 }
   0x7   :  { %21 = vsyncpa [#allocation4], 0 }
   0x8   :  { %23 = vsyncpa [#allocation4 + $0x1], 0  ;;  %s4824_s25 = smov 0   ;;  %s4826_s26 = smov 0  }
   0x9   :  { %s4828_s27 = smov 0   ;;  %s4830_s28 = smov 0  }
   0xa LB: > { %5495 = sst [smem:[#allocation15_spill]] %s4727_s25  ;;  %s4845_s29 = sadd.s32 4294967295, %s4739_s28   ;;  %s4739_s28 = sphi %s4830_s28, %s5531_s28   ;;  %s4735_s27 = sphi %s4828_s27, %s5533_s27   ;;  %s4731_s26 = sphi %s4826_s26, %s5535_s26   ;;  %s4727_s25 = sphi %s4824_s25, %s5534_s25  }
   0xb   : > { %5496 = sst [smem:[#allocation16_spill]] %s4735_s27  ;;  %s3294_s30 = sadd.s32 4294967294, %s4739_s28  }
   0xc   : > { %5497 = sst [smem:[#allocation17_spill]] %s4739_s28  ;;  %s4849_s14 = sadd.s32 1, %s4739_s28  }
   0xd   : > { %5498 = sst [smem:[#allocation18_spill]] %s4849_s14  ;;  %s319_s15 = sadd.s32 1, %s4735_s27 }
   0xe   : > { %s316_s16 = ssub.s32 %s4739_s28, %s4849_s14  ;;  %p329_p0 = scmp.ne.s32.totalorder %s4735_s27, %s4731_s26 }
   0xf   : > { %p317_p1 = scmp.eq.s32.totalorder %s316_s16, 0  ;;  %p330_p2 = scmp.eq.s32.totalorder %s4845_s29, 1 }
  0x10   : > { %p335_p3 = scmp.ne.s32.totalorder %s4731_s26, %s4727_s25  ;;  %p336_p4 = scmp.eq.s32.totalorder %s3294_s30, 1 }
  0x11   : > { %s4860_s17 = scalar_select %p317_p1, %s4735_s27, %s319_s15  }
  0x12   : > { %p4862_p5 = por %p330_p2, %p329_p0  ;;  %p4866_p6 = por %p336_p4, %p335_p3 }
  0x13   : > { %5499 = sst [smem:[#allocation19_spill]] %s4860_s17  ;;  %p3295_p7 = scmp.ge.s32.totalorder %s4739_s28, 1 }
  0x14   : > { %s5500_s18 = scalar_select %p4862_p5, 1, 0 }
  0x15   : > { %s5502_s19 = scalar_select %p4866_p6, 1, 0 }
  0x16   : > { %5501 = sst [smem:[#allocation20_spill]] %s5500_s18  ;;  %p343_p8 = scmp.lt.s32.totalorder %s4739_s28, 3 }
  0x17   : > { %5503 = sst [smem:[#allocation21_spill]] %s5502_s19  ;;  %p4349_p9 = scmp.eq.s32.totalorder %s4845_s29, 0 }
  0x18   : > { %p4873_p10 = pnand %p3295_p7, %p343_p8  ;;  %s5505_s6 = sld [smem:[#allocation26_spill]] }
  0x19   : > { %s4741_s24 = smov [#allocation5]   ;;  %s5507_s4 = sld [smem:[#allocation25_spill]] }
  0x1a   : > { %p4332_p11 = pneg %p4873_p10  ;;  %s379_s30 = sshll.u32 %s4741_s24, 4  ;;  %s380_s30 = int_to_ptr.vmem [resolvable:$true] %s379_s30 }
  0x1b   : > { %s4742_s21 = smov 192   ;;  %s4743_s22 = smov 12  }
  0x1c   : > { %p4884_p12 = pnand %p4349_p9, %p4332_p11  ;;  %s4745_s14 = smov 128  }
  0x1d   : > { %s4746_s19 = smov 8   ;;  %s394_s17 = sshll.u32 %s5474_s8, 4  ;;  %s395_s17 = int_to_ptr.hbm [resolvable:$true] %s394_s17 }
  0x1e   : > { %s377_s23 = sshll.u32 %s5505_s6, 4  ;;  %s4744_s6 = smov [#allocation2]   ;;  %s378_s23 = int_to_ptr.hbm [resolvable:$true] %s377_s23 }
  0x1f   : > { %s360_s27 = sshll.u32 %s5507_s4, 4  ;;  %s362_s24 = sshll.u32 %s4744_s6, 4  ;;  %s361_s27 = int_to_ptr.hbm [resolvable:$true] %s360_s27  ;;  %s363_s24 = int_to_ptr.vmem [resolvable:$true] %s362_s24 }
  0x20   : > { %4338 = dma.hbm_to_vmem [thread:$0]  (!%p4884_p12), %s378_s23, 6144, %s380_s30, [#allocation6], %s4742_s21, %s4742_s21, %s4743_s22  }
  0x21   : > { %4335 = dma.hbm_to_vmem [thread:$0]  (!%p4884_p12), %s361_s27, 4096, %s363_s24, [#allocation3], %s4745_s14, %s4745_s14, %s4746_s19  }
  0x22   : > { %s4747_s16 = smov [#allocation7]   ;;  %s408_s23 = sshll.u32 %s5475_s9, 4  ;;  %s409_s23 = int_to_ptr.hbm [resolvable:$true] %s408_s23 }
  0x23   : > { %s396_s4 = sshll.u32 %s4747_s16, 4  ;;  %s4748_s30 = smov 256   ;;  %s397_s4 = int_to_ptr.vmem [resolvable:$true] %s396_s4 }
  0x24   : > { %s4749_s6 = smov 16   ;;  %s4750_s21 = smov [#allocation8]  }
  0x25   : > { %4341 = dma.hbm_to_vmem [thread:$0]  (!%p4884_p12), %s395_s17, 8192, %s397_s4, [#allocation6], %s4748_s30, %s4748_s30, %s4749_s6  }
  0x26   : > { %s410_s27 = sshll.u32 %s4750_s21, 4  ;;  %s4751_s14 = smov 64   ;;  %s411_s27 = int_to_ptr.vmem [resolvable:$true] %s410_s27 }
  0x27   : > { %s4752_s25 = smov 4   ;;  %449 = sbr.rel (%p4873_p10) target bundleno = 3312 (0xcf0), region = 72 }
  0x28   : > { %4344 = dma.hbm_to_vmem [thread:$0]  (!%p4884_p12), %s409_s23, 4096, %s411_s27, [#allocation9], %s4751_s14, %s4751_s14, %s4752_s25  }
  0x2c   : > { %4710 = dma.done.wait (%p4349_p9), [#allocation3], 4096  }
  0x2d   : > { %4712 = vsyncadd (%p4349_p9), [#allocation3], 4294963200 }
  0x2e   : > { %4714 = dma.done.wait (%p4349_p9), [#allocation6], 14336  }
  0x2f   : > { %4716 = vsyncadd (%p4349_p9), [#allocation6], 4294952960 }
  0x30   : > { %4718 = dma.done.wait (%p4349_p9), [#allocation9], 4096  }
  0x31   : > { %4720 = vsyncadd (%p4349_p9), [#allocation9], 4294963200  ;;  %p511_p13 = scmp.lt.s32.totalorder %s4845_s29, 1  ;;  %v3395_v5 = vld [vmem:[#allocation5 + $0xa8] sm:$0xf]  ;;  %v4753_v12 = vmov 128.0  }
  0x32   : > { %v4172_v6 = vld [vmem:[#allocation5 + $0xb0] sm:$0xf0]  ;;  %v4171_v7 = vld [vmem:[#allocation5 + $0xac] sm:$0xf]  ;;  %v3397_v9 = vld [vmem:[#allocation5 + $0xb4] sm:$0xf0]  ;;  %4412 = vrcp.f32 %v4753_v12 }
  0x33   : > { %s4921_s4 = scalar_select %p511_p13, %s4845_s29, 1  ;;  %v3396_v8 = vor.u32 %v4172_v6, %v3395_v5  ;;  %v3403_v10 = vld [vmem:[#allocation5 + $0xb0] sm:$0xf]  ;;  %v4173_v11 = vld [vmem:[#allocation5 + $0xb8] sm:$0xf0]  ;;  %v3400_v13 = vor.u32 %v4171_v7, %v3397_v9  ;;  %vm1070_vm7 = vcmask 130048  }
  0x34   : > { %v3404_v14 = vor.u32 %v4173_v11, %v3403_v10  ;;  %v3383_v15 = vld [vmem:[#allocation5 + $0x90] sm:$0xf]  ;;  %v4169_v16 = vld [vmem:[#allocation5 + $0x98] sm:$0xf0]  ;;  %v4168_v17 = vld [vmem:[#allocation5 + $0x94] sm:$0xf] }
  0x35   : > { %s4117_s13 = sshll.u32 %s4921_s4, 3  ;;  %773 = vmatpush.bf16.msra.mxu0 %v3396_v8  ;;  %787 = vmatpush.bf16.msra.mxu1 %v3400_v13  ;;  %v3384_v18 = vor.u32 %v4169_v16, %v3383_v15  ;;  %v3385_v19 = vld [vmem:[#allocation5 + $0x9c] sm:$0xf0]  ;;  %v3391_v20 = vld [vmem:[#allocation5 + $0x98] sm:$0xf]  ;;  %s5104_s14 = scalar_lea.vmem %s5467_s1, %s4921_s4 }
  0x36   : > { %s515_s19 = scalar_lea.vmem %s5466_s0, %s4117_s13  ;;  %801 = vmatpush.bf16.msra.mxu2 %v3404_v14  ;;  %v4170_v21 = vld [vmem:[#allocation5 + $0xa0] sm:$0xf0]  ;;  %v3388_v22 = vor.u32 %v4168_v17, %v3385_v19  ;;  %v3371_v25 = vld [vmem:[#allocation5 + $0x78] sm:$0xf]  ;;  %v4165_v27 = vld [vmem:[#allocation5 + $0x7c] sm:$0xf] }
  0x37   : > { %v4311_v0 = vld [vmem:[%s515_s19] sm:$0xff]   ;;  %v3392_v23 = vor.u32 %v4170_v21, %v3391_v20  ;;  %v3373_v29 = vld [vmem:[#allocation5 + $0x84] sm:$0xf0]  ;;  %v4167_v31 = vld [vmem:[#allocation5 + $0x88] sm:$0xf0]  ;;  %s509_s23 = sand.u32 1, %s4731_s26  }
  0x38   : > { %v4927_v1 = vunpack.c.l.bf16 %v4311_v0  ;;  %v4931_v3 = vunpack.c.h.bf16 %v4311_v0  ;;  %v4935_v24 = vpop.eup %4412  ;;  %v4166_v26 = vld [vmem:[#allocation5 + $0x80] sm:$0xf0]  ;;  %v3379_v30 = vld [vmem:[#allocation5 + $0x80] sm:$0xf]  ;;  %v3376_v32 = vor.u32 %v4165_v27, %v3373_v29  ;;  %v4163_v36 = vld [vmem:[#allocation5 + $0x68] sm:$0xf0] }
  0x39   : > { %774 = vmatpush.bf16.msra.mxu0 %v3384_v18  ;;  %788 = vmatpush.bf16.msra.mxu1 %v3388_v22  ;;  %v3372_v28 = vor.u32 %v4166_v26, %v3371_v25  ;;  %v3380_v33 = vor.u32 %v4167_v31, %v3379_v30  ;;  %v575_v34 = vmul.f32 128.0, %v4935_v24  ;;  %v3359_v35 = vld [vmem:[#allocation5 + $0x60] sm:$0xf]  ;;  %v4162_v37 = vld [vmem:[#allocation5 + $0x64] sm:$0xf]  ;;  %vm579_vm0 = vweird.f32 %v4935_v24  ;;  %s5526_s21 = sld [smem:[#allocation27_spill]] }
  0x3a   : > { %v568_v2 = vmul.f32 %v4927_v1, %v4927_v1  ;;  %v569_v4 = vmul.f32 %v4931_v3, %v4931_v3  ;;  %802 = vmatpush.bf16.msra.mxu2 %v3392_v23  ;;  %v3360_v38 = vor.u32 %v4163_v36, %v3359_v35  ;;  %v3361_v39 = vld [vmem:[#allocation5 + $0x6c] sm:$0xf0]  ;;  %v3367_v40 = vld [vmem:[#allocation5 + $0x68] sm:$0xf]  ;;  %v4164_v41 = vld [vmem:[#allocation5 + $0x70] sm:$0xf0] }
  0x3b   : > { %v3364_v42 = vor.u32 %v4162_v37, %v3361_v39  ;;  %v3368_v43 = vor.u32 %v4164_v41, %v3367_v40  ;;  %v576_v44 = vsub.f32 1.0, %v575_v34  ;;  %v3347_v45 = vld [vmem:[#allocation5 + $0x48] sm:$0xf]  ;;  %v4160_v46 = vld [vmem:[#allocation5 + $0x50] sm:$0xf0]  ;;  %s510_s25 = scalar_lea.vmem [#allocation10], %s509_s23 }
  0x3c   : > { %570 = vadd.xlane.f32.xlu0 %v568_v2  ;;  %v4159_v47 = vld [vmem:[#allocation5 + $0x4c] sm:$0xf]  ;;  %v3348_v48 = vor.u32 %v4160_v46, %v3347_v45  ;;  %v3349_v49 = vld [vmem:[#allocation5 + $0x54] sm:$0xf0]  ;;  %v3355_v50 = vld [vmem:[#allocation5 + $0x50] sm:$0xf] }
  0x3d   : > { %775 = vmatpush.bf16.msra.mxu0 %v3372_v28  ;;  %789 = vmatpush.bf16.msra.mxu1 %v3376_v32  ;;  %v4161_v51 = vld [vmem:[#allocation5 + $0x58] sm:$0xf0]  ;;  %v3352_v52 = vor.u32 %v4159_v47, %v3349_v49  ;;  %v577_v54 = vmul.f32 %v4935_v24, %v576_v44  ;;  %v3335_v55 = vld [vmem:[#allocation5 + $0x30] sm:$0xf]  ;;  %v4156_v57 = vld [vmem:[#allocation5 + $0x34] sm:$0xf] }
  0x3e   : > { %803 = vmatpush.bf16.msra.mxu2 %v3380_v33  ;;  %v3356_v53 = vor.u32 %v4161_v51, %v3355_v50  ;;  %v4157_v56 = vld [vmem:[#allocation5 + $0x38] sm:$0xf0]  ;;  %v3337_v59 = vld [vmem:[#allocation5 + $0x3c] sm:$0xf0]  ;;  %v3343_v60 = vld [vmem:[#allocation5 + $0x38] sm:$0xf] }
  0x3f   : > { %v3336_v58 = vor.u32 %v4157_v56, %v3335_v55  ;;  %v4158_v61 = vld [vmem:[#allocation5 + $0x40] sm:$0xf0]  ;;  %v3340_v62 = vor.u32 %v4156_v57, %v3337_v59  ;;  %v578_v0 = vadd.f32 %v4935_v24, %v577_v54  ;;  %v3323_v2 = vld [vmem:[#allocation5 + $0x18] sm:$0xf]  ;;  %v4153_v5 = vld [vmem:[#allocation5 + $0x1c] sm:$0xf]  ;;  %s3185_s4 = scalar_lea.hbm %s5526_s21, %s4845_s29 }
  0x40   : > { %v3344_v63 = vor.u32 %v4158_v61, %v3343_v60  ;;  %v3325_v7 = vld [vmem:[#allocation5 + $0x24] sm:$0xf0]  ;;  %v3331_v8 = vld [vmem:[#allocation5 + $0x20] sm:$0xf]  ;;  %v4155_v9 = vld [vmem:[#allocation5 + $0x28] sm:$0xf0] }
  0x41   : > { %776 = vmatpush.bf16.msra.mxu0 %v3360_v38  ;;  %790 = vmatpush.bf16.msra.mxu1 %v3364_v42  ;;  %v3328_v10 = vor.u32 %v4153_v5, %v3325_v7  ;;  %v3332_v11 = vor.u32 %v4155_v9, %v3331_v8  ;;  %v4942_v12 = vsel %vm579_vm0, %v4935_v24, %v578_v0  ;;  %v3311_v13 = vld [vmem:[#allocation5] sm:$0xf]  ;;  %v4151_v14 = vld [vmem:[#allocation5 + $0x8] sm:$0xf0]  ;;  %v4150_v15 = vld [vmem:[#allocation5 + $0x4] sm:$0xf] }
  0x42   : > { %804 = vmatpush.bf16.msra.mxu2 %v3368_v43  ;;  %v3312_v16 = vor.u32 %v4151_v14, %v3311_v13  ;;  %v3313_v17 = vld [vmem:[#allocation5 + $0xc] sm:$0xf0]  ;;  %v3319_v18 = vld [vmem:[#allocation5 + $0x8] sm:$0xf]  ;;  %v4152_v19 = vld [vmem:[#allocation5 + $0x10] sm:$0xf0] }
  0x43   : > { %v3316_v21 = vor.u32 %v4150_v15, %v3313_v17  ;;  %v3320_v22 = vor.u32 %v4152_v19, %v3319_v18  ;;  %v3463_v24 = vld [vmem:[#allocation2 + $0x70] sm:$0xf]  ;;  %v4133_v26 = vld [vmem:[#allocation2 + $0x74] sm:$0xf0]  ;;  %v4132_v30 = vld [vmem:[#allocation2 + $0x74] sm:$0xf] }
  0x44   : > { %572 = vadd.xlane.f32.xlu0 %v569_v4  ;;  %v4154_v4 = vld [vmem:[#allocation5 + $0x20] sm:$0xf0]  ;;  %v3527_v27 = vld [vmem:[#allocation2 + $0xf0] sm:$0xf]  ;;  %v4948_v28 = vor.u32 %v4133_v26, %v3463_v24  ;;  %v4149_v29 = vld [vmem:[#allocation2 + $0xf4] sm:$0xf0] }
  0x45   : > { %777 = vmatpush.bf16.msra.mxu0 %v3348_v48  ;;  %791 = vmatpush.bf16.msra.mxu1 %v3352_v52  ;;  %v3324_v6 = vor.u32 %v4154_v4, %v3323_v2  ;;  %v3465_v31 = vld [vmem:[#allocation2 + $0x78] sm:$0xf0]  ;;  %v4950_v33 = vor.u32 %v4149_v29, %v3527_v27  ;;  %v4148_v35 = vld [vmem:[#allocation2 + $0xf4] sm:$0xf]  ;;  %v3455_v37 = vld [vmem:[#allocation2 + $0x60] sm:$0xf] }
  0x46   : > { %805 = vmatpush.bf16.msra.mxu2 %v3356_v53  ;;  %v4952_v34 = vor.u32 %v4132_v30, %v3465_v31  ;;  %v3529_v36 = vld [vmem:[#allocation2 + $0xf8] sm:$0xf0]  ;;  %981 = vmatpush.bf16.msra.mxu3 %v4948_v28  ;;  %v4131_v40 = vld [vmem:[#allocation2 + $0x64] sm:$0xf0]  ;;  %v3519_v41 = vld [vmem:[#allocation2 + $0xe0] sm:$0xf] }
  0x47   : > { %v4956_v39 = vor.u32 %v4148_v35, %v3529_v36  ;;  %v4147_v42 = vld [vmem:[#allocation2 + $0xe4] sm:$0xf0]  ;;  %v4960_v43 = vor.u32 %v4131_v40, %v3455_v37  ;;  %v4130_v45 = vld [vmem:[#allocation2 + $0x64] sm:$0xf]  ;;  %v3457_v46 = vld [vmem:[#allocation2 + $0x68] sm:$0xf0] }
  0x48   : > { %v4962_v44 = vor.u32 %v4147_v42, %v3519_v41  ;;  %v4146_v47 = vld [vmem:[#allocation2 + $0xe4] sm:$0xf]  ;;  %v4969_v50 = vor.u32 %v4130_v45, %v3457_v46  ;;  %v3521_v51 = vld [vmem:[#allocation2 + $0xe8] sm:$0xf0]  ;;  %v3447_v52 = vld [vmem:[#allocation2 + $0x50] sm:$0xf] }
  0x49   : > { %778 = vmatpush.bf16.msra.mxu0 %v3336_v58  ;;  %792 = vmatpush.bf16.msra.mxu1 %v3340_v62  ;;  %v4973_v54 = vor.u32 %v4146_v47, %v3521_v51  ;;  %v4129_v55 = vld [vmem:[#allocation2 + $0x54] sm:$0xf0]  ;;  %v3511_v56 = vld [vmem:[#allocation2 + $0xd0] sm:$0xf]  ;;  %v4128_v59 = vld [vmem:[#allocation2 + $0x54] sm:$0xf] }
  0x4a   : > { %806 = vmatpush.bf16.msra.mxu2 %v3344_v63  ;;  %v4145_v57 = vld [vmem:[#allocation2 + $0xd4] sm:$0xf0]  ;;  %982 = vmatpush.bf16.msra.mxu3 %v4960_v43  ;;  %v4977_v58 = vor.u32 %v4129_v55, %v3447_v52  ;;  %v3449_v60 = vld [vmem:[#allocation2 + $0x58] sm:$0xf0]  ;;  %v4144_v0 = vld [vmem:[#allocation2 + $0xd4] sm:$0xf] }
  0x4b   : > { %v4982_v62 = vor.u32 %v4145_v57, %v3511_v56  ;;  %v4984_v63 = vor.u32 %v4128_v59, %v3449_v60  ;;  %v3513_v2 = vld [vmem:[#allocation2 + $0xd8] sm:$0xf0]  ;;  %v3439_v4 = vld [vmem:[#allocation2 + $0x40] sm:$0xf]  ;;  %v4143_v8 = vld [vmem:[#allocation2 + $0xc4] sm:$0xf0] }
  0x4c   : > { %v4987_v5 = vor.u32 %v4144_v0, %v3513_v2  ;;  %v3503_v7 = vld [vmem:[#allocation2 + $0xc0] sm:$0xf]  ;;  %v4142_v14 = vld [vmem:[#allocation2 + $0xc4] sm:$0xf]  ;;  %v3505_v15 = vld [vmem:[#allocation2 + $0xc8] sm:$0xf0] }
  0x4d   : > { %779 = vmatpush.bf16.msra.mxu0 %v3324_v6  ;;  %793 = vmatpush.bf16.msra.mxu1 %v3328_v10  ;;  %v4127_v6 = vld [vmem:[#allocation2 + $0x44] sm:$0xf0]  ;;  %v4126_v10 = vld [vmem:[#allocation2 + $0x44] sm:$0xf]  ;;  %v4994_v18 = vor.u32 %v4143_v8, %v3503_v7  ;;  %v4141_v24 = vld [vmem:[#allocation2 + $0xb4] sm:$0xf0] }
  0x4e   : > { %807 = vmatpush.bf16.msra.mxu2 %v3332_v11  ;;  %v3441_v11 = vld [vmem:[#allocation2 + $0x48] sm:$0xf0]  ;;  %983 = vmatpush.bf16.msra.mxu3 %v4977_v58  ;;  %v4990_v13 = vor.u32 %v4127_v6, %v3439_v4  ;;  %v4124_v26 = vld [vmem:[#allocation2 + $0x34] sm:$0xf]  ;;  %v3433_v27 = vld [vmem:[#allocation2 + $0x38] sm:$0xf0] }
  0x4f   : > { %v4996_v19 = vor.u32 %v4126_v10, %v3441_v11  ;;  %v4140_v30 = vld [vmem:[#allocation2 + $0xb4] sm:$0xf]  ;;  %v3497_v31 = vld [vmem:[#allocation2 + $0xb8] sm:$0xf0]  ;;  %v4403_v47 = vld [vmem:[%s5476_s10] ss:$0 sm:$0xff] }
  0x50   : > { %v5014_v40 = vor.u32 %v4140_v30, %v3497_v31  ;;  %v3423_v56 = vld [vmem:[#allocation2 + $0x20] sm:$0xf]  ;;  %v4123_v57 = vld [vmem:[#allocation2 + $0x24] sm:$0xf0]  ;;  %v3425_v0 = vld [vmem:[#allocation2 + $0x28] sm:$0xf0] }
  0x51   : > { %780 = vmatpush.bf16.msra.mxu0 %v3312_v16  ;;  %794 = vmatpush.bf16.msra.mxu1 %v3316_v21  ;;  %v3431_v16 = vld [vmem:[#allocation2 + $0x30] sm:$0xf]  ;;  %v3487_v59 = vld [vmem:[#allocation2 + $0xa0] sm:$0xf]  ;;  %v4139_v60 = vld [vmem:[#allocation2 + $0xa4] sm:$0xf0] }
  0x52   : > { %808 = vmatpush.bf16.msra.mxu2 %v3320_v22  ;;  %v3495_v21 = vld [vmem:[#allocation2 + $0xb0] sm:$0xf]  ;;  %984 = vmatpush.bf16.msra.mxu3 %v4990_v13  ;;  %v5030_v2 = vor.u32 %v4139_v60, %v3487_v59  ;;  %v4138_v6 = vld [vmem:[#allocation2 + $0xa4] sm:$0xf]  ;;  %v3489_v7 = vld [vmem:[#allocation2 + $0xa8] sm:$0xf0] }
  0x53   : > { %v5009_v37 = vor.u32 %v4141_v24, %v3495_v21  ;;  %v5035_v8 = vor.u32 %v4138_v6, %v3489_v7  ;;  %v4121_v10 = vld [vmem:[#allocation2 + $0x14] sm:$0xf0]  ;;  %v4136_v21 = vld [vmem:[#allocation2 + $0x94] sm:$0xf]  ;;  %v3471_v31 = vld [vmem:[#allocation2 + $0x80] sm:$0xf] }
  0x54   : > { %s3187_s13 = sshll.u32 %s510_s25, 4  ;;  %s3189_s28 = sshll.u32 %s3185_s4, 4  ;;  %s3188_s13 = int_to_ptr.vmem [resolvable:$true] %s3187_s13  ;;  %s3190_s28 = int_to_ptr.hbm [resolvable:$true] %s3189_s28 }
  0x55   : > { %995 = vmatpush.bf16.msrb.mxu0 %v4950_v33  ;;  %1009 = vmatpush.bf16.msrb.mxu1 %v4952_v34  ;;  %s3177_s18 = scalar_lea.sflag [#allocation4], %s509_s23  ;;  %s4679_s19 = sshra.s32 %s3190_s28, 4  ;;  %s4680_s19 = int_to_ptr.hbm [resolvable:$true] %s4679_s19 }
  0x56   : > { %1023 = vmatpush.bf16.msrb.mxu2 %v4956_v39  ;;  %s4681_s20 = scalar_lea.hbm %s4680_s19, 1  ;;  %s4685_s29 = scalar_lea.hbm %s5526_s21, 2 }
  0x57   : > { %p4682_p0 = scmp.ne.s32.totalorder %s4680_s19, %s4681_s20  ;;  %p4686_p3 = scmp.lt.s32.totalorder %s4680_s19, %s5526_s21 }
  0x58   : > { %p4687_p4 = scmp.lt.s32.totalorder %s4685_s29, %s4681_s20 }
  0x59   : > { %996 = vmatpush.bf16.msrb.mxu0 %v4962_v44  ;;  %1010 = vmatpush.bf16.msrb.mxu1 %v4969_v50  ;;  %p4683_p1 = pnand %p4682_p0, %p4862_p5 }
  0x5a   : > { %1024 = vmatpush.bf16.msrb.mxu2 %v4973_v54  ;;  %p4688_p7 = por %p4687_p4, %p4686_p3 }
  0x5b   : > { %p4684_p2 = pneg %p4683_p1 }
  0x5d   : > { %997 = vmatpush.bf16.msrb.mxu0 %v4982_v62  ;;  %1011 = vmatpush.bf16.msrb.mxu1 %v4984_v63  ;;  %p4689_p8 = pnand %p4688_p7, %p4684_p2 }
  0x5e   : > { %1025 = vmatpush.bf16.msrb.mxu2 %v4987_v5 }
  0x61   : > { %998 = vmatpush.bf16.msrb.mxu0 %v4994_v18  ;;  %1012 = vmatpush.bf16.msrb.mxu1 %v4996_v19 }
  0x65   : > { %999 = vmatpush.bf16.msrb.mxu0 %v5009_v37 }
  0x69   : > { %1000 = vmatpush.bf16.msrb.mxu0 %v5030_v2 }
  0xaf   : > { %v571_v20 = vpop.xlane.xlu0 %570 }
  0xb0   : > { %v581_v23 = vmul.f32 %v4942_v12, %v571_v20  ;;  %v4125_v20 = vld [vmem:[#allocation2 + $0x34] sm:$0xf0] }
  0xb1   : > { %v5004_v35 = vor.u32 %v4125_v20, %v3431_v16  ;;  %v4120_v16 = vld [vmem:[#allocation2 + $0x14] sm:$0xf]  ;;  %v3417_v20 = vld [vmem:[#allocation2 + $0x18] sm:$0xf0] }
  0xb2   : > { %v4945_v25 = vadd.f32 1e-06, %v581_v23  ;;  %v4999_v23 = vor.u32 %v4142_v14, %v3505_v15  ;;  %v3479_v14 = vld [vmem:[#allocation2 + $0x90] sm:$0xf]  ;;  %v4137_v15 = vld [vmem:[#allocation2 + $0x94] sm:$0xf0]  ;;  %v5044_v24 = vor.u32 %v4120_v16, %v3417_v20 }
  0xb3   : > { %985 = vmatpush.bf16.msra.mxu3 %v5004_v35  ;;  %v526_v16 = vld [vmem:[%s5468_s2 + $0x8] sm:$0xff]  ;;  %v528_v20 = vld [vmem:[%s5468_s2 + $0x18] sm:$0xff] }
  0xb4   : > { %4414 = vrsqrt.f32 %v4945_v25  ;;  %1026 = vmatpush.bf16.msrb.mxu2 %v4999_v23  ;;  %vm591_vm2 = vweird.f32 %v4945_v25 }
  0xb7   : > { %v573_v32 = vpop.xlane.xlu0 %572 }
  0xb8   : > { %v582_v38 = vmul.f32 %v4942_v12, %v573_v32  ;;  %1027 = vmatpush.bf16.msrb.mxu2 %v5014_v40 }
  0xba   : > { %v4964_v48 = vpop.eup %4414  ;;  %v4966_v49 = vadd.f32 1e-06, %v582_v38  ;;  %v5011_v38 = vor.u32 %v4124_v26, %v3433_v27  ;;  %v3407_v27 = vld [vmem:[#allocation2] sm:$0xf] }
  0xbb   : > { %v586_v53 = vmul.f32 %v4964_v48, %v4945_v25  ;;  %vm592_vm1 = vweird.f32 %v4964_v48 }
  0xbc   : > { %4416 = vrsqrt.f32 %v4966_v49  ;;  %vm593_vm3 = vmor %vm591_vm2, %vm592_vm1  ;;  %1013 = vmatpush.bf16.msrb.mxu1 %v5011_v38  ;;  %vm601_vm5 = vweird.f32 %v4966_v49  ;;  %1028 = vmatpush.bf16.msrb.mxu2 %v5035_v8 }
  0xbd   : > { %v587_v61 = vmul.f32 %v4964_v48, %v586_v53 }
  0xbf   : > { %v588_v9 = vmul.f32 0.5, %v587_v61  ;;  %v4122_v61 = vld [vmem:[#allocation2 + $0x24] sm:$0xf] }
  0xc0   : > { %v5032_v4 = vor.u32 %v4122_v61, %v3425_v0 }
  0xc1   : > { %v589_v17 = vsub.f32 1.5, %v588_v9  ;;  %v3415_v9 = vld [vmem:[#allocation2 + $0x10] sm:$0xf] }
  0xc2   : > { %v4417_v22 = vpop.eup %4416  ;;  %1014 = vmatpush.bf16.msrb.mxu1 %v5032_v4  ;;  %v5039_v11 = vor.u32 %v4121_v10, %v3415_v9  ;;  %v530_v9 = vld [vmem:[%s5469_s3 + $0x8] sm:$0xff] }
  0xc3   : > { %v596_v29 = vmul.f32 %v4417_v22, %v4966_v49  ;;  %v590_v32 = vmul.f32 %v4964_v48, %v589_v17  ;;  %vm602_vm4 = vweird.f32 %v4417_v22  ;;  %v5028_v49 = vor.u32 %v4123_v57, %v3423_v56 }
  0xc4   : > { %vm603_vm6 = vmor %vm601_vm5, %vm602_vm4  ;;  %v5042_v17 = vor.u32 %v4137_v15, %v3479_v14  ;;  %v531_v14 = vld [vmem:[%s5469_s3 + $0x10] sm:$0xff] }
  0xc5   : > { %v597_v36 = vmul.f32 %v4417_v22, %v596_v29  ;;  %v594_v42 = vsel %vm593_vm3, %v4964_v48, %v590_v32  ;;  %986 = vmatpush.bf16.msra.mxu3 %v5028_v49  ;;  %v4119_v29 = vld [vmem:[#allocation2 + $0x4] sm:$0xf0] }
  0xc6   : > { %v605_v25 = vmul.f32 %v4927_v1, %v594_v42  ;;  %1001 = vmatpush.bf16.msrb.mxu0 %v5042_v17  ;;  %1015 = vmatpush.bf16.msrb.mxu1 %v5044_v24  ;;  %v5052_v30 = vor.u32 %v4119_v29, %v3407_v27  ;;  %v4135_v32 = vld [vmem:[#allocation2 + $0x84] sm:$0xf0]  ;;  %v3409_v42 = vld [vmem:[#allocation2 + $0x8] sm:$0xf0]  ;;  %v532_v29 = vld [vmem:[%s5469_s3 + $0x18] sm:$0xff] }
  0xc7   : > { %v598_v41 = vmul.f32 0.5, %v597_v36  ;;  %v5054_v36 = vor.u32 %v4135_v32, %v3471_v31  ;;  %v527_v32 = vld [vmem:[%s5468_s2 + $0x10] sm:$0xff] }
  0xc8   : > { %v610_v52 = vmul.f32 %v4403_v47, %v605_v25  ;;  %v3473_v25 = vld [vmem:[#allocation2 + $0x88] sm:$0xf0] }
  0xc9   : > { %v599_v45 = vsub.f32 1.5, %v598_v41  ;;  %987 = vmatpush.bf16.msra.mxu3 %v5039_v11  ;;  %5508 = vst [vmem:[#allocation22_spill] sm:$0xff] %v5054_v36  ;;  %v4118_v41 = vld [vmem:[#allocation2 + $0x4] sm:$0xf] }
  0xca   : > { %1002 = vmatpush.bf16.msrb.mxu0 %v5054_v36 }
  0xcb   : > { %v600_v46 = vmul.f32 %v4417_v22, %v599_v45  ;;  %v5057_v45 = vor.u32 %v4118_v41, %v3409_v42  ;;  %v529_v41 = vld [vmem:[%s5469_s3] sm:$0xff] }
  0xcd   : > { %v604_v51 = vsel %vm603_vm6, %v4417_v22, %v600_v46  ;;  %v3481_v22 = vld [vmem:[#allocation2 + $0x98] sm:$0xf0]  ;;  %988 = vmatpush.bf16.msra.mxu3 %v5052_v30  ;;  %5509 = vst [vmem:[#allocation23_spill] sm:$0xff] %v5057_v45  ;;  %v4134_v46 = vld [vmem:[#allocation2 + $0x84] sm:$0xf]  ;;  %1016 = vmatpush.bf16.msrb.mxu1 %v5057_v45 }
  0xce   : > { %v606_v48 = vmul.f32 %v4931_v3, %v604_v51  ;;  %v5046_v26 = vor.u32 %v4136_v21, %v3481_v22  ;;  %v4406_v45 = vld [vmem:[%s5471_s5 + $0x2] ss:$0 sm:$0xff] }
  0xd0   : > { %v611_v53 = vmul.f32 %v4403_v47, %v606_v48  ;;  %1029 = vmatpush.bf16.msrb.mxu2 %v5046_v26  ;;  %v5060_v47 = vor.u32 %v4134_v46, %v3473_v25 }
  0xd2   : > { %v612_v55 = vpack.c.bf16 %v611_v53, %v610_v52  ;;  %5510 = vst [vmem:[#allocation24_spill] sm:$0xff] %v5060_v47 }
  0xd4   : > { %781 = vmatmul.bf16.vlgmr.msra.gmra.mxu0 %v612_v55  ;;  %795 = vmatmul.bf16.vlgmr.msra.gmra.mxu1 %v612_v55 }
  0xd5   : > { %809 = vmatmul.bf16.vlgmr.msra.gmra.mxu2 %v612_v55 }
  0xd6   : > { %1030 = vmatpush.bf16.msrb.mxu2 %v5060_v47 }
 0x151   : > { %v782_v51 = vpop.f32.mrf.mxu0  ;;  %v796_v48 = vpop.f32.mrf.mxu1 }
 0x158   : > { %v810_v57 = vpop.f32.mrf.mxu2 }
 0x159   : > { %v784_v52 = vpop.f32.mrf.mxu0  ;;  %v798_v53 = vpop.f32.mrf.mxu1 }
 0x15a   : > { %v820_v55 = vpack.c.bf16 %v798_v53, %v796_v48  ;;  %v819_v56 = vpack.c.bf16 %v784_v52, %v782_v51 }
 0x15c   : > { %989 = vmatmul.bf16.vlgmr.msra.gmra.mxu3 %v819_v56  ;;  %1003 = vmatmul.bf16.vlgmr.msrb.gmra.mxu0 %v820_v55 }
 0x15d   : > { %1017 = vmatmul.bf16.vlgmr.msrb.gmra.mxu1 %v819_v56  ;;  %1031 = vmatmul.bf16.vlgmr.msrb.gmra.mxu2 %v820_v55  ;;  %v525_v55 = vld [vmem:[%s5468_s2] sm:$0xff]  ;;  %v816_v56 = vmul.f32 %v796_v48, %v526_v16 }
 0x160   : > { %v812_v59 = vpop.f32.mrf.mxu2 }
 0x1d9   : > { %v1004_v60 = vpop.f32.mrf.mxu0 }
 0x1da   : > { %v1018_v61 = vpop.f32.mrf.mxu1 }
 0x1df   : > { %v990_v0 = vpop.f32.mrf.mxu3 }
 0x1e0   : > { %v1032_v6 = vpop.f32.mrf.mxu2  ;;  %v1005_v21 = vadd.f32 %v1004_v60, %v990_v0  ;;  %v4404_v60 = vld [vmem:[%s5471_s5] ss:$0 sm:$0xff]  ;;  %v818_v0 = vmul.f32 %v798_v53, %v528_v20  ;;  %v4407_v53 = vld [vmem:[%s5471_s5 + $0x3] ss:$0 sm:$0xff] }
 0x1e1   : > { %v1033_v7 = vadd.f32 %v1032_v6, %v1018_v61  ;;  %v1006_v10 = vpop.f32.mrf.mxu0  ;;  %v4405_v61 = vld [vmem:[%s5471_s5 + $0x1] ss:$0 sm:$0xff]  ;;  %v1089_v47 = vmul.f32 %v4404_v60, %v810_v57 }
 0x1e2   : > { %v1020_v22 = vpop.f32.mrf.mxu1  ;;  %v1156_v48 = vmul.f32 %v4405_v61, %v810_v57 }
 0x1e3   : > { %v1038_v42 = vmul.f32 %v1033_v7, %v530_v9  ;;  %v1090_v7 = vmul.f32 %v4404_v60, %v812_v59  ;;  %v1157_v9 = vmul.f32 %v4405_v61, %v812_v59 }
 0x1e5   : > { %v1158_v20 = vpack.c.bf16 %v1157_v9, %v1156_v48 }
 0x1e7   : > { %v992_v15 = vpop.f32.mrf.mxu3 }
 0x1e8   : > { %v1007_v27 = vadd.f32 %v1006_v10, %v992_v15  ;;  %v1034_v31 = vpop.f32.mrf.mxu2  ;;  %v817_v10 = vmul.f32 %v784_v52, %v527_v32  ;;  %v1037_v15 = vmul.f32 %v1005_v21, %v529_v41  ;;  %v1091_v52 = vpack.c.bf16 %v1090_v7, %v1089_v47 }
 0x1e9   : > { %v1035_v46 = vadd.f32 %v1034_v31, %v1020_v22  ;;  %v1224_v41 = vmul.f32 %v4406_v45, %v812_v59 }
 0x1ea   : > { %v1039_v25 = vmul.f32 %v1007_v27, %v531_v14  ;;  %v1042_v14 = vadd.f32 %v1038_v42, %v816_v56  ;;  %v815_v27 = vmul.f32 %v782_v51, %v525_v55  ;;  %v1291_v42 = vmul.f32 %v4407_v53, %v812_v59 }
 0x1eb   : > { %v1040_v6 = vmul.f32 %v1035_v46, %v532_v29 }
 0x1ec   : > { %v1043_v31 = vadd.f32 %v1039_v25, %v817_v10  ;;  %v1041_v36 = vadd.f32 %v1037_v15, %v815_v27 }
 0x1ed   : > { %v1044_v22 = vadd.f32 %v1040_v6, %v818_v0  ;;  %v1223_v0 = vmul.f32 %v4406_v45, %v810_v57  ;;  %v1290_v6 = vmul.f32 %v4407_v53, %v810_v57 }
 0x1ee   : > { %v1051_v51 = vmul.f32 %v4404_v60, %v1043_v31  ;;  %v1122_v21 = vmul.f32 %v4405_v61, %v1043_v31  ;;  %v1189_v29 = vmul.f32 %v4406_v45, %v1043_v31  ;;  %v1256_v32 = vmul.f32 %v4407_v53, %v1043_v31 }
 0x1ef   : > { %v1045_v16 = vpack.c.bf16 %v1044_v22, %v1042_v14  ;;  %v1050_v46 = vmul.f32 %v4404_v60, %v1041_v36  ;;  %v1121_v25 = vmul.f32 %v4405_v61, %v1041_v36  ;;  %v1188_v55 = vmul.f32 %v4406_v45, %v1041_v36 }
 0x1f0   : > { %v1255_v56 = vmul.f32 %v4407_v53, %v1041_v36  ;;  %v1225_v9 = vpack.c.bf16 %v1224_v41, %v1223_v0  ;;  %v1292_v14 = vpack.c.bf16 %v1291_v42, %v1290_v6  ;;  %v524_v36 = vld [vmem:[%s5104_s14] sm:$0x1] }
 0x1f1   : > { %1063 = vmatpush.bf16.xpose.msrb.mxu3 %v1045_v16  ;;  %1131 = vmatpush.bf16.xpose.msra.mxu1 %v1045_v16  ;;  %v1052_v10 = vpack.c.bf16 %v1051_v51, %v1050_v46  ;;  %v1123_v47 = vpack.c.bf16 %v1122_v21, %v1121_v25  ;;  %v1190_v15 = vpack.c.bf16 %v1189_v29, %v1188_v55  ;;  %v3308_v45 = vadd.f32 -1.0, %v524_v36 }
 0x1f2   : > { %1198 = vmatpush.bf16.xpose.msra.mxu2 %v1045_v16  ;;  %1265 = vmatpush.bf16.xpose.msra.mxu0 %v1045_v16  ;;  %v1257_v7 = vpack.c.bf16 %v1256_v32, %v1255_v56 }
 0x1f3   : > { %v566_v57 = vmul.f32 1e+09, %v3308_v45 }
 0x1f5   : > { %v5107_v59 = vperm.slane %v566_v57, 0 }
 0x1f8   : > { %1064 = vmatmul.bf16.vlgmr.msrb.gmra.mxu3 %v1052_v10  ;;  %1132 = vmatmul.bf16.vlgmr.msra.gmra.mxu1 %v1123_v47 }
 0x1f9   : > { %1103 = vmatpush.bf16.msra.mxu3 %v1091_v52  ;;  %1170 = vmatpush.bf16.msrb.mxu1 %v1158_v20 }
 0x1fa   : > { %1199 = vmatmul.bf16.vlgmr.msra.gmra.mxu2 %v1190_v15  ;;  %1266 = vmatmul.bf16.vlgmr.msra.gmra.mxu0 %v1257_v7 }
 0x1fd   : > { %1237 = vmatpush.bf16.msrb.mxu3 %v1225_v9  ;;  %1304 = vmatpush.bf16.msra.mxu1 %v1292_v14 }
 0x275   : > { %v1133_v60 = vpop.f32.mrf.mxu1 }
 0x276   : > { %v1134_v61 = vadd.f32 %v1133_v60, %v5107_v59 }
 0x277   : > { %v1267_v22 = vpop.f32.mrf.mxu0 }
 0x278   : > { %v1138_v27 = vsel %vm1070_vm7, %v1134_v61, -inf  ;;  %v1268_v46 = vadd.f32 %v1267_v22, %v5107_v59 }
 0x279   : > { %1139 = vmax.xlane.f32.xlu2 %v1138_v27 }
 0x27a   : > { %v1272_v6 = vsel %vm1070_vm7, %v1268_v46, -inf }
 0x27b   : > { %v1065_v31 = vpop.f32.mrf.mxu3 }
 0x27c   : > { %v1066_v48 = vadd.f32 %v1065_v31, %v5107_v59 }
 0x27d   : > { %v1200_v16 = vpop.f32.mrf.mxu2  ;;  %v1135_v52 = vpop.f32.mrf.mxu1 }
 0x27e   : > { %v1201_v53 = vadd.f32 %v1200_v16, %v5107_v59  ;;  %v1136_v20 = vadd.f32 %v1135_v52, %v5107_v59  ;;  %v1071_v51 = vsel %vm1070_vm7, %v1066_v48, -inf }
 0x27f   : > { %1072 = vmax.xlane.f32.xlu1 %v1071_v51  ;;  %v1269_v29 = vpop.f32.mrf.mxu0 }
 0x280   : > { %v1205_v21 = vsel %vm1070_vm7, %v1201_v53, -inf  ;;  %v1141_v32 = vsel %vm1070_vm7, %v1136_v20, -inf  ;;  %v1270_v41 = vadd.f32 %v1269_v29, %v5107_v59 }
 0x281   : > { %1206 = vmax.xlane.f32.xlu0 %v1205_v21  ;;  %1142 = vmax.xlane.f32.xlu2 %v1141_v32 }
 0x282   : > { %v1275_v0 = vsel %vm1070_vm7, %v1270_v41, -inf }
 0x283   : > { %v1067_v42 = vpop.f32.mrf.mxu3 }
 0x284   : > { %v1068_v25 = vadd.f32 %v1067_v42, %v5107_v59 }
 0x285   : > { %v1202_v56 = vpop.f32.mrf.mxu2 }
 0x286   : > { %v1074_v55 = vsel %vm1070_vm7, %v1068_v25, -inf  ;;  %v1203_v10 = vadd.f32 %v1202_v56, %v5107_v59 }
 0x287   : > { %1075 = vmax.xlane.f32.xlu1 %v1074_v55 }
 0x288   : > { %v1208_v47 = vsel %vm1070_vm7, %v1203_v10, -inf }
 0x289   : > { %1276 = vmax.xlane.f32.xlu0 %v1275_v0  ;;  %1273 = vmax.xlane.f32.xlu2 %v1272_v6 }
 0x28f   : > { %1209 = vmax.xlane.f32.xlu1 %v1208_v47 }
 0x2ec   : > { %v1140_v15 = vpop.xlane.xlu2 %1139 }
 0x2ed   : > { %v1144_v7 = vsub.f32 %v1134_v61, %v1140_v15 }
 0x2ef   : > { %v1146_v9 = vmul.f32 1.442695, %v1144_v7 }
 0x2f1   : > { %4418 = vpow2.f32 %v1146_v9 }
 0x2f2   : > { %v1073_v14 = vpop.xlane.xlu1 %1072 }
 0x2f3   : > { %v1077_v45 = vsub.f32 %v1066_v48, %v1073_v14 }
 0x2f4   : > { %v1207_v36 = vpop.xlane.xlu0 %1206  ;;  %v1143_v60 = vpop.xlane.xlu2 %1142 }
 0x2f5   : > { %v1211_v57 = vsub.f32 %v1201_v53, %v1207_v36  ;;  %v1079_v22 = vmul.f32 1.442695, %v1077_v45  ;;  %v1145_v27 = vsub.f32 %v1136_v20, %v1143_v60 }
 0x2f7   : > { %v1213_v31 = vmul.f32 1.442695, %v1211_v57  ;;  %v4419_v16 = vpop.eup %4418  ;;  %4420 = vpow2.f32 %v1079_v22  ;;  %v1148_v52 = vmul.f32 1.442695, %v1145_v27 }
 0x2f8   : > { %v1150_v51 = vsel %vm1070_vm7, %v4419_v16, 0.0 }
 0x2f9   : > { %4422 = vpow2.f32 %v1213_v31  ;;  %1151 = vadd.xlane.f32.xlu0 %v1150_v51  ;;  %v4181_v51 = vld [vmem:[%s5473_s7 + $0x38] sm:$0xff] }
 0x2fa   : > { %4424 = vpow2.f32 %v1148_v52  ;;  %v1076_v21 = vpop.xlane.xlu1 %1075  ;;  %1382 = vmatpush.bf16.msrb.mxu2 %v4181_v51 }
 0x2fb   : > { %v1078_v29 = vsub.f32 %v1068_v25, %v1076_v21  ;;  %v4180_v21 = vld [vmem:[%s5473_s7 + $0x30] sm:$0xff] }
 0x2fc   : > { %v1277_v61 = vpop.xlane.xlu0 %1276  ;;  %v1274_v32 = vpop.xlane.xlu2 %1273 }
 0x2fd   : > { %v4421_v42 = vpop.eup %4420  ;;  %v1081_v55 = vmul.f32 1.442695, %v1078_v29  ;;  %v1278_v48 = vsub.f32 %v1268_v46, %v1274_v32  ;;  %v1279_v56 = vsub.f32 %v1270_v41, %v1277_v61  ;;  %v4179_v61 = vld [vmem:[%s5473_s7 + $0x28] sm:$0xff]  ;;  %v4178_v29 = vld [vmem:[%s5473_s7 + $0x20] sm:$0xff]  ;;  %v4177_v32 = vld [vmem:[%s5473_s7 + $0x18] sm:$0xff] }
 0x2fe   : > { %v1083_v20 = vsel %vm1070_vm7, %v4421_v42, 0.0  ;;  %1383 = vmatpush.bf16.msrb.mxu2 %v4180_v21 }
 0x2ff   : > { %v4423_v53 = vpop.eup %4422  ;;  %4426 = vpow2.f32 %v1081_v55  ;;  %1084 = vadd.xlane.f32.xlu1 %v1083_v20  ;;  %v1280_v15 = vmul.f32 1.442695, %v1278_v48  ;;  %v1282_v7 = vmul.f32 1.442695, %v1279_v56  ;;  %v4175_v48 = vld [vmem:[%s5473_s7 + $0x8] sm:$0xff]  ;;  %v4174_v20 = vld [vmem:[%s5473_s7] sm:$0xff] }
 0x300   : > { %v4425_v0 = vpop.eup %4424  ;;  %v1217_v6 = vsel %vm1070_vm7, %v4423_v53, 0.0 }
 0x301   : > { %v1159_v47 = vpack.c.bf16 %v4425_v0, %v4419_v16  ;;  %1218 = vadd.xlane.f32.xlu2 %v1217_v6  ;;  %4428 = vpow2.f32 %v1280_v15  ;;  %v1153_v36 = vsel %vm1070_vm7, %v4425_v0, 0.0 }
 0x302   : > { %v1210_v25 = vpop.xlane.xlu1 %1209  ;;  %4430 = vpow2.f32 %v1282_v7  ;;  %1384 = vmatpush.bf16.msrb.mxu2 %v4179_v61 }
 0x303   : > { %3535 = vmatmul.msk.bf16.vlgmr.msrb.gmra.mxu1 %vm1070_vm7, %v1159_v47  ;;  %v1212_v9 = vsub.f32 %v1203_v10, %v1210_v25 }
 0x305   : > { %v4427_v14 = vpop.eup %4426  ;;  %v1215_v46 = vmul.f32 1.442695, %v1212_v9 }
 0x306   : > { %v1092_v41 = vpack.c.bf16 %v4427_v14, %v4421_v42  ;;  %v1086_v45 = vsel %vm1070_vm7, %v4427_v14, 0.0  ;;  %1385 = vmatpush.bf16.msrb.mxu2 %v4178_v29  ;;  %v4176_v42 = vld [vmem:[%s5473_s7 + $0x10] sm:$0xff] }
 0x307   : > { %4432 = vpow2.f32 %v1215_v46  ;;  %1154 = vadd.xlane.f32.xlu1 %v1153_v36  ;;  %v4429_v57 = vpop.eup %4428 }
 0x308   : > { %3533 = vmatmul.msk.bf16.vlgmr.msra.gmra.mxu3 %vm1070_vm7, %v1092_v41  ;;  %v4431_v60 = vpop.eup %4430  ;;  %v1284_v27 = vsel %vm1070_vm7, %v4429_v57, 0.0 }
 0x309   : > { %1087 = vadd.xlane.f32.xlu2 %v1086_v45  ;;  %v1287_v31 = vsel %vm1070_vm7, %v4431_v60, 0.0  ;;  %v1293_v16 = vpack.c.bf16 %v4431_v60, %v4429_v57 }
 0x30a   : > { %1386 = vmatpush.bf16.msrb.mxu2 %v4177_v32 }
 0x30d   : > { %v4433_v22 = vpop.eup %4432 }
 0x30e   : > { %v1220_v10 = vsel %vm1070_vm7, %v4433_v22, 0.0  ;;  %v1226_v52 = vpack.c.bf16 %v4433_v22, %v4423_v53  ;;  %1387 = vmatpush.bf16.msrb.mxu2 %v4176_v42 }
 0x30f   : > { %1285 = vadd.xlane.f32.xlu1 %v1284_v27  ;;  %1221 = vadd.xlane.f32.xlu0 %v1220_v10 }
 0x311   : > { %1288 = vadd.xlane.f32.xlu2 %v1287_v31 }
 0x312   : > { %1388 = vmatpush.bf16.msrb.mxu2 %v4175_v48 }
 0x313   : > { %3539 = vmatmul.msk.bf16.vlgmr.msra.gmra.mxu1 %vm1070_vm7, %v1293_v16 }
 0x316   : > { %1389 = vmatpush.bf16.msrb.mxu2 %v4174_v20 }
 0x318   : > { %3537 = vmatmul.msk.bf16.vlgmr.msrb.gmra.mxu3 %vm1070_vm7, %v1226_v52 }
 0x36c   : > { %v1152_v15 = vpop.xlane.xlu0 %1151 }
 0x36d   : > { %4434 = vrcp.f32 %v1152_v15 }
 0x372   : > { %v1085_v56 = vpop.xlane.xlu1 %1084 }
 0x373   : > { %4436 = vrcp.f32 %v1085_v56  ;;  %v4435_v36 = vpop.eup %4434 }
 0x374   : > { %v1219_v53 = vpop.xlane.xlu2 %1218 }
 0x375   : > { %4438 = vrcp.f32 %v1219_v53 }
 0x379   : > { %v4437_v57 = vpop.eup %4436 }
 0x37a   : > { %v1155_v7 = vpop.xlane.xlu1 %1154 }
 0x37b   : > { %v4439_v60 = vpop.eup %4438 }
 0x37c   : > { %v1088_v47 = vpop.xlane.xlu2 %1087 }
 0x37d   : > { %4440 = vrcp.f32 %v1088_v47 }
 0x37e   : > { %4442 = vrcp.f32 %v1155_v7 }
 0x380   : > { %v1172_v55 = vpop.f32.mrf.mxu1 }
 0x381   : > { %v1179_v10 = vmul.f32 %v4435_v36, %v1172_v55 }
 0x382   : > { %v1222_v14 = vpop.xlane.xlu0 %1221  ;;  %v1286_v45 = vpop.xlane.xlu1 %1285 }
 0x383   : > { %4444 = vrcp.f32 %v1222_v14  ;;  %v4441_v27 = vpop.eup %4440 }
 0x384   : > { %v1289_v46 = vpop.xlane.xlu2 %1288  ;;  %v4443_v52 = vpop.eup %4442 }
 0x385   : > { %4446 = vrcp.f32 %v1289_v46 }
 0x386   : > { %4448 = vrcp.f32 %v1286_v45  ;;  %v3686_v45 = vld [vmem:[#allocation7 + $0xe0] sm:$0xf] }
 0x388   : > { %v1174_v6 = vpop.f32.mrf.mxu1 }
 0x389   : > { %v1180_v51 = vmul.f32 %v4443_v52, %v1174_v6  ;;  %v4445_v61 = vpop.eup %4444  ;;  %v4211_v52 = vld [vmem:[#allocation7 + $0xec] sm:$0xf] }
 0x38b   : > { %v1105_v0 = vpop.f32.mrf.mxu3  ;;  %v4447_v42 = vpop.eup %4446 }
 0x38c   : > { %v1112_v22 = vmul.f32 %v4437_v57, %v1105_v0  ;;  %v4449_v20 = vpop.eup %4448  ;;  %v4212_v57 = vld [vmem:[#allocation7 + $0xec] sm:$0xf0] }
 0x38e   : > { %v1181_v21 = vadd.f32 %v1179_v10, %v1112_v22  ;;  %v3687_v22 = vor.u32 %v4212_v57, %v3686_v45  ;;  %v3694_v10 = vld [vmem:[#allocation7 + $0xe8] sm:$0xf] }
 0x390   : > { %v1306_v9 = vpop.f32.mrf.mxu1  ;;  %1629 = vmatpush.bf16.msra.mxu3 %v3687_v22  ;;  %v3664_v22 = vld [vmem:[#allocation7 + $0xb8] sm:$0xf0] }
 0x391   : > { %v1313_v47 = vmul.f32 %v4449_v20, %v1306_v9 }
 0x393   : > { %v1107_v25 = vpop.f32.mrf.mxu3 }
 0x394   : > { %v1113_v31 = vmul.f32 %v4441_v27, %v1107_v25  ;;  %v3688_v27 = vld [vmem:[#allocation7 + $0xf0] sm:$0xf0] }
 0x396   : > { %v1182_v48 = vadd.f32 %v1180_v51, %v1113_v31  ;;  %v3696_v51 = vld [vmem:[#allocation7 + $0xf8] sm:$0xf0] }
 0x398   : > { %v1308_v29 = vpop.f32.mrf.mxu1 }
 0x399   : > { %v1314_v15 = vmul.f32 %v4447_v42, %v1308_v29  ;;  %v4206_v29 = vld [vmem:[#allocation7 + $0xc4] sm:$0xf]  ;;  %v3672_v42 = vld [vmem:[#allocation7 + $0xd0] sm:$0xf0] }
 0x39b   : > { %v1239_v41 = vpop.f32.mrf.mxu3 }
 0x39c   : > { %v1246_v16 = vmul.f32 %v4439_v60, %v1239_v41  ;;  %v4210_v60 = vld [vmem:[#allocation7 + $0xe4] sm:$0xf] }
 0x39d   : > { %v3691_v31 = vor.u32 %v4210_v60, %v3688_v27  ;;  %v4203_v60 = vld [vmem:[#allocation7 + $0xac] sm:$0xf] }
 0x39e   : > { %v1248_v53 = vadd.f32 %v1246_v16, %v1181_v21  ;;  %v3699_v21 = vor.u32 %v4211_v52, %v3696_v51  ;;  %v3667_v27 = vor.u32 %v4203_v60, %v3664_v22  ;;  %v3640_v52 = vld [vmem:[#allocation7 + $0x90] sm:$0xf0]  ;;  %v3646_v51 = vld [vmem:[#allocation7 + $0x88] sm:$0xf] }
 0x39f   : > { %1643 = vmatpush.bf16.msrb.mxu0 %v3691_v31  ;;  %v4198_v31 = vld [vmem:[#allocation7 + $0x84] sm:$0xf]  ;;  %v3608_v60 = vld [vmem:[#allocation7 + $0x50] sm:$0xf0]  ;;  %v3614_v22 = vld [vmem:[#allocation7 + $0x48] sm:$0xf] }
 0x3a0   : > { %v1315_v0 = vadd.f32 %v1313_v47, %v1248_v53  ;;  %1671 = vmatpush.bf16.msra.mxu2 %v3699_v21  ;;  %v4209_v53 = vld [vmem:[#allocation7 + $0xd4] sm:$0xf0]  ;;  %v4207_v47 = vld [vmem:[#allocation7 + $0xcc] sm:$0xf] }
 0x3a1   : > { %v4201_v21 = vld [vmem:[#allocation7 + $0x94] sm:$0xf0] }
 0x3a3   : > { %v1241_v32 = vpop.f32.mrf.mxu3 }
 0x3a4   : > { %v1247_v56 = vmul.f32 %v4445_v61, %v1241_v32  ;;  %v4208_v61 = vld [vmem:[#allocation7 + $0xcc] sm:$0xf0] }
 0x3a6   : > { %v1249_v7 = vadd.f32 %v1247_v56, %v1182_v48  ;;  %v3678_v48 = vld [vmem:[#allocation7 + $0xc8] sm:$0xf]  ;;  %v3675_v56 = vor.u32 %v4206_v29, %v3672_v42  ;;  %v4199_v29 = vld [vmem:[#allocation7 + $0x8c] sm:$0xf] }
 0x3a7   : > { %v3679_v20 = vor.u32 %v4209_v53, %v3678_v48  ;;  %v3622_v48 = vld [vmem:[#allocation7 + $0x60] sm:$0xf]  ;;  %v4196_v53 = vld [vmem:[#allocation7 + $0x6c] sm:$0xf0] }
 0x3a8   : > { %v1316_v14 = vadd.f32 %v1314_v15, %v1249_v7  ;;  %v3680_v15 = vld [vmem:[#allocation7 + $0xd8] sm:$0xf0]  ;;  %1644 = vmatpush.bf16.msrb.mxu0 %v3675_v56  ;;  %v4194_v56 = vld [vmem:[#allocation7 + $0x64] sm:$0xf] }
 0x3a9   : > { %v3683_v7 = vor.u32 %v4207_v47, %v3680_v15  ;;  %v3624_v47 = vld [vmem:[#allocation7 + $0x70] sm:$0xf0]  ;;  %v3630_v15 = vld [vmem:[#allocation7 + $0x68] sm:$0xf] }
 0x3aa   : > { %v1317_v46 = vpack.c.bf16 %v1316_v14, %v1315_v0  ;;  %v3654_v0 = vld [vmem:[#allocation7 + $0xa0] sm:$0xf]  ;;  %v4204_v14 = vld [vmem:[#allocation7 + $0xac] sm:$0xf0] }
 0x3ab   : > { %1672 = vmatpush.bf16.msra.mxu2 %v3683_v7  ;;  %v4197_v7 = vld [vmem:[#allocation7 + $0x74] sm:$0xf0] }
 0x3ac   : > { %1390 = vmatmul.bf16.vlgmr.msrb.gmra.mxu2 %v1317_v46  ;;  %v4202_v46 = vld [vmem:[#allocation7 + $0xa4] sm:$0xf] }
 0x3af   : > { %1673 = vmatpush.bf16.msra.mxu2 %v3667_v27  ;;  %v4193_v27 = vld [vmem:[#allocation7 + $0x54] sm:$0xf0] }
 0x42f   : > { %v1391_v55 = vpop.f32.mrf.mxu2 }
 0x430   : > { %v5162_v25 = vadd.f32 %v4927_v1, %v1391_v55  ;;  %v4213_v1 = vld [vmem:[#allocation7 + $0xf4] sm:$0xf0]  ;;  %v3655_v55 = vor.u32 %v4204_v14, %v3654_v0  ;;  %v3627_v0 = vor.u32 %v4194_v56, %v3624_v47  ;;  %v3631_v14 = vor.u32 %v4197_v7, %v3630_v15  ;;  %v4187_v56 = vld [vmem:[#allocation7 + $0x2c] sm:$0xf]  ;;  %v3574_v47 = vld [vmem:[#allocation7] sm:$0xf] }
 0x431   : > { %v3695_v16 = vor.u32 %v4213_v1, %v3694_v10  ;;  %v3638_v10 = vld [vmem:[#allocation7 + $0x80] sm:$0xf]  ;;  %v4200_v1 = vld [vmem:[#allocation7 + $0x8c] sm:$0xf0] }
 0x432   : > { %v1399_v6 = vmul.f32 %v5162_v25, %v5162_v25 }
 0x433   : > { %1657 = vmatpush.bf16.msrb.mxu1 %v3695_v16  ;;  %v3639_v16 = vor.u32 %v4200_v1, %v3638_v10  ;;  %v3615_v1 = vor.u32 %v4193_v27, %v3614_v22  ;;  %v3584_v22 = vld [vmem:[#allocation7 + $0x18] sm:$0xf0] }
 0x434   : > { %1401 = vadd.xlane.f32.xlu0 %v1399_v6  ;;  %v3656_v6 = vld [vmem:[#allocation7 + $0xb0] sm:$0xf0] }
 0x435   : > { %v3659_v45 = vor.u32 %v4202_v46, %v3656_v6  ;;  %v4195_v46 = vld [vmem:[#allocation7 + $0x6c] sm:$0xf] }
 0x437   : > { %v1393_v41 = vpop.f32.mrf.mxu2  ;;  %1658 = vmatpush.bf16.msrb.mxu1 %v3679_v20  ;;  %1645 = vmatpush.bf16.msrb.mxu0 %v3659_v45  ;;  %v3623_v20 = vor.u32 %v4196_v53, %v3622_v48  ;;  %v4190_v45 = vld [vmem:[#allocation7 + $0x44] sm:$0xf] }
 0x438   : > { %v5167_v36 = vadd.f32 %v4931_v3, %v1393_v41  ;;  %v3670_v3 = vld [vmem:[#allocation7 + $0xc0] sm:$0xf]  ;;  %v3662_v41 = vld [vmem:[#allocation7 + $0xa8] sm:$0xf]  ;;  %v3611_v10 = vor.u32 %v4190_v45, %v3608_v60  ;;  %v4185_v45 = vld [vmem:[#allocation7 + $0x14] sm:$0xf0] }
 0x439   : > { %v3671_v32 = vor.u32 %v4208_v61, %v3670_v3  ;;  %v3643_v3 = vor.u32 %v4198_v31, %v3640_v52  ;;  %v3647_v61 = vor.u32 %v4201_v21, %v3646_v51  ;;  %v4191_v31 = vld [vmem:[#allocation7 + $0x4c] sm:$0xf]  ;;  %v3590_v51 = vld [vmem:[#allocation7 + $0x20] sm:$0xf]  ;;  %v4188_v21 = vld [vmem:[#allocation7 + $0x2c] sm:$0xf0] }
 0x43a   : > { %v1400_v9 = vmul.f32 %v5167_v36, %v5167_v36 }
 0x43b   : > { %1630 = vmatpush.bf16.msra.mxu3 %v3671_v32  ;;  %v3648_v32 = vld [vmem:[#allocation7 + $0x98] sm:$0xf0]  ;;  %1646 = vmatpush.bf16.msrb.mxu0 %v3643_v3  ;;  %v4186_v3 = vld [vmem:[#allocation7 + $0x24] sm:$0xf] }
 0x43c   : > { %1403 = vadd.xlane.f32.xlu1 %v1400_v9  ;;  %v4205_v9 = vld [vmem:[#allocation7 + $0xb4] sm:$0xf0]  ;;  %v3651_v42 = vor.u32 %v4199_v29, %v3648_v32  ;;  %v3592_v29 = vld [vmem:[#allocation7 + $0x30] sm:$0xf0]  ;;  %v3598_v32 = vld [vmem:[#allocation7 + $0x28] sm:$0xf] }
 0x43d   : > { %v3663_v57 = vor.u32 %v4205_v9, %v3662_v41  ;;  %v3606_v41 = vld [vmem:[#allocation7 + $0x40] sm:$0xf]  ;;  %v4192_v9 = vld [vmem:[#allocation7 + $0x4c] sm:$0xf0]  ;;  %v3595_v48 = vor.u32 %v4186_v3, %v3592_v29 }
 0x43e   : > { %1674 = vmatpush.bf16.msra.mxu2 %v3651_v42  ;;  %v4189_v42 = vld [vmem:[#allocation7 + $0x34] sm:$0xf0] }
 0x43f   : > { %1631 = vmatpush.bf16.msra.mxu3 %v3655_v55  ;;  %1659 = vmatpush.bf16.msrb.mxu1 %v3663_v57  ;;  %v3632_v55 = vld [vmem:[#allocation7 + $0x78] sm:$0xf0]  ;;  %v3607_v57 = vor.u32 %v4192_v9, %v3606_v41  ;;  %v3599_v53 = vor.u32 %v4189_v42, %v3598_v32  ;;  %v3582_v9 = vld [vmem:[#allocation7 + $0x8] sm:$0xf] }
 0x440   : > { %v3635_v6 = vor.u32 %v4195_v46, %v3632_v55  ;;  %1647 = vmatpush.bf16.msrb.mxu0 %v3627_v0  ;;  %v4184_v0 = vld [vmem:[#allocation7 + $0xc] sm:$0xf0]  ;;  %v3576_v46 = vld [vmem:[#allocation7 + $0x10] sm:$0xf0]  ;;  %v3583_v60 = vor.u32 %v4185_v45, %v3582_v9  ;;  %v4221_v45 = vld [vmem:[#allocation8 + $0x38] sm:$0xff] }
 0x441   : > { %v4228_v9 = vld [vmem:[#allocation8 + $0x70] sm:$0xff] }
 0x442   : > { %1675 = vmatpush.bf16.msra.mxu2 %v3635_v6  ;;  %v3575_v6 = vor.u32 %v4184_v0, %v3574_v47 }
 0x443   : > { %1632 = vmatpush.bf16.msra.mxu3 %v3639_v16  ;;  %1660 = vmatpush.bf16.msrb.mxu1 %v3647_v61  ;;  %v3616_v16 = vld [vmem:[#allocation7 + $0x58] sm:$0xf0]  ;;  %v3591_v61 = vor.u32 %v4188_v21, %v3590_v51 }
 0x444   : > { %v3619_v52 = vor.u32 %v4191_v31, %v3616_v16  ;;  %1648 = vmatpush.bf16.msrb.mxu0 %v3611_v10 }
 0x446   : > { %1676 = vmatpush.bf16.msra.mxu2 %v3619_v52 }
 0x447   : > { %1633 = vmatpush.bf16.msra.mxu3 %v3623_v20  ;;  %1661 = vmatpush.bf16.msrb.mxu1 %v3631_v14  ;;  %v3600_v20 = vld [vmem:[#allocation7 + $0x38] sm:$0xf0]  ;;  %v4182_v14 = vld [vmem:[#allocation7 + $0x4] sm:$0xf] }
 0x448   : > { %v3603_v7 = vor.u32 %v4187_v56, %v3600_v20  ;;  %1649 = vmatpush.bf16.msrb.mxu0 %v3595_v48  ;;  %v3579_v41 = vor.u32 %v4182_v14, %v3576_v46 }
 0x44a   : > { %1677 = vmatpush.bf16.msra.mxu2 %v3603_v7  ;;  %v4408_v7 = vld [vmem:[%s5477_s11] ss:$0 sm:$0xff] }
 0x44b   : > { %1634 = vmatpush.bf16.msra.mxu3 %v3607_v57  ;;  %1662 = vmatpush.bf16.msrb.mxu1 %v3615_v1  ;;  %v4183_v57 = vld [vmem:[#allocation7 + $0xc] sm:$0xf] }
 0x44c   : > { %v3587_v10 = vor.u32 %v4183_v57, %v3584_v22  ;;  %1650 = vmatpush.bf16.msrb.mxu0 %v3579_v41  ;;  %v4229_v41 = vld [vmem:[#allocation8 + $0x78] sm:$0xff]  ;;  %v4227_v57 = vld [vmem:[#allocation8 + $0x68] sm:$0xff]  ;;  %v4226_v22 = vld [vmem:[#allocation8 + $0x60] sm:$0xff] }
 0x44e   : > { %1678 = vmatpush.bf16.msra.mxu2 %v3587_v10  ;;  %v4225_v10 = vld [vmem:[#allocation8 + $0x58] sm:$0xff] }
 0x44f   : > { %1635 = vmatpush.bf16.msra.mxu3 %v3591_v61  ;;  %1663 = vmatpush.bf16.msrb.mxu1 %v3599_v53 }
 0x450   : > { %1913 = vmatpush.bf16.msra.mxu0 %v4229_v41 }
 0x453   : > { %1636 = vmatpush.bf16.msra.mxu3 %v3575_v6  ;;  %1664 = vmatpush.bf16.msrb.mxu1 %v3583_v60  ;;  %v4220_v60 = vld [vmem:[#allocation8 + $0x30] sm:$0xff] }
 0x454   : > { %1914 = vmatpush.bf16.msra.mxu0 %v4228_v9 }
 0x457   : > { %1899 = vmatpush.bf16.msrb.mxu3 %v4221_v45 }
 0x458   : > { %1915 = vmatpush.bf16.msra.mxu0 %v4227_v57 }
 0x45b   : > { %1900 = vmatpush.bf16.msrb.mxu3 %v4220_v60 }
 0x45c   : > { %1916 = vmatpush.bf16.msra.mxu0 %v4226_v22 }
 0x460   : > { %1917 = vmatpush.bf16.msra.mxu0 %v4225_v10 }
 0x4a7   : > { %v1402_v15 = vpop.xlane.xlu0 %1401 }
 0x4a8   : > { %v1405_v55 = vmul.f32 %v1402_v15, %v4942_v12 }
 0x4aa   : > { %v1407_v27 = vadd.f32 1e-06, %v1405_v55 }
 0x4ac   : > { %4450 = vrsqrt.f32 %v1407_v27  ;;  %vm1415_vm9 = vweird.f32 %v1407_v27 }
 0x4af   : > { %v1404_v1 = vpop.xlane.xlu1 %1403 }
 0x4b0   : > { %v1406_v31 = vmul.f32 %v1404_v1, %v4942_v12  ;;  %v4218_v1 = vld [vmem:[#allocation8 + $0x20] sm:$0xff] }
 0x4b2   : > { %v4451_v16 = vpop.eup %4450  ;;  %v1408_v52 = vadd.f32 1e-06, %v1406_v31 }
 0x4b3   : > { %v1410_v51 = vmul.f32 %v4451_v16, %v1407_v27  ;;  %vm1416_vm8 = vweird.f32 %v4451_v16  ;;  %v4219_v27 = vld [vmem:[#allocation8 + $0x28] sm:$0xff] }
 0x4b4   : > { %4452 = vrsqrt.f32 %v1408_v52  ;;  %vm1417_vm10 = vmor %vm1415_vm9, %vm1416_vm8  ;;  %vm1425_vm12 = vweird.f32 %v1408_v52  ;;  %1901 = vmatpush.bf16.msrb.mxu3 %v4219_v27 }
 0x4b5   : > { %v1411_v21 = vmul.f32 %v4451_v16, %v1410_v51  ;;  %v4217_v51 = vld [vmem:[#allocation8 + $0x18] sm:$0xff] }
 0x4b7   : > { %v1412_v3 = vmul.f32 0.5, %v1411_v21  ;;  %v4223_v21 = vld [vmem:[#allocation8 + $0x48] sm:$0xff] }
 0x4b8   : > { %1902 = vmatpush.bf16.msrb.mxu3 %v4218_v1 }
 0x4b9   : > { %v1413_v61 = vsub.f32 1.5, %v1412_v3 }
 0x4ba   : > { %v4453_v29 = vpop.eup %4452 }
 0x4bb   : > { %v1420_v32 = vmul.f32 %v4453_v29, %v1408_v52  ;;  %v1414_v42 = vmul.f32 %v4451_v16, %v1413_v61  ;;  %vm1426_vm11 = vweird.f32 %v4453_v29  ;;  %v4216_v61 = vld [vmem:[#allocation8 + $0x10] sm:$0xff] }
 0x4bc   : > { %vm1427_vm13 = vmor %vm1425_vm12, %vm1426_vm11  ;;  %1903 = vmatpush.bf16.msrb.mxu3 %v4217_v51 }
 0x4bd   : > { %v1421_v48 = vmul.f32 %v4453_v29, %v1420_v32  ;;  %v1418_v56 = vsel %vm1417_vm10, %v4451_v16, %v1414_v42  ;;  %v4224_v16 = vld [vmem:[#allocation8 + $0x50] sm:$0xff]  ;;  %v4222_v42 = vld [vmem:[#allocation8 + $0x40] sm:$0xff] }
 0x4be   : > { %v1429_v15 = vmul.f32 %v1418_v56, %v5162_v25  ;;  %1918 = vmatpush.bf16.msra.mxu0 %v4224_v16 }
 0x4bf   : > { %v1422_v53 = vmul.f32 0.5, %v1421_v48 }
 0x4c0   : > { %v1434_v46 = vmul.f32 %v4408_v7, %v1429_v15  ;;  %1904 = vmatpush.bf16.msrb.mxu3 %v4216_v61  ;;  %v4214_v15 = vld [vmem:[#allocation8] sm:$0xff] }
 0x4c1   : > { %v1423_v20 = vsub.f32 1.5, %v1422_v53 }
 0x4c2   : > { %1919 = vmatpush.bf16.msra.mxu0 %v4223_v21 }
 0x4c3   : > { %v1424_v47 = vmul.f32 %v4453_v29, %v1423_v20  ;;  %v4215_v20 = vld [vmem:[#allocation8 + $0x8] sm:$0xff] }
 0x4c4   : > { %1905 = vmatpush.bf16.msrb.mxu3 %v4215_v20 }
 0x4c5   : > { %v1428_v0 = vsel %vm1427_vm13, %v4453_v29, %v1424_v47 }
 0x4c6   : > { %v1430_v14 = vmul.f32 %v1428_v0, %v5167_v36  ;;  %1920 = vmatpush.bf16.msra.mxu0 %v4222_v42 }
 0x4c8   : > { %v1435_v55 = vmul.f32 %v4408_v7, %v1430_v14  ;;  %1906 = vmatpush.bf16.msrb.mxu3 %v4214_v15 }
 0x4ca   : > { %v1436_v6 = vpack.c.bf16 %v1435_v55, %v1434_v46 }
 0x4cc   : > { %1637 = vmatmul.bf16.vlgmr.msra.gmra.mxu3 %v1436_v6  ;;  %1651 = vmatmul.bf16.vlgmr.msrb.gmra.mxu0 %v1436_v6 }
 0x4cd   : > { %1665 = vmatmul.bf16.vlgmr.msrb.gmra.mxu1 %v1436_v6  ;;  %1679 = vmatmul.bf16.vlgmr.msra.gmra.mxu2 %v1436_v6 }
 0x4ce   : > { %2178 = vmatpush.bf16.msrb.mxu0 %v4948_v28 }
 0x4d2   : > { %2179 = vmatpush.bf16.msrb.mxu0 %v4960_v43 }
 0x4d6   : > { %2180 = vmatpush.bf16.msrb.mxu0 %v4977_v58 }
 0x4da   : > { %2181 = vmatpush.bf16.msrb.mxu0 %v4990_v13 }
 0x4de   : > { %2182 = vmatpush.bf16.msrb.mxu0 %v5004_v35 }
 0x4e2   : > { %2183 = vmatpush.bf16.msrb.mxu0 %v5028_v49 }
 0x4e6   : > { %2184 = vmatpush.bf16.msrb.mxu0 %v5039_v11 }
 0x4ea   : > { %2185 = vmatpush.bf16.msrb.mxu0 %v5052_v30 }
 0x549   : > { %v5178_v31 = vpop.f32.mrf.mxu0 }
 0x54a   : > { %v3701_v52 = vmul.f32 -1.442695, %v5178_v31 }
 0x54c   : > { %4454 = vpow2.f32 %v3701_v52 }
 0x54f   : > { %v5181_v3 = vpop.f32.mrf.mxu3 }
 0x550   : > { %v3700_v29 = vmul.f32 -1.442695, %v5181_v3  ;;  %v1680_v51 = vpop.f32.mrf.mxu2 }
 0x551   : > { %v5184_v32 = vpop.f32.mrf.mxu0 }
 0x552   : > { %v4455_v48 = vpop.eup %4454  ;;  %4456 = vpow2.f32 %v3700_v29  ;;  %v3703_v53 = vmul.f32 -1.442695, %v5184_v32 }
 0x553   : > { %v1698_v56 = vadd.f32 1.0, %v4455_v48 }
 0x554   : > { %4458 = vpow2.f32 %v3703_v53 }
 0x555   : > { %4460 = vrcp.f32 %v1698_v56  ;;  %v1727_v27 = vand.u32 2147483648, %v1698_v56  ;;  %vm1721_vm15 = vweird.f32 %v1698_v56  ;;  %v1725_v58 = vand.u32 2147483647, %v1698_v56 }
 0x557   : > { %v5188_v47 = vpop.f32.mrf.mxu3  ;;  %v1728_v61 = vor.u32 1.1754944e-38, %v1727_v27  ;;  %vm1726_vm2 = vcmp.eq.f32.partialorder %v1725_v58, 8.507059e+37 }
 0x558   : > { %v4457_v7 = vpop.eup %4456  ;;  %v3702_v0 = vmul.f32 -1.442695, %v5188_v47  ;;  %v1682_v11 = vpop.f32.mrf.mxu2 }
 0x559   : > { %v1697_v14 = vadd.f32 1.0, %v4457_v7 }
 0x55a   : > { %v4459_v46 = vpop.eup %4458  ;;  %4462 = vpow2.f32 %v3702_v0 }
 0x55b   : > { %v4461_v55 = vpop.eup %4460  ;;  %4464 = vrcp.f32 %v1697_v14  ;;  %v1700_v41 = vadd.f32 1.0, %v4459_v46  ;;  %v1710_v29 = vand.u32 2147483647, %v1697_v14  ;;  %v1712_v53 = vand.u32 2147483648, %v1697_v14  ;;  %v1666_v46 = vpop.f32.mrf.mxu1 }
 0x55c   : > { %v1717_v6 = vmul.f32 %v4461_v55, %v1698_v56  ;;  %vm1722_vm14 = vweird.f32 %v4461_v55  ;;  %vm1706_vm4 = vweird.f32 %v1697_v14 }
 0x55d   : > { %4466 = vrcp.f32 %v1700_v41  ;;  %vm5198_vm0 = vmor %vm1721_vm15, %vm1722_vm14  ;;  %v1757_v20 = vand.u32 2147483648, %v1700_v41  ;;  %v1755_v15 = vand.u32 2147483647, %v1700_v41  ;;  %vm5210_vm6 = vcmp.eq.f32.partialorder %v1710_v29, 8.507059e+37 }
 0x55e   : > { %v1718_v28 = vsub.f32 1.0, %v1717_v6  ;;  %vm1751_vm8 = vweird.f32 %v1700_v41  ;;  %v4252_v6 = vld [vmem:[#allocation5 + $0x170] sm:$0xf0] }
 0x55f   : > { %vm1756_vm10 = vcmp.eq.f32.partialorder %v1755_v15, 8.507059e+37 }
 0x560   : > { %v4463_v9 = vpop.eup %4462  ;;  %v1719_v45 = vmul.f32 %v4461_v55, %v1718_v28 }
 0x561   : > { %v4465_v57 = vpop.eup %4464  ;;  %v5194_v60 = vadd.f32 1.0, %v4463_v9  ;;  %v1713_v9 = vor.u32 1.1754944e-38, %v1712_v53 }
 0x562   : > { %v1702_v43 = vmul.f32 %v4465_v57, %v1697_v14  ;;  %v1720_v22 = vadd.f32 %v4461_v55, %v1719_v45  ;;  %vm1707_vm1 = vweird.f32 %v4465_v57  ;;  %v1758_v45 = vor.u32 1.1754944e-38, %v1757_v20 }
 0x563   : > { %4468 = vrcp.f32 %v5194_v60  ;;  %v4467_v10 = vpop.eup %4466  ;;  %vm5206_vm5 = vmor %vm1706_vm4, %vm1707_vm1  ;;  %v1742_v27 = vand.u32 2147483648, %v5194_v60  ;;  %vm1736_vm12 = vweird.f32 %v5194_v60  ;;  %v1668_v53 = vpop.f32.mrf.mxu1 }
 0x564   : > { %v1703_v1 = vsub.f32 1.0, %v1702_v43  ;;  %v1747_v16 = vmul.f32 %v4467_v10, %v1700_v41  ;;  %v1724_v21 = vsel %vm5198_vm0, %v4461_v55, %v1720_v22  ;;  %vm1752_vm3 = vweird.f32 %v4467_v10  ;;  %v3855_v55 = vld [vmem:[#allocation5 + $0x168] sm:$0xf] }
 0x565   : > { %v1729_v7 = vsel %vm1726_vm2, %v1728_v61, %v1724_v21  ;;  %vm1753_vm9 = vmor %vm1751_vm8, %vm1752_vm3  ;;  %v1740_v41 = vand.u32 2147483647, %v5194_v60 }
 0x566   : > { %v1704_v13 = vmul.f32 %v4465_v57, %v1703_v1  ;;  %v1748_v42 = vsub.f32 1.0, %v1747_v16  ;;  %v1762_v43 = vmul.f32 %v1729_v7, %v5178_v31 }
 0x567   : > { %vm1741_vm14 = vcmp.eq.f32.partialorder %v1740_v41, 8.507059e+37  ;;  %v3851_v41 = vld [vmem:[#allocation5 + $0x158] sm:$0xf] }
 0x568   : > { %v1705_v48 = vadd.f32 %v4465_v57, %v1704_v13  ;;  %v1749_v56 = vmul.f32 %v4467_v10, %v1748_v42  ;;  %v1766_v31 = vmul.f32 %v1762_v43, %v1680_v51 }
 0x569   : > { %v4469_v35 = vpop.eup %4468 }
 0x56a   : > { %v1732_v0 = vmul.f32 %v4469_v35, %v5194_v60  ;;  %v1750_v28 = vadd.f32 %v4467_v10, %v1749_v56  ;;  %v1709_v49 = vsel %vm5206_vm5, %v4465_v57, %v1705_v48  ;;  %vm1737_vm11 = vweird.f32 %v4469_v35 }
 0x56b   : > { %v1714_v57 = vsel %vm5210_vm6, %v1713_v9, %v1709_v49  ;;  %vm1738_vm13 = vmor %vm1736_vm12, %vm1737_vm11  ;;  %v3856_v49 = vor.u32 %v4252_v6, %v3855_v55  ;;  %v3863_v9 = vld [vmem:[#allocation5 + $0x170] sm:$0xf]  ;;  %v3809_v6 = vld [vmem:[#allocation5 + $0x114] sm:$0xf0] }
 0x56c   : > { %v1733_v14 = vsub.f32 1.0, %v1732_v0  ;;  %v1754_v22 = vsel %vm1753_vm9, %v4467_v10, %v1750_v28  ;;  %v1743_v10 = vor.u32 1.1754944e-38, %v1742_v27  ;;  %v1761_v21 = vmul.f32 %v1714_v57, %v5181_v3  ;;  %v4251_v28 = vld [vmem:[#allocation5 + $0x16c] sm:$0xf]  ;;  %v4249_v27 = vld [vmem:[#allocation5 + $0x158] sm:$0xf0] }
 0x56d   : > { %v1759_v1 = vsel %vm1756_vm10, %v1758_v45, %v1754_v22  ;;  %v4253_v45 = vld [vmem:[#allocation5 + $0x178] sm:$0xf0]  ;;  %2130 = vmatpush.bf16.msra.mxu1 %v3856_v49  ;;  %v3843_v22 = vld [vmem:[#allocation5 + $0x150] sm:$0xf]  ;;  %v4250_v57 = vld [vmem:[#allocation5 + $0x160] sm:$0xf0] }
 0x56e   : > { %v1734_v58 = vmul.f32 %v4469_v35, %v1733_v14  ;;  %v1764_v16 = vmul.f32 %v1759_v1, %v5184_v32  ;;  %v1765_v32 = vmul.f32 %v1761_v21, %v1666_v46  ;;  %v3864_v43 = vor.u32 %v4253_v45, %v3863_v9  ;;  %v3833_v21 = vld [vmem:[#allocation5 + $0x144] sm:$0xf0]  ;;  %v4241_v49 = vld [vmem:[#allocation5 + $0x118] sm:$0xf0]  ;;  %v3795_v45 = vld [vmem:[#allocation5 + $0xf0] sm:$0xf] }
 0x56f   : > { %v3844_v1 = vor.u32 %v4249_v27, %v3843_v22  ;;  %v3797_v27 = vld [vmem:[#allocation5 + $0xfc] sm:$0xf0] }
 0x570   : > { %v1735_v52 = vadd.f32 %v4469_v35, %v1734_v58  ;;  %v1768_v13 = vmul.f32 %v1764_v16, %v1682_v11  ;;  %2158 = vmatpush.bf16.msra.mxu3 %v3864_v43  ;;  %v3845_v58 = vld [vmem:[#allocation5 + $0x15c] sm:$0xf0]  ;;  %v3831_v11 = vld [vmem:[#allocation5 + $0x138] sm:$0xf]  ;;  %v4236_v43 = vld [vmem:[#allocation5 + $0xf4] sm:$0xf] }
 0x571   : > { %2131 = vmatpush.bf16.msra.mxu1 %v3844_v1  ;;  %v4238_v1 = vld [vmem:[#allocation5 + $0x100] sm:$0xf0] }
 0x572   : > { %v1739_v61 = vsel %vm1738_vm13, %v4469_v35, %v1735_v52  ;;  %v1770_v42 = vpack.c.bf16 %v1768_v13, %v1766_v31  ;;  %v3852_v52 = vor.u32 %v4250_v57, %v3851_v41  ;;  %v4246_v31 = vld [vmem:[#allocation5 + $0x140] sm:$0xf0]  ;;  %v3783_v57 = vld [vmem:[#allocation5 + $0xd8] sm:$0xf] }
 0x573   : > { %v1744_v29 = vsel %vm1741_vm14, %v1743_v10, %v1739_v61  ;;  %v4245_v10 = vld [vmem:[#allocation5 + $0x13c] sm:$0xf]  ;;  %v3832_v13 = vor.u32 %v4246_v31, %v3831_v11  ;;  %v3839_v61 = vld [vmem:[#allocation5 + $0x140] sm:$0xf]  ;;  %v3785_v31 = vld [vmem:[#allocation5 + $0xe4] sm:$0xf0] }
 0x574   : > { %v1763_v48 = vmul.f32 %v1744_v29, %v5188_v47  ;;  %1921 = vmatmul.bf16.vlgmr.msra.gmra.mxu0 %v1770_v42  ;;  %2159 = vmatpush.bf16.msra.mxu3 %v3852_v52  ;;  %v4247_v29 = vld [vmem:[#allocation5 + $0x148] sm:$0xf0]  ;;  %v3836_v42 = vor.u32 %v4245_v10, %v3833_v21  ;;  %v4233_v52 = vld [vmem:[#allocation5 + $0xdc] sm:$0xf]  ;;  %v3791_v10 = vld [vmem:[#allocation5 + $0xe0] sm:$0xf] }
 0x575   : > { %2132 = vmatpush.bf16.msra.mxu1 %v3832_v13  ;;  %v4235_v13 = vld [vmem:[#allocation5 + $0xe8] sm:$0xf0]  ;;  %v3788_v21 = vor.u32 %v4233_v52, %v3785_v31 }
 0x576   : > { %v1767_v20 = vmul.f32 %v1763_v48, %v1668_v53  ;;  %v3840_v48 = vor.u32 %v4247_v29, %v3839_v61  ;;  %v3819_v53 = vld [vmem:[#allocation5 + $0x120] sm:$0xf]  ;;  %v3792_v61 = vor.u32 %v4235_v13, %v3791_v10 }
 0x577   : > { %v3771_v29 = vld [vmem:[#allocation5 + $0xc0] sm:$0xf] }
 0x578   : > { %v1769_v60 = vpack.c.bf16 %v1767_v20, %v1765_v32  ;;  %2160 = vmatpush.bf16.msra.mxu3 %v3840_v48  ;;  %v4243_v32 = vld [vmem:[#allocation5 + $0x128] sm:$0xf0]  ;;  %v4242_v20 = vld [vmem:[#allocation5 + $0x124] sm:$0xf] }
 0x579   : > { %v4230_v48 = vld [vmem:[#allocation5 + $0xc4] sm:$0xf] }
 0x57a   : > { %1907 = vmatmul.bf16.vlgmr.msrb.gmra.mxu3 %v1769_v60  ;;  %v3820_v60 = vor.u32 %v4243_v32, %v3819_v53 }
 0x57c   : > { %2133 = vmatpush.bf16.msra.mxu1 %v3820_v60  ;;  %v3779_v60 = vld [vmem:[#allocation5 + $0xc8] sm:$0xf] }
 0x5f1   : > { %v1922_v56 = vpop.f32.mrf.mxu0 }
 0x5f9   : > { %v1924_v35 = vpop.f32.mrf.mxu0 }
 0x5fd   : > { %v1908_v30 = vpop.f32.mrf.mxu3 }
 0x5fe   : > { %v1923_v51 = vadd.f32 %v1922_v56, %v1908_v30  ;;  %v3821_v56 = vld [vmem:[#allocation5 + $0x12c] sm:$0xf0]  ;;  %v3827_v30 = vld [vmem:[#allocation5 + $0x128] sm:$0xf] }
 0x600   : > { %v5228_v15 = vadd.f32 %v1923_v51, %v5162_v25  ;;  %v3857_v25 = vld [vmem:[#allocation5 + $0x174] sm:$0xf0]  ;;  %v4244_v51 = vld [vmem:[#allocation5 + $0x130] sm:$0xf0] }
 0x601   : > { %v3860_v14 = vor.u32 %v4251_v28, %v3857_v25  ;;  %v3815_v28 = vld [vmem:[#allocation5 + $0x110] sm:$0xf] }
 0x602   : > { %v1931_v3 = vmul.f32 %v5228_v15, %v5228_v15  ;;  %v3816_v9 = vor.u32 %v4241_v49, %v3815_v28 }
 0x603   : > { %2144 = vmatpush.bf16.msrb.mxu2 %v3860_v14  ;;  %v4237_v14 = vld [vmem:[#allocation5 + $0xf8] sm:$0xf0] }
 0x604   : > { %1933 = vadd.xlane.f32.xlu2 %v1931_v3  ;;  %v3824_v3 = vor.u32 %v4242_v20, %v3821_v56  ;;  %v3796_v22 = vor.u32 %v4237_v14, %v3795_v45  ;;  %v3773_v20 = vld [vmem:[#allocation5 + $0xcc] sm:$0xf0]  ;;  %v4232_v56 = vld [vmem:[#allocation5 + $0xd0] sm:$0xf0] }
 0x605   : > { %v1910_v7 = vpop.f32.mrf.mxu3 }
 0x606   : > { %v1925_v0 = vadd.f32 %v1924_v35, %v1910_v7  ;;  %v3828_v35 = vor.u32 %v4244_v51, %v3827_v30  ;;  %v3807_v7 = vld [vmem:[#allocation5 + $0x108] sm:$0xf]  ;;  %v3776_v51 = vor.u32 %v4230_v48, %v3773_v20 }
 0x608   : > { %v5233_v47 = vadd.f32 %v1925_v0, %v5167_v36  ;;  %v4248_v36 = vld [vmem:[#allocation5 + $0x154] sm:$0xf]  ;;  %2161 = vmatpush.bf16.msra.mxu3 %v3828_v35 }
 0x609   : > { %v3848_v16 = vor.u32 %v4248_v36, %v3845_v58  ;;  %v4240_v0 = vld [vmem:[#allocation5 + $0x110] sm:$0xf0]  ;;  %v3803_v36 = vld [vmem:[#allocation5 + $0xf8] sm:$0xf]  ;;  %v3800_v58 = vor.u32 %v4236_v43, %v3797_v27  ;;  %v4532_v43 = vld [vmem:[%s5471_s5] ss:$0 sm:$0xff] }
 0x60a   : > { %v1932_v46 = vmul.f32 %v5233_v47, %v5233_v47  ;;  %v3808_v55 = vor.u32 %v4240_v0, %v3807_v7  ;;  %v3804_v41 = vor.u32 %v4238_v1, %v3803_v36  ;;  %v5277_v27 = vld [vmem:[%s5471_s5 + $0x1] ss:$0 sm:$0xff] }
 0x60b   : > { %2145 = vmatpush.bf16.msrb.mxu2 %v3848_v16  ;;  %v4234_v16 = vld [vmem:[#allocation5 + $0xe0] sm:$0xf0] }
 0x60c   : > { %1935 = vadd.xlane.f32.xlu0 %v1932_v46  ;;  %v4239_v46 = vld [vmem:[#allocation5 + $0x10c] sm:$0xf]  ;;  %2134 = vmatpush.bf16.msra.mxu1 %v3808_v55  ;;  %v3784_v11 = vor.u32 %v4234_v16, %v3783_v57 }
 0x60d   : > { %v3812_v25 = vor.u32 %v4239_v46, %v3809_v6  ;;  %2162 = vmatpush.bf16.msra.mxu3 %v3816_v9 }
 0x60f   : > { %2146 = vmatpush.bf16.msrb.mxu2 %v3836_v42  ;;  %v4231_v42 = vld [vmem:[#allocation5 + $0xc8] sm:$0xf0] }
 0x610   : > { %2135 = vmatpush.bf16.msra.mxu1 %v3796_v22  ;;  %v3772_v32 = vor.u32 %v4231_v42, %v3771_v29 }
 0x611   : > { %2163 = vmatpush.bf16.msra.mxu3 %v3804_v41  ;;  %v4534_v41 = vld [vmem:[%s5471_s5 + $0x2] ss:$0 sm:$0xff] }
 0x613   : > { %2147 = vmatpush.bf16.msrb.mxu2 %v3824_v3  ;;  %v3780_v3 = vor.u32 %v4232_v56, %v3779_v60 }
 0x614   : > { %2136 = vmatpush.bf16.msra.mxu1 %v3784_v11 }
 0x615   : > { %2164 = vmatpush.bf16.msra.mxu3 %v3792_v61 }
 0x617   : > { %2148 = vmatpush.bf16.msrb.mxu2 %v3812_v25  ;;  %v5519_v25 = vld [vmem:[#allocation24_spill] sm:$0xff] }
 0x618   : > { %2137 = vmatpush.bf16.msra.mxu1 %v3772_v32 }
 0x619   : > { %2165 = vmatpush.bf16.msra.mxu3 %v3780_v3 }
 0x61b   : > { %2149 = vmatpush.bf16.msrb.mxu2 %v3800_v58 }
 0x61c   : > { %2192 = vmatpush.bf16.msrb.mxu1 %v4950_v33 }
 0x61d   : > { %2220 = vmatpush.bf16.msrb.mxu3 %v4956_v39 }
 0x61f   : > { %2150 = vmatpush.bf16.msrb.mxu2 %v3788_v21 }
 0x620   : > { %2193 = vmatpush.bf16.msrb.mxu1 %v4962_v44 }
 0x621   : > { %2221 = vmatpush.bf16.msrb.mxu3 %v4973_v54 }
 0x623   : > { %2151 = vmatpush.bf16.msrb.mxu2 %v3776_v51  ;;  %v4535_v51 = vld [vmem:[%s5469_s3 + $0x8] sm:$0xff] }
 0x624   : > { %2194 = vmatpush.bf16.msrb.mxu1 %v4982_v62 }
 0x625   : > { %2222 = vmatpush.bf16.msrb.mxu3 %v4987_v5 }
 0x627   : > { %2206 = vmatpush.bf16.msra.mxu2 %v4952_v34 }
 0x628   : > { %2195 = vmatpush.bf16.msrb.mxu1 %v4994_v18 }
 0x629   : > { %2223 = vmatpush.bf16.msrb.mxu3 %v4999_v23  ;;  %v4409_v23 = vld [vmem:[%s5476_s10 + $0x1] ss:$0 sm:$0xff] }
 0x62b   : > { %2207 = vmatpush.bf16.msra.mxu2 %v4969_v50 }
 0x62c   : > { %2196 = vmatpush.bf16.msrb.mxu1 %v5009_v37 }
 0x62d   : > { %2224 = vmatpush.bf16.msrb.mxu3 %v5014_v40 }
 0x62f   : > { %2208 = vmatpush.bf16.msra.mxu2 %v4984_v63 }
 0x630   : > { %2197 = vmatpush.bf16.msrb.mxu1 %v5030_v2 }
 0x631   : > { %2225 = vmatpush.bf16.msrb.mxu3 %v5035_v8  ;;  %v5518_v8 = vld [vmem:[#allocation22_spill] sm:$0xff] }
 0x633   : > { %2209 = vmatpush.bf16.msra.mxu2 %v4996_v19 }
 0x634   : > { %2198 = vmatpush.bf16.msrb.mxu1 %v5042_v17 }
 0x635   : > { %2226 = vmatpush.bf16.msrb.mxu3 %v5046_v26 }
 0x637   : > { %2210 = vmatpush.bf16.msra.mxu2 %v5011_v38 }
 0x638   : > { %2199 = vmatpush.bf16.msrb.mxu1 %v5518_v8 }
 0x639   : > { %2227 = vmatpush.bf16.msrb.mxu3 %v5519_v25 }
 0x63b   : > { %2211 = vmatpush.bf16.msra.mxu2 %v5032_v4  ;;  %v5517_v4 = vld [vmem:[#allocation23_spill] sm:$0xff] }
 0x63f   : > { %2212 = vmatpush.bf16.msra.mxu2 %v5044_v24 }
 0x643   : > { %2213 = vmatpush.bf16.msra.mxu2 %v5517_v4 }
 0x677   : > { %v1934_v53 = vpop.xlane.xlu2 %1933 }
 0x678   : > { %v1937_v30 = vmul.f32 %v1934_v53, %v4942_v12 }
 0x67a   : > { %v1939_v35 = vadd.f32 1e-06, %v1937_v30 }
 0x67c   : > { %4470 = vrsqrt.f32 %v1939_v35  ;;  %vm1947_vm0 = vweird.f32 %v1939_v35 }
 0x67f   : > { %v1936_v7 = vpop.xlane.xlu0 %1935 }
 0x680   : > { %v1938_v0 = vmul.f32 %v1936_v7, %v4942_v12  ;;  %v4536_v7 = vld [vmem:[%s5469_s3 + $0x10] sm:$0xff] }
 0x682   : > { %v4471_v46 = vpop.eup %4470  ;;  %v1940_v55 = vadd.f32 1e-06, %v1938_v0 }
 0x683   : > { %v1942_v6 = vmul.f32 %v4471_v46, %v1939_v35  ;;  %vm1948_vm15 = vweird.f32 %v4471_v46 }
 0x684   : > { %4472 = vrsqrt.f32 %v1940_v55  ;;  %vm1949_vm1 = vmor %vm1947_vm0, %vm1948_vm15  ;;  %vm1957_vm3 = vweird.f32 %v1940_v55 }
 0x685   : > { %v1943_v28 = vmul.f32 %v4471_v46, %v1942_v6  ;;  %v4538_v6 = vld [vmem:[%s5468_s2 + $0x18] sm:$0xff] }
 0x687   : > { %v1944_v33 = vmul.f32 0.5, %v1943_v28 }
 0x689   : > { %v1945_v34 = vsub.f32 1.5, %v1944_v33  ;;  %v4539_v33 = vld [vmem:[%s5469_s3 + $0x18] sm:$0xff] }
 0x68a   : > { %v4473_v39 = vpop.eup %4472 }
 0x68b   : > { %v1952_v44 = vmul.f32 %v4473_v39, %v1940_v55  ;;  %v1946_v50 = vmul.f32 %v4471_v46, %v1945_v34  ;;  %vm1958_vm2 = vweird.f32 %v4473_v39 }
 0x68c   : > { %vm1959_vm4 = vmor %vm1957_vm3, %vm1958_vm2 }
 0x68d   : > { %v1953_v54 = vmul.f32 %v4473_v39, %v1952_v44  ;;  %v1950_v63 = vsel %vm1949_vm1, %v4471_v46, %v1946_v50  ;;  %v4537_v46 = vld [vmem:[%s5468_s2 + $0x8] sm:$0xff]  ;;  %v4541_v50 = vld [vmem:[%s5469_s3] sm:$0xff] }
 0x68e   : > { %v1961_v19 = vmul.f32 %v1950_v63, %v5228_v15 }
 0x68f   : > { %v1954_v62 = vmul.f32 0.5, %v1953_v54 }
 0x690   : > { %v1966_v40 = vmul.f32 %v4409_v23, %v1961_v19 }
 0x691   : > { %v1955_v5 = vsub.f32 1.5, %v1954_v62 }
 0x693   : > { %v1956_v18 = vmul.f32 %v4473_v39, %v1955_v5  ;;  %v4542_v5 = vld [vmem:[%s5468_s2] sm:$0xff] }
 0x695   : > { %v1960_v37 = vsel %vm1959_vm4, %v4473_v39, %v1956_v18  ;;  %v4540_v39 = vld [vmem:[%s5468_s2 + $0x10] sm:$0xff] }
 0x696   : > { %v1962_v38 = vmul.f32 %v1960_v37, %v5233_v47 }
 0x698   : > { %v1967_v2 = vmul.f32 %v4409_v23, %v1962_v38 }
 0x69a   : > { %v1968_v49 = vpack.c.bf16 %v1967_v2, %v1966_v40 }
 0x69c   : > { %2138 = vmatmul.bf16.vlgmr.msra.gmra.mxu1 %v1968_v49  ;;  %2152 = vmatmul.bf16.vlgmr.msrb.gmra.mxu2 %v1968_v49 }
 0x69d   : > { %2166 = vmatmul.bf16.vlgmr.msra.gmra.mxu3 %v1968_v49 }
 0x719   : > { %v2139_v9 = vpop.f32.mrf.mxu1 }
 0x71a   : > { %v2172_v18 = vmul.f32 %v4542_v5, %v2139_v9 }
 0x71f   : > { %v2153_v24 = vpop.f32.mrf.mxu2 }
 0x720   : > { %v5268_v45 = vpop.f32.mrf.mxu3  ;;  %v2173_v55 = vmul.f32 %v4537_v46, %v2153_v24 }
 0x721   : > { %v2141_v17 = vpop.f32.mrf.mxu1  ;;  %v2278_v22 = vmul.f32 %v4532_v43, %v5268_v45  ;;  %v2340_v36 = vmul.f32 %v5277_v27, %v5268_v45  ;;  %v2402_v57 = vmul.f32 %v4534_v41, %v5268_v45 }
 0x722   : > { %v2176_v14 = vpack.c.bf16 %v2141_v17, %v2139_v9  ;;  %v2174_v44 = vmul.f32 %v4540_v39, %v2141_v17  ;;  %v4543_v17 = vld [vmem:[%s5471_s5 + $0x3] ss:$0 sm:$0xff] }
 0x724   : > { %2186 = vmatmul.bf16.vlgmr.msrb.gmra.mxu0 %v2176_v14  ;;  %2214 = vmatmul.bf16.vlgmr.msra.gmra.mxu2 %v2176_v14 }
 0x727   : > { %v2155_v26 = vpop.f32.mrf.mxu2 }
 0x728   : > { %v2177_v1 = vpack.c.bf16 %v2155_v26, %v2153_v24  ;;  %v5281_v58 = vpop.f32.mrf.mxu3  ;;  %v2175_v28 = vmul.f32 %v4538_v6, %v2155_v26 }
 0x729   : > { %v2279_v16 = vmul.f32 %v4532_v43, %v5281_v58  ;;  %v2341_v52 = vmul.f32 %v5277_v27, %v5281_v58  ;;  %v2403_v11 = vmul.f32 %v4534_v41, %v5281_v58  ;;  %v2465_v39 = vmul.f32 %v4543_v17, %v5281_v58 }
 0x72a   : > { %2200 = vmatmul.bf16.vlgmr.msrb.gmra.mxu1 %v2177_v1  ;;  %2228 = vmatmul.bf16.vlgmr.msrb.gmra.mxu3 %v2177_v1 }
 0x72b   : > { %v2280_v31 = vpack.c.bf16 %v2279_v16, %v2278_v22  ;;  %v2404_v10 = vpack.c.bf16 %v2403_v11, %v2402_v57  ;;  %v2342_v13 = vpack.c.bf16 %v2341_v52, %v2340_v36 }
 0x72d   : > { %2292 = vmatpush.bf16.msra.mxu1 %v2280_v31  ;;  %2416 = vmatpush.bf16.msra.mxu3 %v2404_v10 }
 0x731   : > { %2354 = vmatpush.bf16.msrb.mxu1 %v2342_v13 }
 0x7a1   : > { %v2187_v61 = vpop.f32.mrf.mxu0 }
 0x7a7   : > { %v2201_v21 = vpop.f32.mrf.mxu1  ;;  %v2215_v29 = vpop.f32.mrf.mxu2 }
 0x7a8   : > { %v2202_v60 = vadd.f32 %v2201_v21, %v2187_v61 }
 0x7a9   : > { %v2189_v53 = vpop.f32.mrf.mxu0 }
 0x7aa   : > { %v2234_v54 = vmul.f32 %v4541_v50, %v2202_v60 }
 0x7ac   : > { %v2238_v37 = vadd.f32 %v2234_v54, %v2172_v18  ;;  %v2464_v54 = vmul.f32 %v4543_v17, %v5268_v45 }
 0x7ad   : > { %v2229_v42 = vpop.f32.mrf.mxu3 }
 0x7ae   : > { %v2230_v32 = vadd.f32 %v2229_v42, %v2215_v29  ;;  %v2243_v2 = vmul.f32 %v4532_v43, %v2238_v37  ;;  %v2367_v4 = vmul.f32 %v4534_v41, %v2238_v37  ;;  %v2305_v24 = vmul.f32 %v5277_v27, %v2238_v37 }
 0x7af   : > { %v2203_v48 = vpop.f32.mrf.mxu1  ;;  %v2217_v56 = vpop.f32.mrf.mxu2  ;;  %v2429_v26 = vmul.f32 %v4543_v17, %v2238_v37  ;;  %v2466_v18 = vpack.c.bf16 %v2465_v39, %v2464_v54 }
 0x7b0   : > { %v2204_v20 = vadd.f32 %v2203_v48, %v2189_v53  ;;  %v2235_v3 = vmul.f32 %v4535_v51, %v2230_v32 }
 0x7b2   : > { %v2236_v0 = vmul.f32 %v4536_v7, %v2204_v20  ;;  %v2239_v62 = vadd.f32 %v2235_v3, %v2173_v55 }
 0x7b4   : > { %v2240_v19 = vadd.f32 %v2236_v0, %v2174_v44 }
 0x7b5   : > { %v2231_v30 = vpop.f32.mrf.mxu3 }
 0x7b6   : > { %v2232_v35 = vadd.f32 %v2231_v30, %v2217_v56  ;;  %v2244_v38 = vmul.f32 %v4532_v43, %v2240_v19  ;;  %v2368_v40 = vmul.f32 %v4534_v41, %v2240_v19  ;;  %v2306_v25 = vmul.f32 %v5277_v27, %v2240_v19 }
 0x7b7   : > { %v2430_v14 = vmul.f32 %v4543_v17, %v2240_v19 }
 0x7b8   : > { %v2237_v34 = vmul.f32 %v4539_v33, %v2232_v35  ;;  %v2245_v8 = vpack.c.bf16 %v2244_v38, %v2243_v2  ;;  %v2369_v49 = vpack.c.bf16 %v2368_v40, %v2367_v4  ;;  %v2307_v9 = vpack.c.bf16 %v2306_v25, %v2305_v24 }
 0x7b9   : > { %v2431_v22 = vpack.c.bf16 %v2430_v14, %v2429_v26 }
 0x7ba   : > { %v2241_v63 = vadd.f32 %v2237_v34, %v2175_v28 }
 0x7bc   : > { %v2242_v23 = vpack.c.bf16 %v2241_v63, %v2239_v62 }
 0x7be   : > { %2253 = vmatpush.bf16.xpose.msra.mxu0 %v2242_v23  ;;  %2377 = vmatpush.bf16.xpose.msrb.mxu2 %v2242_v23 }
 0x7c5   : > { %2254 = vmatmul.bf16.vlgmr.msra.gmra.mxu0 %v2245_v8  ;;  %2378 = vmatmul.bf16.vlgmr.msrb.gmra.mxu2 %v2369_v49 }
 0x7c6   : > { %2315 = vmatpush.bf16.xpose.msrb.mxu0 %v2242_v23 }
 0x7ce   : > { %2439 = vmatpush.bf16.xpose.msra.mxu0 %v2242_v23 }
 0x7d5   : > { %2316 = vmatmul.bf16.vlgmr.msrb.gmra.mxu0 %v2307_v9 }
 0x7e5   : > { %2440 = vmatmul.bf16.vlgmr.msra.gmra.mxu0 %v2431_v22 }
 0x842   : > { %v2255_v43 = vpop.f32.mrf.mxu0 }
 0x843   : > { %v2256_v36 = vadd.f32 %v2255_v43, %v5107_v59 }
 0x845   : > { %v2260_v1 = vsel %vm1070_vm7, %v2256_v36, -inf }
 0x846   : > { %2261 = vmax.xlane.f32.xlu1 %v2260_v1 }
 0x848   : > { %v2379_v27 = vpop.f32.mrf.mxu2 }
 0x849   : > { %v2380_v52 = vadd.f32 %v2379_v27, %v5107_v59 }
 0x84a   : > { %v2257_v41 = vpop.f32.mrf.mxu0 }
 0x84b   : > { %v2258_v57 = vadd.f32 %v2257_v41, %v5107_v59  ;;  %v2384_v13 = vsel %vm1070_vm7, %v2380_v52, -inf }
 0x84d   : > { %v2263_v16 = vsel %vm1070_vm7, %v2258_v57, -inf }
 0x84e   : > { %2264 = vmax.xlane.f32.xlu2 %v2263_v16 }
 0x850   : > { %v2381_v21 = vpop.f32.mrf.mxu2 }
 0x851   : > { %v2382_v61 = vadd.f32 %v2381_v21, %v5107_v59  ;;  %v4259_v21 = vld [vmem:[%s5473_s7 + $0x68] sm:$0xff] }
 0x852   : > { %v2317_v11 = vpop.f32.mrf.mxu0 }
 0x853   : > { %v2318_v31 = vadd.f32 %v2317_v11, %v5107_v59  ;;  %v2387_v48 = vsel %vm1070_vm7, %v2382_v61, -inf }
 0x855   : > { %v2322_v10 = vsel %vm1070_vm7, %v2318_v31, -inf }
 0x856   : > { %2323 = vmax.xlane.f32.xlu0 %v2322_v10  ;;  %2385 = vmax.xlane.f32.xlu2 %v2384_v13  ;;  %v4261_v10 = vld [vmem:[%s5473_s7 + $0x78] sm:$0xff]  ;;  %v4260_v13 = vld [vmem:[%s5473_s7 + $0x70] sm:$0xff] }
 0x857   : > { %2557 = vmatpush.bf16.msra.mxu2 %v4261_v10  ;;  %v4291_v10 = vld [vmem:[#allocation7 + $0x1ec] sm:$0xf] }
 0x85a   : > { %v2319_v29 = vpop.f32.mrf.mxu0 }
 0x85b   : > { %v2320_v42 = vadd.f32 %v2319_v29, %v5107_v59  ;;  %2558 = vmatpush.bf16.msra.mxu2 %v4260_v13  ;;  %v4042_v13 = vld [vmem:[#allocation7 + $0x1f8] sm:$0xf0] }
 0x85d   : > { %v2325_v53 = vsel %vm1070_vm7, %v2320_v42, -inf }
 0x85e   : > { %2388 = vmax.xlane.f32.xlu0 %v2387_v48  ;;  %2326 = vmax.xlane.f32.xlu1 %v2325_v53  ;;  %v4256_v48 = vld [vmem:[%s5473_s7 + $0x50] sm:$0xff] }
 0x85f   : > { %2559 = vmatpush.bf16.msra.mxu2 %v4259_v21  ;;  %v4045_v21 = vor.u32 %v4291_v10, %v4042_v13  ;;  %v3962_v10 = vld [vmem:[#allocation7 + $0x158] sm:$0xf0] }
 0x862   : > { %v2441_v32 = vpop.f32.mrf.mxu0 }
 0x863   : > { %v2442_v20 = vadd.f32 %v2441_v32, %v5107_v59  ;;  %v4255_v32 = vld [vmem:[%s5473_s7 + $0x48] sm:$0xff] }
 0x865   : > { %v2446_v60 = vsel %vm1070_vm7, %v2442_v20, -inf }
 0x866   : > { %2447 = vmax.xlane.f32.xlu1 %v2446_v60  ;;  %v4254_v60 = vld [vmem:[%s5473_s7 + $0x40] sm:$0xff] }
 0x86a   : > { %v2443_v56 = vpop.f32.mrf.mxu0 }
 0x86b   : > { %v2444_v30 = vadd.f32 %v2443_v56, %v5107_v59 }
 0x86d   : > { %v2449_v51 = vsel %vm1070_vm7, %v2444_v30, -inf }
 0x86e   : > { %2450 = vmax.xlane.f32.xlu2 %v2449_v51 }
 0x8b9   : > { %v2262_v3 = vpop.xlane.xlu1 %2261 }
 0x8ba   : > { %v2266_v35 = vsub.f32 %v2256_v36, %v2262_v3 }
 0x8bc   : > { %v2268_v7 = vmul.f32 1.442695, %v2266_v35 }
 0x8be   : > { %4474 = vpow2.f32 %v2268_v7 }
 0x8c1   : > { %v2265_v0 = vpop.xlane.xlu2 %2264 }
 0x8c2   : > { %v2267_v46 = vsub.f32 %v2258_v57, %v2265_v0 }
 0x8c4   : > { %v4475_v55 = vpop.eup %4474  ;;  %v2270_v6 = vmul.f32 1.442695, %v2267_v46 }
 0x8c5   : > { %v2272_v28 = vsel %vm1070_vm7, %v4475_v55, 0.0 }
 0x8c6   : > { %4476 = vpow2.f32 %v2270_v6  ;;  %2273 = vadd.xlane.f32.xlu0 %v2272_v28 }
 0x8c9   : > { %v2324_v33 = vpop.xlane.xlu0 %2323  ;;  %v2386_v34 = vpop.xlane.xlu2 %2385 }
 0x8ca   : > { %v2328_v59 = vsub.f32 %v2318_v31, %v2324_v33  ;;  %v2390_v44 = vsub.f32 %v2380_v52, %v2386_v34 }
 0x8cc   : > { %v4477_v50 = vpop.eup %4476  ;;  %v2330_v62 = vmul.f32 1.442695, %v2328_v59  ;;  %v2392_v63 = vmul.f32 1.442695, %v2390_v44 }
 0x8cd   : > { %v2281_v5 = vpack.c.bf16 %v4477_v50, %v4475_v55  ;;  %v2275_v43 = vsel %vm1070_vm7, %v4477_v50, 0.0 }
 0x8ce   : > { %4478 = vpow2.f32 %v2330_v62 }
 0x8cf   : > { %4480 = vpow2.f32 %v2392_v63  ;;  %3865 = vmatmul.msk.bf16.vlgmr.msra.gmra.mxu1 %vm1070_vm7, %v2281_v5 }
 0x8d0   : > { %2478 = vmatpush.bf16.msra.mxu1 %v2466_v18 }
 0x8d1   : > { %v2389_v19 = vpop.xlane.xlu0 %2388  ;;  %v2327_v23 = vpop.xlane.xlu1 %2326 }
 0x8d2   : > { %v2391_v37 = vsub.f32 %v2382_v61, %v2389_v19  ;;  %v2329_v38 = vsub.f32 %v2320_v42, %v2327_v23  ;;  %v4258_v61 = vld [vmem:[%s5473_s7 + $0x60] sm:$0xff]  ;;  %v4257_v42 = vld [vmem:[%s5473_s7 + $0x58] sm:$0xff] }
 0x8d3   : > { %2560 = vmatpush.bf16.msra.mxu2 %v4258_v61  ;;  %v4288_v61 = vld [vmem:[#allocation7 + $0x1cc] sm:$0xf0] }
 0x8d4   : > { %v4479_v40 = vpop.eup %4478  ;;  %v2394_v58 = vmul.f32 1.442695, %v2391_v37  ;;  %v2332_v2 = vmul.f32 1.442695, %v2329_v38 }
 0x8d5   : > { %v4481_v4 = vpop.eup %4480  ;;  %v2334_v8 = vsel %vm1070_vm7, %v4479_v40, 0.0 }
 0x8d6   : > { %4482 = vpow2.f32 %v2394_v58  ;;  %2335 = vadd.xlane.f32.xlu2 %v2334_v8  ;;  %v2396_v45 = vsel %vm1070_vm7, %v4481_v4, 0.0 }
 0x8d7   : > { %4484 = vpow2.f32 %v2332_v2  ;;  %2397 = vadd.xlane.f32.xlu1 %v2396_v45  ;;  %2561 = vmatpush.bf16.msra.mxu2 %v4257_v42 }
 0x8d9   : > { %v2448_v49 = vpop.xlane.xlu1 %2447 }
 0x8da   : > { %v2452_v25 = vsub.f32 %v2442_v20, %v2448_v49 }
 0x8db   : > { %2562 = vmatpush.bf16.msra.mxu2 %v4256_v48  ;;  %v4018_v48 = vld [vmem:[#allocation7 + $0x1d0] sm:$0xf0] }
 0x8dc   : > { %v4483_v24 = vpop.eup %4482  ;;  %v2454_v9 = vmul.f32 1.442695, %v2452_v25 }
 0x8dd   : > { %v4485_v17 = vpop.eup %4484  ;;  %v2405_v14 = vpack.c.bf16 %v4483_v24, %v4481_v4  ;;  %v2399_v26 = vsel %vm1070_vm7, %v4483_v24, 0.0 }
 0x8de   : > { %v2343_v22 = vpack.c.bf16 %v4485_v17, %v4479_v40  ;;  %4486 = vpow2.f32 %v2454_v9  ;;  %2400 = vadd.xlane.f32.xlu2 %v2399_v26  ;;  %v2337_v36 = vsel %vm1070_vm7, %v4485_v17, 0.0 }
 0x8df   : > { %2276 = vadd.xlane.f32.xlu1 %v2275_v43  ;;  %2338 = vadd.xlane.f32.xlu0 %v2337_v36 }
 0x8e0   : > { %3866 = vmatmul.msk.bf16.vlgmr.msrb.gmra.mxu1 %vm1070_vm7, %v2343_v22  ;;  %3867 = vmatmul.msk.bf16.vlgmr.msra.gmra.mxu3 %vm1070_vm7, %v2405_v14 }
 0x8e1   : > { %v2451_v1 = vpop.xlane.xlu2 %2450  ;;  %2563 = vmatpush.bf16.msra.mxu2 %v4255_v32  ;;  %v4289_v32 = vld [vmem:[#allocation7 + $0x1d4] sm:$0xf0] }
 0x8e2   : > { %v2453_v41 = vsub.f32 %v2444_v30, %v2451_v1  ;;  %v4032_v1 = vld [vmem:[#allocation7 + $0x1e0] sm:$0xf] }
 0x8e4   : > { %v4487_v57 = vpop.eup %4486  ;;  %v2456_v27 = vmul.f32 1.442695, %v2453_v41  ;;  %v4292_v41 = vld [vmem:[#allocation7 + $0x1ec] sm:$0xf0] }
 0x8e5   : > { %v2458_v16 = vsel %vm1070_vm7, %v4487_v57, 0.0  ;;  %2564 = vmatpush.bf16.msra.mxu2 %v4254_v60 }
 0x8e6   : > { %4488 = vpow2.f32 %v2456_v27  ;;  %v4033_v27 = vor.u32 %v4292_v41, %v4032_v1  ;;  %v4272_v1 = vld [vmem:[#allocation7 + $0x14c] sm:$0xf0]  ;;  %v4270_v41 = vld [vmem:[#allocation7 + $0x144] sm:$0xf] }
 0x8e7   : > { %2459 = vadd.xlane.f32.xlu0 %v2458_v16  ;;  %v4034_v16 = vld [vmem:[#allocation7 + $0x1f0] sm:$0xf0] }
 0x8e8   : > { %2806 = vmatpush.bf16.msrb.mxu3 %v4033_v27  ;;  %v3954_v27 = vld [vmem:[#allocation7 + $0x150] sm:$0xf0] }
 0x8e9   : > { %2848 = vmatpush.bf16.msrb.mxu2 %v4045_v21  ;;  %v3936_v21 = vld [vmem:[#allocation7 + $0x120] sm:$0xf] }
 0x8ec   : > { %v4489_v52 = vpop.eup %4488 }
 0x8ed   : > { %v2467_v11 = vpack.c.bf16 %v4489_v52, %v4487_v57  ;;  %v2461_v31 = vsel %vm1070_vm7, %v4489_v52, 0.0  ;;  %v4290_v57 = vld [vmem:[#allocation7 + $0x1e4] sm:$0xf]  ;;  %v4040_v52 = vld [vmem:[#allocation7 + $0x1e8] sm:$0xf] }
 0x8ee   : > { %2462 = vadd.xlane.f32.xlu1 %v2461_v31 }
 0x8f0   : > { %3868 = vmatmul.msk.bf16.vlgmr.msra.gmra.mxu1 %vm1070_vm7, %v2467_v11  ;;  %v4037_v11 = vor.u32 %v4290_v57, %v4034_v16  ;;  %v3960_v16 = vld [vmem:[#allocation7 + $0x148] sm:$0xf] }
 0x8f2   : > { %2820 = vmatpush.bf16.msrb.mxu0 %v4037_v11 }
 0x939   : > { %v2274_v20 = vpop.xlane.xlu0 %2273 }
 0x93a   : > { %4490 = vrcp.f32 %v2274_v20 }
 0x940   : > { %v4491_v6 = vpop.eup %4490 }
 0x949   : > { %v2336_v51 = vpop.xlane.xlu2 %2335 }
 0x94a   : > { %v2398_v56 = vpop.xlane.xlu1 %2397  ;;  %4492 = vrcp.f32 %v2336_v51 }
 0x94c   : > { %v2294_v29 = vpop.f32.mrf.mxu1 }
 0x94d   : > { %v2301_v5 = vmul.f32 %v4491_v6, %v2294_v29  ;;  %v4286_v29 = vld [vmem:[#allocation7 + $0x1c4] sm:$0xf]  ;;  %v4285_v6 = vld [vmem:[#allocation7 + $0x1b4] sm:$0xf0] }
 0x94e   : > { %v4021_v20 = vor.u32 %v4286_v29, %v4018_v48  ;;  %v3944_v48 = vld [vmem:[#allocation7 + $0x128] sm:$0xf] }
 0x950   : > { %v4493_v33 = vpop.eup %4492  ;;  %2821 = vmatpush.bf16.msrb.mxu0 %v4021_v20 }
 0x951   : > { %v2401_v46 = vpop.xlane.xlu2 %2400 }
 0x952   : > { %v2339_v3 = vpop.xlane.xlu0 %2338  ;;  %v2277_v35 = vpop.xlane.xlu1 %2276 }
 0x953   : > { %4494 = vrcp.f32 %v2339_v3  ;;  %v4000_v3 = vld [vmem:[#allocation7 + $0x1a0] sm:$0xf] }
 0x954   : > { %v2296_v53 = vpop.f32.mrf.mxu1  ;;  %4496 = vrcp.f32 %v2277_v35  ;;  %v4284_v35 = vld [vmem:[#allocation7 + $0x1ac] sm:$0xf0] }
 0x955   : > { %4498 = vrcp.f32 %v2398_v56  ;;  %v4287_v56 = vld [vmem:[#allocation7 + $0x1cc] sm:$0xf] }
 0x956   : > { %4500 = vrcp.f32 %v2401_v46  ;;  %v4002_v46 = vld [vmem:[#allocation7 + $0x1b0] sm:$0xf0] }
 0x959   : > { %v4495_v39 = vpop.eup %4494 }
 0x95a   : > { %v2460_v55 = vpop.xlane.xlu0 %2459  ;;  %v4497_v59 = vpop.eup %4496 }
 0x95b   : > { %4502 = vrcp.f32 %v2460_v55  ;;  %v4499_v50 = vpop.eup %4498  ;;  %v2302_v18 = vmul.f32 %v4497_v59, %v2296_v53  ;;  %v4024_v53 = vld [vmem:[#allocation7 + $0x1c8] sm:$0xf] }
 0x95c   : > { %v4501_v63 = vpop.eup %4500  ;;  %v4025_v60 = vor.u32 %v4289_v32, %v4024_v53  ;;  %v4008_v55 = vld [vmem:[#allocation7 + $0x1a8] sm:$0xf]  ;;  %v4269_v53 = vld [vmem:[#allocation7 + $0x134] sm:$0xf0] }
 0x95d   : > { %v2356_v30 = vpop.f32.mrf.mxu1  ;;  %v3945_v20 = vor.u32 %v4269_v53, %v3944_v48 }
 0x95e   : > { %v2363_v54 = vmul.f32 %v4493_v33, %v2356_v30  ;;  %v4026_v30 = vld [vmem:[#allocation7 + $0x1d8] sm:$0xf0]  ;;  %v4009_v33 = vor.u32 %v4285_v6, %v4008_v55  ;;  %v3928_v55 = vld [vmem:[#allocation7 + $0x108] sm:$0xf]  ;;  %v4265_v6 = vld [vmem:[#allocation7 + $0x114] sm:$0xf0] }
 0x95f   : > { %v4029_v51 = vor.u32 %v4287_v56, %v4026_v30  ;;  %v3946_v56 = vld [vmem:[#allocation7 + $0x138] sm:$0xf0] }
 0x960   : > { %v2365_v38 = vadd.f32 %v2363_v54, %v2301_v5  ;;  %v4278_v54 = vld [vmem:[#allocation7 + $0x184] sm:$0xf]  ;;  %v3992_v5 = vld [vmem:[#allocation7 + $0x188] sm:$0xf] }
 0x961   : > { %v2463_v28 = vpop.xlane.xlu1 %2462  ;;  %v4503_v37 = vpop.eup %4502  ;;  %2849 = vmatpush.bf16.msrb.mxu2 %v4029_v51  ;;  %v3920_v51 = vld [vmem:[#allocation7 + $0x100] sm:$0xf] }
 0x962   : > { %4504 = vrcp.f32 %v2463_v28 }
 0x963   : > { %v2418_v7 = vpop.f32.mrf.mxu3 }
 0x964   : > { %v2425_v19 = vmul.f32 %v4499_v50, %v2418_v7  ;;  %v4282_v7 = vld [vmem:[#allocation7 + $0x1a4] sm:$0xf]  ;;  %v4280_v50 = vld [vmem:[#allocation7 + $0x18c] sm:$0xf0] }
 0x965   : > { %v2358_v0 = vpop.f32.mrf.mxu1  ;;  %v4005_v28 = vor.u32 %v4282_v7, %v4002_v46  ;;  %v3922_v46 = vld [vmem:[#allocation7 + $0x110] sm:$0xf0] }
 0x966   : > { %v2364_v62 = vmul.f32 %v4495_v39, %v2358_v0  ;;  %v2427_v8 = vadd.f32 %v2425_v19, %v2365_v38  ;;  %v4001_v0 = vor.u32 %v4284_v35, %v4000_v3  ;;  %v4010_v39 = vld [vmem:[#allocation7 + $0x1b8] sm:$0xf0]  ;;  %v4264_v3 = vld [vmem:[#allocation7 + $0x10c] sm:$0xf0]  ;;  %v4262_v35 = vld [vmem:[#allocation7 + $0x104] sm:$0xf] }
 0x967   : > { %2822 = vmatpush.bf16.msrb.mxu0 %v4005_v28  ;;  %v3994_v38 = vld [vmem:[#allocation7 + $0x198] sm:$0xf0] }
 0x968   : > { %v2366_v40 = vadd.f32 %v2364_v62, %v2302_v18  ;;  %v4505_v2 = vpop.eup %4504  ;;  %v4281_v18 = vld [vmem:[#allocation7 + $0x194] sm:$0xf0] }
 0x96b   : > { %v2420_v44 = vpop.f32.mrf.mxu3 }
 0x96c   : > { %v2426_v23 = vmul.f32 %v4501_v63, %v2420_v44  ;;  %v3984_v44 = vld [vmem:[#allocation7 + $0x180] sm:$0xf]  ;;  %v3986_v63 = vld [vmem:[#allocation7 + $0x190] sm:$0xf0] }
 0x96d   : > { %v2480_v34 = vpop.f32.mrf.mxu1  ;;  %v3985_v62 = vor.u32 %v4280_v50, %v3984_v44  ;;  %v3989_v19 = vor.u32 %v4278_v54, %v3986_v63 }
 0x96e   : > { %v2487_v58 = vmul.f32 %v4503_v37, %v2480_v34  ;;  %v2428_v45 = vadd.f32 %v2426_v23, %v2366_v40  ;;  %v4283_v34 = vld [vmem:[#allocation7 + $0x1ac] sm:$0xf]  ;;  %v3993_v23 = vor.u32 %v4281_v18, %v3992_v5 }
 0x96f   : > { %v4013_v59 = vor.u32 %v4283_v34, %v4010_v39  ;;  %v4279_v37 = vld [vmem:[#allocation7 + $0x18c] sm:$0xf]  ;;  %2823 = vmatpush.bf16.msrb.mxu0 %v3989_v19  ;;  %v3929_v34 = vor.u32 %v4265_v6, %v3928_v55 }
 0x970   : > { %v2489_v25 = vadd.f32 %v2487_v58, %v2427_v8  ;;  %v3997_v40 = vor.u32 %v4279_v37, %v3994_v38  ;;  %v3968_v58 = vld [vmem:[#allocation7 + $0x160] sm:$0xf]  ;;  %v4263_v39 = vld [vmem:[#allocation7 + $0x10c] sm:$0xf] }
 0x971   : > { %2850 = vmatpush.bf16.msrb.mxu2 %v4013_v59  ;;  %v3930_v59 = vld [vmem:[#allocation7 + $0x118] sm:$0xf0] }
 0x972   : > { %v3933_v44 = vor.u32 %v4263_v39, %v3930_v59 }
 0x975   : > { %v2482_v4 = vpop.f32.mrf.mxu1  ;;  %2851 = vmatpush.bf16.msrb.mxu2 %v3997_v40 }
 0x976   : > { %v2488_v49 = vmul.f32 %v4505_v2, %v2482_v4  ;;  %v4276_v2 = vld [vmem:[#allocation7 + $0x16c] sm:$0xf0]  ;;  %v4274_v4 = vld [vmem:[#allocation7 + $0x164] sm:$0xf] }
 0x977   : > { %v3969_v8 = vor.u32 %v4276_v2, %v3968_v58 }
 0x978   : > { %v2490_v24 = vadd.f32 %v2488_v49, %v2428_v45  ;;  %v3970_v45 = vld [vmem:[#allocation7 + $0x170] sm:$0xf0]  ;;  %v3976_v49 = vld [vmem:[#allocation7 + $0x168] sm:$0xf] }
 0x97a   : > { %v2491_v9 = vpack.c.bf16 %v2490_v24, %v2489_v25  ;;  %v4277_v25 = vld [vmem:[#allocation7 + $0x174] sm:$0xf0]  ;;  %v3973_v24 = vor.u32 %v4274_v4, %v3970_v45 }
 0x97c   : > { %2565 = vmatmul.bf16.vlgmr.msra.gmra.mxu2 %v2491_v9  ;;  %v3977_v9 = vor.u32 %v4277_v25, %v3976_v49  ;;  %2824 = vmatpush.bf16.msrb.mxu0 %v3973_v24  ;;  %v4410_v24 = vld [vmem:[%s5477_s11 + $0x1] ss:$0 sm:$0xff] }
 0x9ff   : > { %v2566_v17 = vpop.f32.mrf.mxu2 }
 0xa00   : > { %v5375_v14 = vadd.f32 %v2566_v17, %v5228_v15  ;;  %v4293_v15 = vld [vmem:[#allocation7 + $0x1f4] sm:$0xf0]  ;;  %v4275_v17 = vld [vmem:[#allocation7 + $0x16c] sm:$0xf] }
 0xa01   : > { %v4041_v31 = vor.u32 %v4293_v15, %v4040_v52  ;;  %v4273_v52 = vld [vmem:[#allocation7 + $0x154] sm:$0xf0]  ;;  %v3957_v15 = vor.u32 %v4270_v41, %v3954_v27  ;;  %v4308_v41 = vld [vmem:[#allocation8 + $0xf0] sm:$0xff]  ;;  %v4307_v27 = vld [vmem:[#allocation8 + $0xe8] sm:$0xff] }
 0xa02   : > { %v2575_v26 = vmul.f32 %v5375_v14, %v5375_v14  ;;  %v3961_v11 = vor.u32 %v4273_v52, %v3960_v16  ;;  %v4300_v16 = vld [vmem:[#allocation8 + $0xb0] sm:$0xff]  ;;  %v4306_v52 = vld [vmem:[#allocation8 + $0xe0] sm:$0xff] }
 0xa03   : > { %2834 = vmatpush.bf16.msrb.mxu1 %v4041_v31  ;;  %v4271_v31 = vld [vmem:[#allocation7 + $0x14c] sm:$0xf]  ;;  %2825 = vmatpush.bf16.msrb.mxu0 %v3957_v15 }
 0xa04   : > { %2577 = vadd.xlane.f32.xlu2 %v2575_v26  ;;  %v3978_v26 = vld [vmem:[#allocation7 + $0x178] sm:$0xf0]  ;;  %v3965_v13 = vor.u32 %v4271_v31, %v3962_v10  ;;  %v4299_v15 = vld [vmem:[#allocation8 + $0xa8] sm:$0xff]  ;;  %v4298_v31 = vld [vmem:[#allocation8 + $0xa0] sm:$0xff] }
 0xa07   : > { %v2568_v22 = vpop.f32.mrf.mxu2  ;;  %2835 = vmatpush.bf16.msrb.mxu1 %v4025_v60  ;;  %v4267_v60 = vld [vmem:[#allocation7 + $0x12c] sm:$0xf] }
 0xa08   : > { %v5380_v43 = vadd.f32 %v2568_v22, %v5233_v47  ;;  %v4016_v47 = vld [vmem:[#allocation7 + $0x1c0] sm:$0xf]  ;;  %v3981_v22 = vor.u32 %v4275_v17, %v3978_v26  ;;  %v3949_v30 = vor.u32 %v4267_v60, %v3946_v56 }
 0xa09   : > { %v4017_v42 = vor.u32 %v4288_v61, %v4016_v47  ;;  %v4268_v47 = vld [vmem:[#allocation7 + $0x12c] sm:$0xf0]  ;;  %v4266_v61 = vld [vmem:[#allocation7 + $0x124] sm:$0xf] }
 0xa0a   : > { %v2576_v36 = vmul.f32 %v5380_v43, %v5380_v43  ;;  %2852 = vmatpush.bf16.msrb.mxu2 %v3981_v22  ;;  %v3937_v29 = vor.u32 %v4268_v47, %v3936_v21  ;;  %v4297_v47 = vld [vmem:[#allocation8 + $0x98] sm:$0xff] }
 0xa0b   : > { %2807 = vmatpush.bf16.msrb.mxu3 %v4017_v42  ;;  %2836 = vmatpush.bf16.msrb.mxu1 %v4009_v33  ;;  %v3938_v42 = vld [vmem:[#allocation7 + $0x130] sm:$0xf0]  ;;  %v3925_v33 = vor.u32 %v4262_v35, %v3922_v46 }
 0xa0c   : > { %2579 = vadd.xlane.f32.xlu0 %v2576_v36  ;;  %v3952_v36 = vld [vmem:[#allocation7 + $0x140] sm:$0xf]  ;;  %v3941_v32 = vor.u32 %v4266_v61, %v3938_v42  ;;  %v4303_v61 = vld [vmem:[#allocation8 + $0xc8] sm:$0xff]  ;;  %v4296_v42 = vld [vmem:[#allocation8 + $0x90] sm:$0xff] }
 0xa0d   : > { %v3953_v57 = vor.u32 %v4272_v1, %v3952_v36  ;;  %v4309_v1 = vld [vmem:[#allocation8 + $0xf8] sm:$0xff] }
 0xa0e   : > { %2853 = vmatpush.bf16.msrb.mxu2 %v3965_v13  ;;  %2826 = vmatpush.bf16.msrb.mxu0 %v3941_v32  ;;  %v4304_v13 = vld [vmem:[#allocation8 + $0xd0] sm:$0xff]  ;;  %v4302_v32 = vld [vmem:[#allocation8 + $0xc0] sm:$0xff] }
 0xa0f   : > { %2808 = vmatpush.bf16.msrb.mxu3 %v4001_v0  ;;  %2837 = vmatpush.bf16.msrb.mxu1 %v3993_v23  ;;  %v3921_v0 = vor.u32 %v4264_v3, %v3920_v51  ;;  %v4294_v3 = vld [vmem:[#allocation8 + $0x80] sm:$0xff] }
 0xa12   : > { %2854 = vmatpush.bf16.msrb.mxu2 %v3949_v30  ;;  %2827 = vmatpush.bf16.msrb.mxu0 %v3925_v33  ;;  %v4295_v30 = vld [vmem:[#allocation8 + $0x88] sm:$0xff] }
 0xa13   : > { %2809 = vmatpush.bf16.msrb.mxu3 %v3985_v62  ;;  %2838 = vmatpush.bf16.msrb.mxu1 %v3977_v9 }
 0xa16   : > { %2855 = vmatpush.bf16.msrb.mxu2 %v3933_v44  ;;  %3091 = vmatpush.bf16.msra.mxu0 %v4309_v1 }
 0xa17   : > { %2810 = vmatpush.bf16.msrb.mxu3 %v3969_v8  ;;  %2839 = vmatpush.bf16.msrb.mxu1 %v3961_v11  ;;  %v4305_v11 = vld [vmem:[#allocation8 + $0xd8] sm:$0xff] }
 0xa1a   : > { %3092 = vmatpush.bf16.msra.mxu0 %v4308_v41 }
 0xa1b   : > { %2811 = vmatpush.bf16.msrb.mxu3 %v3953_v57  ;;  %2840 = vmatpush.bf16.msrb.mxu1 %v3945_v20  ;;  %v4301_v57 = vld [vmem:[#allocation8 + $0xb8] sm:$0xff] }
 0xa1e   : > { %3093 = vmatpush.bf16.msra.mxu0 %v4307_v27 }
 0xa1f   : > { %2812 = vmatpush.bf16.msrb.mxu3 %v3937_v29  ;;  %2841 = vmatpush.bf16.msrb.mxu1 %v3929_v34 }
 0xa22   : > { %3094 = vmatpush.bf16.msra.mxu0 %v4306_v52 }
 0xa23   : > { %2813 = vmatpush.bf16.msrb.mxu3 %v3921_v0 }
 0xa26   : > { %3095 = vmatpush.bf16.msra.mxu0 %v4305_v11 }
 0xa27   : > { %3077 = vmatpush.bf16.msra.mxu3 %v4301_v57 }
 0xa2a   : > { %3096 = vmatpush.bf16.msra.mxu0 %v4304_v13 }
 0xa2b   : > { %3078 = vmatpush.bf16.msra.mxu3 %v4300_v16 }
 0xa2e   : > { %3097 = vmatpush.bf16.msra.mxu0 %v4303_v61 }
 0xa2f   : > { %3079 = vmatpush.bf16.msra.mxu3 %v4299_v15 }
 0xa32   : > { %3098 = vmatpush.bf16.msra.mxu0 %v4302_v32 }
 0xa33   : > { %3080 = vmatpush.bf16.msra.mxu3 %v4298_v31 }
 0xa37   : > { %3081 = vmatpush.bf16.msra.mxu3 %v4297_v47 }
 0xa3b   : > { %3082 = vmatpush.bf16.msra.mxu3 %v4296_v42 }
 0xa3f   : > { %3083 = vmatpush.bf16.msra.mxu3 %v4295_v30 }
 0xa43   : > { %3084 = vmatpush.bf16.msra.mxu3 %v4294_v3 }
 0xa77   : > { %v2578_v7 = vpop.xlane.xlu2 %2577 }
 0xa78   : > { %v2581_v28 = vmul.f32 %v2578_v7, %v4942_v12 }
 0xa7a   : > { %v2583_v50 = vadd.f32 1e-06, %v2581_v28 }
 0xa7c   : > { %4506 = vrsqrt.f32 %v2583_v50  ;;  %vm2591_vm6 = vweird.f32 %v2583_v50 }
 0xa7f   : > { %v2580_v54 = vpop.xlane.xlu0 %2579 }
 0xa80   : > { %v2582_v62 = vmul.f32 %v2580_v54, %v4942_v12 }
 0xa82   : > { %v4507_v63 = vpop.eup %4506  ;;  %v2584_v5 = vadd.f32 1e-06, %v2582_v62 }
 0xa83   : > { %v2586_v18 = vmul.f32 %v4507_v63, %v2583_v50  ;;  %vm2592_vm5 = vweird.f32 %v4507_v63 }
 0xa84   : > { %4508 = vrsqrt.f32 %v2584_v5  ;;  %vm2593_vm8 = vmor %vm2591_vm6, %vm2592_vm5  ;;  %vm2601_vm10 = vweird.f32 %v2584_v5 }
 0xa85   : > { %v2587_v19 = vmul.f32 %v4507_v63, %v2586_v18 }
 0xa87   : > { %v2588_v23 = vmul.f32 0.5, %v2587_v19 }
 0xa89   : > { %v2589_v37 = vsub.f32 1.5, %v2588_v23 }
 0xa8a   : > { %v4509_v38 = vpop.eup %4508 }
 0xa8b   : > { %v2596_v40 = vmul.f32 %v4509_v38, %v2584_v5  ;;  %v2590_v58 = vmul.f32 %v4507_v63, %v2589_v37  ;;  %vm2602_vm9 = vweird.f32 %v4509_v38 }
 0xa8c   : > { %vm2603_vm11 = vmor %vm2601_vm10, %vm2602_vm9 }
 0xa8d   : > { %v2597_v2 = vmul.f32 %v4509_v38, %v2596_v40  ;;  %v2594_v8 = vsel %vm2593_vm8, %v4507_v63, %v2590_v58 }
 0xa8e   : > { %v2605_v25 = vmul.f32 %v2594_v8, %v5375_v14 }
 0xa8f   : > { %v2598_v4 = vmul.f32 0.5, %v2597_v2 }
 0xa90   : > { %v2610_v26 = vmul.f32 %v4410_v24, %v2605_v25 }
 0xa91   : > { %v2599_v45 = vsub.f32 1.5, %v2598_v4 }
 0xa93   : > { %v2600_v49 = vmul.f32 %v4509_v38, %v2599_v45 }
 0xa95   : > { %v2604_v9 = vsel %vm2603_vm11, %v4509_v38, %v2600_v49 }
 0xa96   : > { %v2606_v17 = vmul.f32 %v2604_v9, %v5380_v43 }
 0xa98   : > { %v2611_v22 = vmul.f32 %v4410_v24, %v2606_v17 }
 0xa9a   : > { %v2612_v36 = vpack.c.bf16 %v2611_v22, %v2610_v26 }
 0xa9c   : > { %2814 = vmatmul.bf16.vlgmr.msrb.gmra.mxu3 %v2612_v36  ;;  %2828 = vmatmul.bf16.vlgmr.msrb.gmra.mxu0 %v2612_v36 }
 0xa9d   : > { %2842 = vmatmul.bf16.vlgmr.msrb.gmra.mxu1 %v2612_v36  ;;  %2856 = vmatmul.bf16.vlgmr.msrb.gmra.mxu2 %v2612_v36 }
 0xb19   : > { %v5391_v10 = vpop.f32.mrf.mxu0 }
 0xb1a   : > { %v4047_v21 = vmul.f32 -1.442695, %v5391_v10  ;;  %v2843_v22 = vpop.f32.mrf.mxu1 }
 0xb1c   : > { %4510 = vpow2.f32 %v4047_v21 }
 0xb1f   : > { %v5394_v29 = vpop.f32.mrf.mxu3 }
 0xb20   : > { %v4046_v48 = vmul.f32 -1.442695, %v5394_v29  ;;  %v2857_v38 = vpop.f32.mrf.mxu2 }
 0xb21   : > { %v5397_v53 = vpop.f32.mrf.mxu0 }
 0xb22   : > { %v4511_v20 = vpop.eup %4510  ;;  %4512 = vpow2.f32 %v4046_v48  ;;  %v4049_v60 = vmul.f32 -1.442695, %v5397_v53 }
 0xb23   : > { %v2875_v56 = vadd.f32 1.0, %v4511_v20 }
 0xb24   : > { %4514 = vpow2.f32 %v4049_v60 }
 0xb25   : > { %4516 = vrcp.f32 %v2875_v56  ;;  %v2904_v62 = vand.u32 2147483648, %v2875_v56  ;;  %vm2898_vm13 = vweird.f32 %v2875_v56  ;;  %v2902_v18 = vand.u32 2147483647, %v2875_v56 }
 0xb27   : > { %v5400_v51 = vpop.f32.mrf.mxu3  ;;  %v2905_v58 = vor.u32 1.1754944e-38, %v2904_v62  ;;  %vm2903_vm0 = vcmp.eq.f32.partialorder %v2902_v18, 8.507059e+37 }
 0xb28   : > { %v4513_v35 = vpop.eup %4512  ;;  %v4048_v7 = vmul.f32 -1.442695, %v5400_v51  ;;  %v2859_v32 = vpop.f32.mrf.mxu2 }
 0xb29   : > { %v2874_v0 = vadd.f32 1.0, %v4513_v35 }
 0xb2a   : > { %v4515_v46 = vpop.eup %4514  ;;  %4518 = vpow2.f32 %v4048_v7 }
 0xb2b   : > { %v4517_v55 = vpop.eup %4516  ;;  %4520 = vrcp.f32 %v2874_v0  ;;  %v2877_v28 = vadd.f32 1.0, %v4515_v46  ;;  %v2887_v2 = vand.u32 2147483647, %v2874_v0  ;;  %v2889_v45 = vand.u32 2147483648, %v2874_v0 }
 0xb2c   : > { %v2894_v6 = vmul.f32 %v4517_v55, %v2875_v56  ;;  %vm2899_vm12 = vweird.f32 %v4517_v55  ;;  %vm2883_vm2 = vweird.f32 %v2874_v0 }
 0xb2d   : > { %4522 = vrcp.f32 %v2877_v28  ;;  %vm5403_vm14 = vmor %vm2898_vm13, %vm2899_vm12  ;;  %v2934_v49 = vand.u32 2147483648, %v2877_v28  ;;  %v2932_v9 = vand.u32 2147483647, %v2877_v28  ;;  %vm5413_vm4 = vcmp.eq.f32.partialorder %v2887_v2, 8.507059e+37 }
 0xb2e   : > { %v2895_v33 = vsub.f32 1.0, %v2894_v6  ;;  %vm2928_vm5 = vweird.f32 %v2877_v28  ;;  %v2890_v27 = vor.u32 1.1754944e-38, %v2889_v45  ;;  %vm3168_vm13 = vcmask 122880  }
 0xb2f   : > { %v2935_v16 = vor.u32 1.1754944e-38, %v2934_v49  ;;  %vm2933_vm8 = vcmp.eq.f32.partialorder %v2932_v9, 8.507059e+37 }
 0xb30   : > { %v4519_v34 = vpop.eup %4518  ;;  %v2896_v39 = vmul.f32 %v4517_v55, %v2895_v33 }
 0xb31   : > { %v4521_v59 = vpop.eup %4520  ;;  %v2876_v44 = vadd.f32 1.0, %v4519_v34 }
 0xb32   : > { %v2879_v50 = vmul.f32 %v4521_v59, %v2874_v0  ;;  %v2897_v54 = vadd.f32 %v4517_v55, %v2896_v39  ;;  %vm2884_vm15 = vweird.f32 %v4521_v59  ;;  %v2845_v0 = vpop.f32.mrf.mxu1 }
 0xb33   : > { %4524 = vrcp.f32 %v2876_v44  ;;  %v4523_v63 = vpop.eup %4522  ;;  %vm5409_vm3 = vmor %vm2883_vm2, %vm2884_vm15  ;;  %v2919_v31 = vand.u32 2147483648, %v2876_v44  ;;  %v2917_v47 = vand.u32 2147483647, %v2876_v44  ;;  %vm2913_vm10 = vweird.f32 %v2876_v44 }
 0xb34   : > { %v2880_v5 = vsub.f32 1.0, %v2879_v50  ;;  %v2924_v19 = vmul.f32 %v4523_v63, %v2877_v28  ;;  %v2901_v40 = vsel %vm5403_vm14, %v4517_v55, %v2897_v54  ;;  %vm2929_vm1 = vweird.f32 %v4523_v63 }
 0xb35   : > { %v2906_v17 = vsel %vm2903_vm0, %v2905_v58, %v2901_v40  ;;  %vm2930_vm6 = vmor %vm2928_vm5, %vm2929_vm1  ;;  %v2920_v60 = vor.u32 1.1754944e-38, %v2919_v31  ;;  %vm2918_vm12 = vcmp.eq.f32.partialorder %v2917_v47, 8.507059e+37 }
 0xb36   : > { %v2881_v37 = vmul.f32 %v4521_v59, %v2880_v5  ;;  %v2925_v4 = vsub.f32 1.0, %v2924_v19  ;;  %v2939_v15 = vmul.f32 %v2906_v17, %v5391_v10  ;;  %v4544_v5 = vld [vmem:[%s5104_s14] sm:$0x1] }
 0xb37   : > { %v3169_v18 = vsel %vm3168_vm13, %v4544_v5, 0.0 }
 0xb38   : > { %v2882_v8 = vadd.f32 %v4521_v59, %v2881_v37  ;;  %v2926_v24 = vmul.f32 %v4523_v63, %v2925_v4  ;;  %v2943_v20 = vmul.f32 %v2939_v15, %v2857_v38  ;;  %3170 = vadd.xlane.f32.xlu0 %v3169_v18 }
 0xb39   : > { %v4525_v25 = vpop.eup %4524 }
 0xb3a   : > { %v2909_v26 = vmul.f32 %v4525_v25, %v2876_v44  ;;  %v2927_v41 = vadd.f32 %v4523_v63, %v2926_v24  ;;  %v2886_v57 = vsel %vm5409_vm3, %v4521_v59, %v2882_v8  ;;  %vm2914_vm9 = vweird.f32 %v4525_v25 }
 0xb3b   : > { %v2891_v61 = vsel %vm5413_vm4, %v2890_v27, %v2886_v57  ;;  %vm2915_vm11 = vmor %vm2913_vm10, %vm2914_vm9 }
 0xb3c   : > { %v2910_v52 = vsub.f32 1.0, %v2909_v26  ;;  %v2931_v11 = vsel %vm2930_vm6, %v4523_v63, %v2927_v41  ;;  %v2938_v10 = vmul.f32 %v2891_v61, %v5394_v29  ;;  %v4411_v26 = vld [vmem:[%s5478_s12] ss:$0 sm:$0xff] }
 0xb3d   : > { %v2936_v13 = vsel %vm2933_vm8, %v2935_v16, %v2931_v11 }
 0xb3e   : > { %v2911_v21 = vmul.f32 %v4525_v25, %v2910_v52  ;;  %v2941_v42 = vmul.f32 %v2936_v13, %v5397_v53  ;;  %v2942_v46 = vmul.f32 %v2938_v10, %v2843_v22 }
 0xb40   : > { %v2912_v48 = vadd.f32 %v4525_v25, %v2911_v21  ;;  %v2945_v56 = vmul.f32 %v2941_v42, %v2859_v32 }
 0xb42   : > { %v2916_v30 = vsel %vm2915_vm11, %v4525_v25, %v2912_v48  ;;  %v2947_v35 = vpack.c.bf16 %v2945_v56, %v2943_v20 }
 0xb43   : > { %v2921_v3 = vsel %vm2918_vm12, %v2920_v60, %v2916_v30 }
 0xb44   : > { %v2940_v7 = vmul.f32 %v2921_v3, %v5400_v51  ;;  %3099 = vmatmul.bf16.vlgmr.msra.gmra.mxu0 %v2947_v35 }
 0xb46   : > { %v2944_v55 = vmul.f32 %v2940_v7, %v2845_v0 }
 0xb48   : > { %v2946_v53 = vpack.c.bf16 %v2944_v55, %v2942_v46 }
 0xb4a   : > { %3085 = vmatmul.bf16.vlgmr.msra.gmra.mxu3 %v2946_v53 }
 0xbab   : > { %v3171_v41 = vpop.xlane.xlu0 %3170 }
 0xbac   : > { %v3172_v57 = vmax.f32 %v3171_v41, 1.0 }
 0xbc1   : > { %v3100_v6 = vpop.f32.mrf.mxu0 }
 0xbc9   : > { %v3102_v29 = vpop.f32.mrf.mxu0 }
 0xbcd   : > { %v3086_v28 = vpop.f32.mrf.mxu3 }
 0xbce   : > { %v3101_v33 = vadd.f32 %v3100_v6, %v3086_v28 }
 0xbd0   : > { %v3105_v34 = vadd.f32 %v3101_v33, %v5375_v14 }
 0xbd2   : > { %v3108_v39 = vmul.f32 %v3105_v34, %v3105_v34 }
 0xbd4   : > { %3110 = vadd.xlane.f32.xlu2 %v3108_v39 }
 0xbd5   : > { %v3088_v59 = vpop.f32.mrf.mxu3 }
 0xbd6   : > { %v3103_v44 = vadd.f32 %v3102_v29, %v3088_v59 }
 0xbd8   : > { %v3106_v50 = vadd.f32 %v3103_v44, %v5380_v43 }
 0xbda   : > { %v3109_v51 = vmul.f32 %v3106_v50, %v3106_v50 }
 0xbdc   : > { %3112 = vadd.xlane.f32.xlu1 %v3109_v51 }
 0xc47   : > { %v3111_v54 = vpop.xlane.xlu2 %3110 }
 0xc48   : > { %v3114_v62 = vmul.f32 %v3111_v54, %v4942_v12 }
 0xc4a   : > { %v3116_v63 = vadd.f32 1e-06, %v3114_v62 }
 0xc4c   : > { %4526 = vrsqrt.f32 %v3116_v63  ;;  %vm3124_vm15 = vweird.f32 %v3116_v63 }
 0xc4f   : > { %v3113_v19 = vpop.xlane.xlu1 %3112 }
 0xc50   : > { %v3115_v14 = vmul.f32 %v3113_v19, %v4942_v12 }
 0xc52   : > { %v4527_v23 = vpop.eup %4526  ;;  %v3117_v37 = vadd.f32 1e-06, %v3115_v14 }
 0xc53   : > { %v3119_v38 = vmul.f32 %v4527_v23, %v3116_v63  ;;  %vm3125_vm14 = vweird.f32 %v4527_v23 }
 0xc54   : > { %4528 = vrsqrt.f32 %v3117_v37  ;;  %vm3126_vm1 = vmor %vm3124_vm15, %vm3125_vm14  ;;  %vm3134_vm2 = vweird.f32 %v3117_v37 }
 0xc55   : > { %v3120_v40 = vmul.f32 %v4527_v23, %v3119_v38  ;;  %4530 = vrcp.f32 %v3172_v57 }
 0xc57   : > { %v3121_v43 = vmul.f32 0.5, %v3120_v40 }
 0xc59   : > { %v3122_v2 = vsub.f32 1.5, %v3121_v43 }
 0xc5a   : > { %v4529_v58 = vpop.eup %4528 }
 0xc5b   : > { %v3129_v4 = vmul.f32 %v4529_v58, %v3117_v37  ;;  %v3123_v45 = vmul.f32 %v4527_v23, %v3122_v2  ;;  %vm3135_vm0 = vweird.f32 %v4529_v58  ;;  %v4531_v27 = vpop.eup %4530 }
 0xc5c   : > { %vm3136_vm3 = vmor %vm3134_vm2, %vm3135_vm0 }
 0xc5d   : > { %v3130_v8 = vmul.f32 %v4529_v58, %v3129_v4  ;;  %v3127_v12 = vsel %vm3126_vm1, %v4527_v23, %v3123_v45 }
 0xc5e   : > { %v3138_v22 = vmul.f32 %v3127_v12, %v3105_v34 }
 0xc5f   : > { %v3131_v49 = vmul.f32 0.5, %v3130_v8 }
 0xc60   : > { %v3143_v1 = vmul.f32 %v4411_v26, %v3138_v22 }
 0xc61   : > { %v3132_v25 = vsub.f32 1.5, %v3131_v49 }
 0xc63   : > { %v3133_v24 = vmul.f32 %v4529_v58, %v3132_v25 }
 0xc65   : > { %v3137_v9 = vsel %vm3136_vm3, %v4529_v58, %v3133_v24 }
 0xc66   : > { %v3139_v17 = vmul.f32 %v3137_v9, %v3106_v50 }
 0xc68   : > { %v3144_v36 = vmul.f32 %v4411_v26, %v3139_v17 }
 0xc6a   : > { %3162 = vmatpush.msra.mxu1 %v3144_v36 }
 0xc6c   : > { %3163 = vmatpush.msra.mxu1 %v3143_v1 }
 0xc6d   : > { %4114 = vmatmul.msk.f32.vlgmr.msra.gmra.mxu1 %vm1070_vm7, %v4544_v5 }
 0xcea   : > { %v3165_v16 = vpop.f32.mrf.mxu1 }
 0xceb   : > { %v3174_v52 = vmul.f32 %v4531_v27, %v3165_v16 }
 0xced   : > { %3175 = vst [vmem:[%s510_s25] sm:$0x1] %v3174_v52 }
 0xcee   : > { %4692 = shalt.err (!%p4689_p8)
}
 0xcef   : > { %4330 = dma.vmem_to_hbm [thread:$0]  (%p4862_p5), %s3188_s13, 16, %s3190_s28, %s3177_s18  }
 0xcf0 PF: > { %s5528_s14 = sld [smem:[#allocation17_spill]] }
 0xcf1   : > { %s5529_s16 = sld [smem:[#allocation15_spill]] }
 0xcf6   : > { %p4357_p9 = scmp.ge.s32.totalorder %s5528_s14, 2 }
 0xcf7   : > { %s3201_s30 = sand.u32 1, %s5529_s16  }
 0xcf8   : > { %p4346_p10 = pnand %p4357_p9, %p4866_p6  ;;  %s3202_s6 = scalar_lea.sflag [#allocation4], %s3201_s30 }
 0xcfa   : > { %p4347_p11 = pneg %p4346_p10 }
 0xcfc   : > { %4722 = dma.done.wait (%p4347_p11), %s3202_s6, 16  }
 0xcfd   : > { %4724 = vsyncadd (%p4347_p11), %s3202_s6, 4294967280  ;;  %s5531_s28 = sld [smem:[#allocation18_spill]]  ;;  %s5534_s25 = smov %s4731_s26 }
 0xcfe   : > { %s5532_s4 = sld [smem:[#allocation16_spill]] }
 0xcff   : > { %s5533_s27 = sld [smem:[#allocation19_spill]] }
 0xd03   : > { %p26_p12 = scmp.ge.s32.totalorder %s5531_s28, 4  }
 0xd04   : > { %s5535_s26 = smov %s5532_s4 }
 0xd05   :  { %28 = sbr.rel (!%p26_p12) target bundleno = 10 (0xa), region = 136 }
 0xd0a   :  { %3207 = vsyncpa [#allocation3], 1 }
 0xd0b   :  { %3209 = vsyncpa [#allocation3 + $0x1], 1 }
 0xd0c   :  { %3210 = vsyncpa [#allocation6], 1 }
 0xd0d   :  { %3211 = vsyncpa [#allocation9], 1 }
 0xd0e   :  { %3212 = vsyncpa [#allocation4], 1 }
 0xd0f   :  { %3214 = vsyncpa [#allocation4 + $0x1], 1 }

</bundles_post_ra>
